<compile_context>
chip_gen: v7x
topology: tpu7x:2x2x1
jax: 0.10.0
libtpu: 0.0.40
codegen_flags: <defaults>
</compile_context>

<pallas_src>
import functools

import jax
import jax.numpy as jnp
from jax.experimental import pallas as pl
from jax.experimental.pallas import tpu as pltpu

D_MAX = 8         # number of disparity hypotheses in the cost volume
EPS = 1e-6
NEG_VAL = -1e30   # large-negative mask value (exp underflows to 0, no inf math)


def _num_tensorcores():
    """Best-effort TensorCore count (v7x has 2 per chip); safe fallback = 1."""
    try:
        info = pltpu.get_tpu_info()
        for name in ("num_cores", "core_count", "cores", "num_tensorcores"):
            v = getattr(info, name, None)
            if v:
                try:
                    return max(1, int(v))
                except Exception:
                    pass
    except Exception:
        pass
    return 1


def cost_volume_kernel(w_ref, calib_ref, fl_ref, fr_ref, depth_ref,
                       *, B, C, H, W, d_max):
    """Cost volume -> expected disparity -> depth for B proposals.

    w_ref     : VMEM (C, C, 1) f32   w_ref[c, o, 0] = proj_w[o, c] / sqrt(C)
    calib_ref : VMEM (1, B, 1) f32   focal * baseline per proposal
    fl_ref    : VMEM (B, C, HW) bf16 left  ROI features (native NCHW, HW flat)
    fr_ref    : VMEM (B, C, HW) bf16 right ROI features
    depth_ref : VMEM (1, B, HW) f32  predicted depth maps (lane-dense, HW=H*W)
    """
    HW = H * W

    fl = fl_ref[...].astype(jnp.float32)            # (B, C, HW)
    fr = fr_ref[...].astype(jnp.float32)

    # --- 1x1-conv projection + ReLU as C weight-column FMAs on the VPU
    #     (MXU is skipped on purpose: C=4 would waste >99% of it).
    #     The 1/C correlation normalization is folded into w (both sides
    #     scaled by C**-0.5 in the wrapper).
    wc = w_ref[0:1, :, :]                           # (1, C, 1)
    fl_p = wc * fl[:, 0:1, :]                       # broadcast -> (B, C, HW)
    fr_p = wc * fr[:, 0:1, :]
    for c in range(1, C):
        wc = w_ref[c:c + 1, :, :]
        fl_p = fl_p + wc * fl[:, c:c + 1, :]
        fr_p = fr_p + wc * fr[:, c:c + 1, :]
    fl_p = jnp.maximum(fl_p, 0.0)
    fr_p = jnp.maximum(fr_p, 0.0)

    # --- correlation cost volume over d_max disparities (dense form: all maps
    #     first, then one max and one exp pass -- no serialized running max).
    lane = jax.lax.broadcasted_iota(jnp.int32, (B, HW), 1)
    w_col = lane % W                                # pixel column within ROI row
    corrs = []
    for d in range(d_max):
        # Right features shifted by d pixels along W (XLU lane roll).  Columns
        # that wrapped across a row boundary are exactly those with w_col < d.
        fr_s = fr_p if d == 0 else pltpu.roll(fr_p, shift=d, axis=2)
        c_d = jnp.sum(fl_p * fr_s, axis=1)          # (B, HW)
        if d > 0:
            c_d = jnp.where(w_col >= d, c_d, NEG_VAL)
        corrs.append(c_d)

    m = corrs[0]
    for d in range(1, d_max):
        m = jnp.maximum(m, corrs[d])
    den = jnp.zeros_like(m)
    num = jnp.zeros_like(m)
    for d in range(d_max):
        p = jnp.exp(corrs[d] - m)                   # masked entries -> 0
        den = den + p
        num = num + p * float(d)

    # expected disparity -> depth:  calib / (num/den + eps) == calib*den/(num+eps*den)
    # TODO(synk): the reference head may apply a disparity floor/offset before
    # the depth conversion; kept as calib / (disp + eps) to match prior semantics.
    calib = calib_ref[0]                            # (B, 1), broadcasts over lanes
    depth = calib * den / (num + EPS * den)
    depth_ref[0] = depth.astype(depth_ref.dtype)


def run_cost_volume(proj_w, feat_left, feat_right, calib,
                    d_max=D_MAX, rois_per_block=None):
    """feat_left/right: (N, C, H, W) (bf16 preferred); calib: (N,) -> depth (N, H, W)."""
    N, C, H, W = feat_left.shape
    HW = H * W

    # Proposals per grid step: target ~256 KiB of bf16 feature per side per
    # block (amortizes the ~0.35us per-step overhead) while keeping the f32
    # working set at a few MiB so it fits v7x's 64 MiB VMEM with headroom.
    if rois_per_block is None:
        rois_per_block = max(1, (256 * 1024) // (C * HW * 2))
    B = max(1, min(N, rois_per_block))
    G = -(-N // B)
    cores = _num_tensorcores()
    if cores > 1:                       # v7x: keep the grid TensorCore-balanced
        G = -(-G // cores) * cores
    B = -(-N // G)
    N_pad = G * B
    pad = N_pad - N

    def prep(f):
        f = f.reshape(N, C, HW)                    # free reshape, no transpose
        f = f.astype(jnp.bfloat16)                 # no-op if the producer is bf16
        if pad:
            f = jnp.pad(f, ((0, pad), (0, 0), (0, 0)))
        return f

    fl = prep(feat_left)
    fr = prep(feat_right)

    calib_f = calib.astype(jnp.float32)
    if pad:
        calib_f = jnp.pad(calib_f, (0, pad))
    calib3 = calib_f.reshape(G, B, 1)

    # Projection weight as (C_in, C_out, 1) columns; fold the 1/C correlation
    # normalization into both sides (ReLU is positive-homogeneous).
    w3 = (proj_w.T.astype(jnp.float32) * (C ** -0.5))[:, :, None]

    kernel = functools.partial(cost_volume_kernel,
                               B=B, C=C, H=H, W=W, d_max=d_max)

    # Rough cost hint so XLA schedules the surrounding loss ops sensibly.
    flops = N_pad * (4 * C * C * HW + d_max * (2 * C * HW + 8 * HW) + 8 * HW)
    cost = pl.CostEstimate(
        flops=int(flops),
        transcendentals=int(N_pad * HW * d_max),
        bytes_accessed=int(2 * N_pad * C * HW * 2 + N_pad * HW * 4
                           + N_pad * 4 + C * C * 4),
    )

    # Explicit VMEM budget: 2 sides x 2 pipeline buffers of bf16 features plus
    # the f32 temporaries, with slack; clamped so it stays safe on v7x (64 MiB).
    est = (8 * B * C * HW            # bf16 feature blocks, double-buffered
           + 24 * B * C * HW         # f32 fl/fr/fl_p/fr_p temporaries
           + (d_max + 6) * B * HW * 4
           + (1 << 20))
    vmem_limit = int(min(48 * 1024 * 1024, max(16 * 1024 * 1024, 2 * est)))

    depth = pl.pallas_call(
        kernel,
        out_shape=jax.ShapeDtypeStruct((G, B, HW), jnp.float32),
        grid=(G,),
        in_specs=[
            pl.BlockSpec((C, C, 1), lambda i: (0, 0, 0)),      # projection weight
            pl.BlockSpec((1, B, 1), lambda i: (i, 0, 0)),      # calib per block
            pl.BlockSpec((B, C, HW), lambda i: (i, 0, 0)),     # left features (bf16)
            pl.BlockSpec((B, C, HW), lambda i: (i, 0, 0)),     # right features (bf16)
        ],
        out_specs=pl.BlockSpec((1, B, HW), lambda i: (i, 0, 0)),
        compiler_params=pltpu.CompilerParams(
            dimension_semantics=("parallel",),
            vmem_limit_bytes=vmem_limit),
        cost_estimate=cost,
    )(w3, calib3, fl, fr)

    # (G, B, HW) -> (N_pad, H, W) -> (N, H, W): free reshapes + slice.
    return depth.reshape(N_pad, H, W)[:N]


def make_params(in_channels, seed=0):
    """Deterministic in-script parameter init (shapes from module __init__)."""
    key = jax.random.PRNGKey(seed)
    proj_w = (jax.random.normal(key, (in_channels, in_channels), jnp.float32)
              * 0.05 + jnp.eye(in_channels, dtype=jnp.float32))
    return {"proj_w": proj_w}


@functools.partial(jax.jit, static_argnames=("training",))
def roi_cost_head_forward(params, feat_left, feat_right, labels,
                          target_depth, calib, training=True):
    """JAX/Pallas analogue of ROICostHead.forward (training path).

    Returns (depth, loss_dict).
    """
    # keep_only_positive_boxes: proposals with labels > 0 contribute to the loss.
    pos_mask = (labels > 0).astype(jnp.float32)                  # (N,)

    # depth_feature_extractors hot path -> Pallas kernel.
    depth = run_cost_volume(params["proj_w"], feat_left, feat_right, calib)

    if not training:
        # TODO(synk): make_cost_volum_post_processor is box bookkeeping; the
        # numeric output here is the per-ROI depth map.
        return depth, {}

    # loss_evaluator: masked smooth-L1 between predicted and target depth,
    # averaged over positive proposals; 0.0 if there are none (matches the
    # `proposals_sum_num == 0` early return).
    diff = jnp.abs(depth - target_depth)
    sl1 = jnp.where(diff < 1.0, 0.5 * diff * diff, diff - 0.5)
    per_roi = jnp.mean(sl1, axis=(1, 2))                         # (N,)
    num_pos = jnp.sum(pos_mask)
    loss = jnp.where(
        num_pos > 0,
        jnp.sum(per_roi * pos_mask) / jnp.maximum(num_pos, 1.0),
        0.0,
    )
    return depth, {"loss_cost_depth": loss}


if __name__ == "__main__":
    N, C, H, W = 8, 4, 16, 16          # proposals, in_channels, ROI resolution
    key = jax.random.PRNGKey(0)
    k1, k2, k3, k4, k5 = jax.random.split(key, 5)

    # Producer keeps ROI features in bf16 (halves HBM->VMEM DMA bytes).
    feat_left = jax.random.normal(k1, (N, C, H, W), jnp.float32).astype(jnp.bfloat16)
    feat_right = jax.random.normal(k2, (N, C, H, W), jnp.float32).astype(jnp.bfloat16)
    labels = jax.random.randint(k3, (N,), 0, 3)                  # 0 => negative
    target_depth = jax.random.uniform(k4, (N, H, W), jnp.float32,
                                      minval=5.0, maxval=50.0)
    calib = jax.random.uniform(k5, (N,), jnp.float32,
                               minval=300.0, maxval=400.0)       # focal*baseline

    params = make_params(C, seed=0)

    depth, losses = roi_cost_head_forward(
        params, feat_left, feat_right, labels, target_depth, calib,
        training=True)
    jax.block_until_ready(depth)
    jax.block_until_ready(losses["loss_cost_depth"])

    assert depth.shape == (N, H, W)
    assert bool(jnp.isfinite(depth).all())
    assert bool(jnp.isfinite(losses["loss_cost_depth"]))

    # Exercise the multi-block grid + row-padding path and check consistency.
    depth_blocked = jax.jit(
        lambda pw, fl, fr, cb: run_cost_volume(pw, fl, fr, cb, rois_per_block=3)
    )(params["proj_w"], feat_left, feat_right, calib)
    jax.block_until_ready(depth_blocked)
    assert depth_blocked.shape == (N, H, W)
    assert bool(jnp.allclose(depth, depth_blocked, rtol=1e-4, atol=1e-2))

    print("KERNEL_OK")
</pallas_src>

<mosaic_0001>
module attributes {stable_mosaic.version = 11 : i64} {
  func.func @cost_volume_kernel(%arg0: i32, %arg1: memref<4x4x1xf32, #tpu.memory_space<vmem>>, %arg2: memref<1x8x1xf32, #tpu.memory_space<vmem>>, %arg3: memref<8x4x256xbf16, #tpu.memory_space<vmem>>, %arg4: memref<8x4x256xbf16, #tpu.memory_space<vmem>>, %arg5: memref<1x8x256xf32, #tpu.memory_space<vmem>>) attributes {dimension_semantics = [#tpu.dimension_semantics<parallel>], iteration_bounds = array<i64: 1>, scalar_prefetch = 0 : i64, scratch_operands = 0 : i64, tpu.core_type = #tpu.core_type<tc>, window_params = [{pipeline_mode = #tpu.pipeline_mode<synchronous>, transform_indices = @transform_0, window_bounds = array<i64: 4, 4, 1>}, {transform_indices = @transform_1, window_bounds = array<i64: 1, 8, 1>}, {transform_indices = @transform_2, window_bounds = array<i64: 8, 4, 256>}, {transform_indices = @transform_3, window_bounds = array<i64: 8, 4, 256>}, {transform_indices = @transform_4, window_bounds = array<i64: 1, 8, 256>}]} {
    %c0 = arith.constant 0 : index
    %c0_0 = arith.constant 0 : index
    %c0_1 = arith.constant 0 : index
    %0 = vector.load %arg3[%c0, %c0_0, %c0_1] : memref<8x4x256xbf16, #tpu.memory_space<vmem>>, vector<8x4x256xbf16>
    %1 = arith.extf %0 : vector<8x4x256xbf16> to vector<8x4x256xf32>
    %c0_2 = arith.constant 0 : index
    %c0_3 = arith.constant 0 : index
    %c0_4 = arith.constant 0 : index
    %2 = vector.load %arg4[%c0_2, %c0_3, %c0_4] : memref<8x4x256xbf16, #tpu.memory_space<vmem>>, vector<8x4x256xbf16>
    %3 = arith.extf %2 : vector<8x4x256xbf16> to vector<8x4x256xf32>
    %c0_5 = arith.constant 0 : index
    %c0_6 = arith.constant 0 : index
    %c0_7 = arith.constant 0 : index
    %4 = vector.load %arg1[%c0_5, %c0_6, %c0_7] : memref<4x4x1xf32, #tpu.memory_space<vmem>>, vector<1x4x1xf32>
    %5 = vector.extract_strided_slice %1 {offsets = [0, 0, 0], sizes = [8, 1, 256], strides = [1, 1, 1]} : vector<8x4x256xf32> to vector<8x1x256xf32>
    %6 = vector.broadcast %4 : vector<1x4x1xf32> to vector<8x4x256xf32>
    %7 = vector.broadcast %5 : vector<8x1x256xf32> to vector<8x4x256xf32>
    %8 = arith.mulf %6, %7 : vector<8x4x256xf32>
    %9 = vector.extract_strided_slice %3 {offsets = [0, 0, 0], sizes = [8, 1, 256], strides = [1, 1, 1]} : vector<8x4x256xf32> to vector<8x1x256xf32>
    %10 = vector.broadcast %4 : vector<1x4x1xf32> to vector<8x4x256xf32>
    %11 = vector.broadcast %9 : vector<8x1x256xf32> to vector<8x4x256xf32>
    %12 = arith.mulf %10, %11 : vector<8x4x256xf32>
    %c1 = arith.constant 1 : index
    %c0_8 = arith.constant 0 : index
    %c0_9 = arith.constant 0 : index
    %13 = vector.load %arg1[%c1, %c0_8, %c0_9] : memref<4x4x1xf32, #tpu.memory_space<vmem>>, vector<1x4x1xf32>
    %14 = vector.extract_strided_slice %1 {offsets = [0, 1, 0], sizes = [8, 1, 256], strides = [1, 1, 1]} : vector<8x4x256xf32> to vector<8x1x256xf32>
    %15 = vector.broadcast %13 : vector<1x4x1xf32> to vector<8x4x256xf32>
    %16 = vector.broadcast %14 : vector<8x1x256xf32> to vector<8x4x256xf32>
    %17 = arith.mulf %15, %16 : vector<8x4x256xf32>
    %18 = arith.addf %8, %17 : vector<8x4x256xf32>
    %19 = vector.extract_strided_slice %3 {offsets = [0, 1, 0], sizes = [8, 1, 256], strides = [1, 1, 1]} : vector<8x4x256xf32> to vector<8x1x256xf32>
    %20 = vector.broadcast %13 : vector<1x4x1xf32> to vector<8x4x256xf32>
    %21 = vector.broadcast %19 : vector<8x1x256xf32> to vector<8x4x256xf32>
    %22 = arith.mulf %20, %21 : vector<8x4x256xf32>
    %23 = arith.addf %12, %22 : vector<8x4x256xf32>
    %c2 = arith.constant 2 : index
    %c0_10 = arith.constant 0 : index
    %c0_11 = arith.constant 0 : index
    %24 = vector.load %arg1[%c2, %c0_10, %c0_11] : memref<4x4x1xf32, #tpu.memory_space<vmem>>, vector<1x4x1xf32>
    %25 = vector.extract_strided_slice %1 {offsets = [0, 2, 0], sizes = [8, 1, 256], strides = [1, 1, 1]} : vector<8x4x256xf32> to vector<8x1x256xf32>
    %26 = vector.broadcast %24 : vector<1x4x1xf32> to vector<8x4x256xf32>
    %27 = vector.broadcast %25 : vector<8x1x256xf32> to vector<8x4x256xf32>
    %28 = arith.mulf %26, %27 : vector<8x4x256xf32>
    %29 = arith.addf %18, %28 : vector<8x4x256xf32>
    %30 = vector.extract_strided_slice %3 {offsets = [0, 2, 0], sizes = [8, 1, 256], strides = [1, 1, 1]} : vector<8x4x256xf32> to vector<8x1x256xf32>
    %31 = vector.broadcast %24 : vector<1x4x1xf32> to vector<8x4x256xf32>
    %32 = vector.broadcast %30 : vector<8x1x256xf32> to vector<8x4x256xf32>
    %33 = arith.mulf %31, %32 : vector<8x4x256xf32>
    %34 = arith.addf %23, %33 : vector<8x4x256xf32>
    %c3 = arith.constant 3 : index
    %c0_12 = arith.constant 0 : index
    %c0_13 = arith.constant 0 : index
    %35 = vector.load %arg1[%c3, %c0_12, %c0_13] : memref<4x4x1xf32, #tpu.memory_space<vmem>>, vector<1x4x1xf32>
    %36 = vector.extract_strided_slice %1 {offsets = [0, 3, 0], sizes = [8, 1, 256], strides = [1, 1, 1]} : vector<8x4x256xf32> to vector<8x1x256xf32>
    %37 = vector.broadcast %35 : vector<1x4x1xf32> to vector<8x4x256xf32>
    %38 = vector.broadcast %36 : vector<8x1x256xf32> to vector<8x4x256xf32>
    %39 = arith.mulf %37, %38 : vector<8x4x256xf32>
    %40 = arith.addf %29, %39 : vector<8x4x256xf32>
    %41 = vector.extract_strided_slice %3 {offsets = [0, 3, 0], sizes = [8, 1, 256], strides = [1, 1, 1]} : vector<8x4x256xf32> to vector<8x1x256xf32>
    %42 = vector.broadcast %35 : vector<1x4x1xf32> to vector<8x4x256xf32>
    %43 = vector.broadcast %41 : vector<8x1x256xf32> to vector<8x4x256xf32>
    %44 = arith.mulf %42, %43 : vector<8x4x256xf32>
    %45 = arith.addf %34, %44 : vector<8x4x256xf32>
    %cst = arith.constant 0.000000e+00 : f32
    %46 = vector.broadcast %cst : f32 to vector<8x4x256xf32>
    %47 = arith.maximumf %40, %46 : vector<8x4x256xf32>
    %cst_14 = arith.constant 0.000000e+00 : f32
    %48 = vector.broadcast %cst_14 : f32 to vector<8x4x256xf32>
    %49 = arith.maximumf %45, %48 : vector<8x4x256xf32>
    %50 = tpu.iota {dimensions = array<i32: 1>} : vector<8x256xi32>
    %c16_i32 = arith.constant 16 : i32
    %c0_i32 = arith.constant 0 : i32
    %51 = arith.cmpi eq, %c16_i32, %c0_i32 : i32
    %c1_i32 = arith.constant 1 : i32
    %52 = arith.select %51, %c1_i32, %c16_i32 : i32
    %53 = vector.broadcast %52 : i32 to vector<8x256xi32>
    %54 = arith.remsi %50, %53 : vector<8x256xi32>
    %c0_i32_15 = arith.constant 0 : i32
    %55 = vector.broadcast %c0_i32_15 : i32 to vector<8x256xi32>
    %56 = arith.cmpi ne, %54, %55 : vector<8x256xi32>
    %c0_i32_16 = arith.constant 0 : i32
    %57 = vector.broadcast %c0_i32_16 : i32 to vector<8x256xi32>
    %58 = arith.cmpi slt, %54, %57 : vector<8x256xi32>
    %c0_i32_17 = arith.constant 0 : i32
    %59 = arith.cmpi slt, %52, %c0_i32_17 : i32
    %60 = vector.broadcast %59 : i1 to vector<8x256xi1>
    %61 = vector.broadcast %60 : vector<8x256xi1> to vector<8x256xi1>
    %62 = arith.xori %58, %61 : vector<8x256xi1>
    %63 = arith.andi %62, %56 : vector<8x256xi1>
    %64 = vector.broadcast %52 : i32 to vector<8x256xi32>
    %65 = arith.addi %54, %64 : vector<8x256xi32>
    %66 = arith.select %63, %65, %54 : vector<8x256xi1>, vector<8x256xi32>
    %67 = arith.mulf %47, %49 : vector<8x4x256xf32>
    %cst_18 = arith.constant dense<0.000000e+00> : vector<8x256xf32>
    %68 = vector.multi_reduction <add>, %67, %cst_18 [1] : vector<8x4x256xf32> to vector<8x256xf32>
    %c1_i32_19 = arith.constant 1 : i32
    %69 = tpu.dynamic_rotate %49 by %c1_i32_19 dim 2 : vector<8x4x256xf32>, i32 -> vector<8x4x256xf32>
    %70 = arith.mulf %47, %69 : vector<8x4x256xf32>
    %cst_20 = arith.constant dense<0.000000e+00> : vector<8x256xf32>
    %71 = vector.multi_reduction <add>, %70, %cst_20 [1] : vector<8x4x256xf32> to vector<8x256xf32>
    %c1_i32_21 = arith.constant 1 : i32
    %72 = vector.broadcast %c1_i32_21 : i32 to vector<8x256xi32>
    %73 = arith.cmpi sge, %66, %72 : vector<8x256xi32>
    %cst_22 = arith.constant -1.000000e+30 : f32
    %74 = vector.broadcast %cst_22 : f32 to vector<8x256xf32>
    %75 = arith.select %73, %71, %74 : vector<8x256xi1>, vector<8x256xf32>
    %c2_i32 = arith.constant 2 : i32
    %76 = tpu.dynamic_rotate %49 by %c2_i32 dim 2 : vector<8x4x256xf32>, i32 -> vector<8x4x256xf32>
    %77 = arith.mulf %47, %76 : vector<8x4x256xf32>
    %cst_23 = arith.constant dense<0.000000e+00> : vector<8x256xf32>
    %78 = vector.multi_reduction <add>, %77, %cst_23 [1] : vector<8x4x256xf32> to vector<8x256xf32>
    %c2_i32_24 = arith.constant 2 : i32
    %79 = vector.broadcast %c2_i32_24 : i32 to vector<8x256xi32>
    %80 = arith.cmpi sge, %66, %79 : vector<8x256xi32>
    %cst_25 = arith.constant -1.000000e+30 : f32
    %81 = vector.broadcast %cst_25 : f32 to vector<8x256xf32>
    %82 = arith.select %80, %78, %81 : vector<8x256xi1>, vector<8x256xf32>
    %c3_i32 = arith.constant 3 : i32
    %83 = tpu.dynamic_rotate %49 by %c3_i32 dim 2 : vector<8x4x256xf32>, i32 -> vector<8x4x256xf32>
    %84 = arith.mulf %47, %83 : vector<8x4x256xf32>
    %cst_26 = arith.constant dense<0.000000e+00> : vector<8x256xf32>
    %85 = vector.multi_reduction <add>, %84, %cst_26 [1] : vector<8x4x256xf32> to vector<8x256xf32>
    %c3_i32_27 = arith.constant 3 : i32
    %86 = vector.broadcast %c3_i32_27 : i32 to vector<8x256xi32>
    %87 = arith.cmpi sge, %66, %86 : vector<8x256xi32>
    %cst_28 = arith.constant -1.000000e+30 : f32
    %88 = vector.broadcast %cst_28 : f32 to vector<8x256xf32>
    %89 = arith.select %87, %85, %88 : vector<8x256xi1>, vector<8x256xf32>
    %c4_i32 = arith.constant 4 : i32
    %90 = tpu.dynamic_rotate %49 by %c4_i32 dim 2 : vector<8x4x256xf32>, i32 -> vector<8x4x256xf32>
    %91 = arith.mulf %47, %90 : vector<8x4x256xf32>
    %cst_29 = arith.constant dense<0.000000e+00> : vector<8x256xf32>
    %92 = vector.multi_reduction <add>, %91, %cst_29 [1] : vector<8x4x256xf32> to vector<8x256xf32>
    %c4_i32_30 = arith.constant 4 : i32
    %93 = vector.broadcast %c4_i32_30 : i32 to vector<8x256xi32>
    %94 = arith.cmpi sge, %66, %93 : vector<8x256xi32>
    %cst_31 = arith.constant -1.000000e+30 : f32
    %95 = vector.broadcast %cst_31 : f32 to vector<8x256xf32>
    %96 = arith.select %94, %92, %95 : vector<8x256xi1>, vector<8x256xf32>
    %c5_i32 = arith.constant 5 : i32
    %97 = tpu.dynamic_rotate %49 by %c5_i32 dim 2 : vector<8x4x256xf32>, i32 -> vector<8x4x256xf32>
    %98 = arith.mulf %47, %97 : vector<8x4x256xf32>
    %cst_32 = arith.constant dense<0.000000e+00> : vector<8x256xf32>
    %99 = vector.multi_reduction <add>, %98, %cst_32 [1] : vector<8x4x256xf32> to vector<8x256xf32>
    %c5_i32_33 = arith.constant 5 : i32
    %100 = vector.broadcast %c5_i32_33 : i32 to vector<8x256xi32>
    %101 = arith.cmpi sge, %66, %100 : vector<8x256xi32>
    %cst_34 = arith.constant -1.000000e+30 : f32
    %102 = vector.broadcast %cst_34 : f32 to vector<8x256xf32>
    %103 = arith.select %101, %99, %102 : vector<8x256xi1>, vector<8x256xf32>
    %c6_i32 = arith.constant 6 : i32
    %104 = tpu.dynamic_rotate %49 by %c6_i32 dim 2 : vector<8x4x256xf32>, i32 -> vector<8x4x256xf32>
    %105 = arith.mulf %47, %104 : vector<8x4x256xf32>
    %cst_35 = arith.constant dense<0.000000e+00> : vector<8x256xf32>
    %106 = vector.multi_reduction <add>, %105, %cst_35 [1] : vector<8x4x256xf32> to vector<8x256xf32>
    %c6_i32_36 = arith.constant 6 : i32
    %107 = vector.broadcast %c6_i32_36 : i32 to vector<8x256xi32>
    %108 = arith.cmpi sge, %66, %107 : vector<8x256xi32>
    %cst_37 = arith.constant -1.000000e+30 : f32
    %109 = vector.broadcast %cst_37 : f32 to vector<8x256xf32>
    %110 = arith.select %108, %106, %109 : vector<8x256xi1>, vector<8x256xf32>
    %c7_i32 = arith.constant 7 : i32
    %111 = tpu.dynamic_rotate %49 by %c7_i32 dim 2 : vector<8x4x256xf32>, i32 -> vector<8x4x256xf32>
    %112 = arith.mulf %47, %111 : vector<8x4x256xf32>
    %cst_38 = arith.constant dense<0.000000e+00> : vector<8x256xf32>
    %113 = vector.multi_reduction <add>, %112, %cst_38 [1] : vector<8x4x256xf32> to vector<8x256xf32>
    %c7_i32_39 = arith.constant 7 : i32
    %114 = vector.broadcast %c7_i32_39 : i32 to vector<8x256xi32>
    %115 = arith.cmpi sge, %66, %114 : vector<8x256xi32>
    %cst_40 = arith.constant -1.000000e+30 : f32
    %116 = vector.broadcast %cst_40 : f32 to vector<8x256xf32>
    %117 = arith.select %115, %113, %116 : vector<8x256xi1>, vector<8x256xf32>
    %118 = arith.maximumf %68, %75 : vector<8x256xf32>
    %119 = arith.maximumf %118, %82 : vector<8x256xf32>
    %120 = arith.maximumf %119, %89 : vector<8x256xf32>
    %121 = arith.maximumf %120, %96 : vector<8x256xf32>
    %122 = arith.maximumf %121, %103 : vector<8x256xf32>
    %123 = arith.maximumf %122, %110 : vector<8x256xf32>
    %124 = arith.maximumf %123, %117 : vector<8x256xf32>
    %cst_41 = arith.constant 0.000000e+00 : f32
    %125 = vector.broadcast %cst_41 : f32 to vector<8x256xf32>
    %cst_42 = arith.constant 0.000000e+00 : f32
    %126 = vector.broadcast %cst_42 : f32 to vector<8x256xf32>
    %127 = arith.subf %68, %124 : vector<8x256xf32>
    %128 = math.exp %127 : vector<8x256xf32>
    %129 = arith.addf %125, %128 : vector<8x256xf32>
    %cst_43 = arith.constant 0.000000e+00 : f32
    %130 = vector.broadcast %cst_43 : f32 to vector<8x256xf32>
    %131 = arith.mulf %128, %130 : vector<8x256xf32>
    %132 = arith.addf %126, %131 : vector<8x256xf32>
    %133 = arith.subf %75, %124 : vector<8x256xf32>
    %134 = math.exp %133 : vector<8x256xf32>
    %135 = arith.addf %129, %134 : vector<8x256xf32>
    %cst_44 = arith.constant 1.000000e+00 : f32
    %136 = vector.broadcast %cst_44 : f32 to vector<8x256xf32>
    %137 = arith.mulf %134, %136 : vector<8x256xf32>
    %138 = arith.addf %132, %137 : vector<8x256xf32>
    %139 = arith.subf %82, %124 : vector<8x256xf32>
    %140 = math.exp %139 : vector<8x256xf32>
    %141 = arith.addf %135, %140 : vector<8x256xf32>
    %cst_45 = arith.constant 2.000000e+00 : f32
    %142 = vector.broadcast %cst_45 : f32 to vector<8x256xf32>
    %143 = arith.mulf %140, %142 : vector<8x256xf32>
    %144 = arith.addf %138, %143 : vector<8x256xf32>
    %145 = arith.subf %89, %124 : vector<8x256xf32>
    %146 = math.exp %145 : vector<8x256xf32>
    %147 = arith.addf %141, %146 : vector<8x256xf32>
    %cst_46 = arith.constant 3.000000e+00 : f32
    %148 = vector.broadcast %cst_46 : f32 to vector<8x256xf32>
    %149 = arith.mulf %146, %148 : vector<8x256xf32>
    %150 = arith.addf %144, %149 : vector<8x256xf32>
    %151 = arith.subf %96, %124 : vector<8x256xf32>
    %152 = math.exp %151 : vector<8x256xf32>
    %153 = arith.addf %147, %152 : vector<8x256xf32>
    %cst_47 = arith.constant 4.000000e+00 : f32
    %154 = vector.broadcast %cst_47 : f32 to vector<8x256xf32>
    %155 = arith.mulf %152, %154 : vector<8x256xf32>
    %156 = arith.addf %150, %155 : vector<8x256xf32>
    %157 = arith.subf %103, %124 : vector<8x256xf32>
    %158 = math.exp %157 : vector<8x256xf32>
    %159 = arith.addf %153, %158 : vector<8x256xf32>
    %cst_48 = arith.constant 5.000000e+00 : f32
    %160 = vector.broadcast %cst_48 : f32 to vector<8x256xf32>
    %161 = arith.mulf %158, %160 : vector<8x256xf32>
    %162 = arith.addf %156, %161 : vector<8x256xf32>
    %163 = arith.subf %110, %124 : vector<8x256xf32>
    %164 = math.exp %163 : vector<8x256xf32>
    %165 = arith.addf %159, %164 : vector<8x256xf32>
    %cst_49 = arith.constant 6.000000e+00 : f32
    %166 = vector.broadcast %cst_49 : f32 to vector<8x256xf32>
    %167 = arith.mulf %164, %166 : vector<8x256xf32>
    %168 = arith.addf %162, %167 : vector<8x256xf32>
    %169 = arith.subf %117, %124 : vector<8x256xf32>
    %170 = math.exp %169 : vector<8x256xf32>
    %171 = arith.addf %165, %170 : vector<8x256xf32>
    %cst_50 = arith.constant 7.000000e+00 : f32
    %172 = vector.broadcast %cst_50 : f32 to vector<8x256xf32>
    %173 = arith.mulf %170, %172 : vector<8x256xf32>
    %174 = arith.addf %168, %173 : vector<8x256xf32>
    %c0_51 = arith.constant 0 : index
    %c0_52 = arith.constant 0 : index
    %c0_53 = arith.constant 0 : index
    %175 = vector.load %arg2[%c0_51, %c0_52, %c0_53] : memref<1x8x1xf32, #tpu.memory_space<vmem>>, vector<1x8x1xf32>
    %176 = vector.shape_cast %175 : vector<1x8x1xf32> to vector<8x1xf32>
    %177 = vector.broadcast %176 : vector<8x1xf32> to vector<8x256xf32>
    %178 = arith.mulf %177, %171 : vector<8x256xf32>
    %cst_54 = arith.constant 9.99999997E-7 : f32
    %179 = vector.broadcast %cst_54 : f32 to vector<8x256xf32>
    %180 = arith.mulf %179, %171 : vector<8x256xf32>
    %181 = arith.addf %174, %180 : vector<8x256xf32>
    %182 = arith.divf %178, %181 : vector<8x256xf32>
    %c0_55 = arith.constant 0 : index
    %c0_56 = arith.constant 0 : index
    %c0_57 = arith.constant 0 : index
    %183 = vector.load %arg5[%c0_55, %c0_56, %c0_57] : memref<1x8x256xf32, #tpu.memory_space<vmem>>, vector<1x8x256xf32>
    %184 = vector.shape_cast %183 : vector<1x8x256xf32> to vector<8x256xf32>
    %185 = vector.shape_cast %182 : vector<8x256xf32> to vector<1x8x256xf32>
    tpu.vector_store %arg5[%c0_55, %c0_56, %c0_57], %185 {strides = array<i32>} : memref<1x8x256xf32, #tpu.memory_space<vmem>>, vector<1x8x256xf32>,
    return
  }
  func.func @transform_0(%arg0: i32) -> (i32, i32, i32) {
    %c0_i32 = arith.constant 0 : i32
    %c0_i32_0 = arith.constant 0 : i32
    %c0_i32_1 = arith.constant 0 : i32
    %c0_i32_2 = arith.constant 0 : i32
    return %c0_i32, %c0_i32_0, %c0_i32_1 : i32, i32, i32
  }
  func.func @transform_1(%arg0: i32) -> (i32, i32, i32) {
    %c0_i32 = arith.constant 0 : i32
    %c0_i32_0 = arith.constant 0 : i32
    %c0_i32_1 = arith.constant 0 : i32
    return %arg0, %c0_i32, %c0_i32_0 : i32, i32, i32
  }
  func.func @transform_2(%arg0: i32) -> (i32, i32, i32) {
    %c0_i32 = arith.constant 0 : i32
    %c0_i32_0 = arith.constant 0 : i32
    %c0_i32_1 = arith.constant 0 : i32
    return %arg0, %c0_i32, %c0_i32_0 : i32, i32, i32
  }
  func.func @transform_3(%arg0: i32) -> (i32, i32, i32) {
    %c0_i32 = arith.constant 0 : i32
    %c0_i32_0 = arith.constant 0 : i32
    %c0_i32_1 = arith.constant 0 : i32
    return %arg0, %c0_i32, %c0_i32_0 : i32, i32, i32
  }
  func.func @transform_4(%arg0: i32) -> (i32, i32, i32) {
    %c0_i32 = arith.constant 0 : i32
    %c0_i32_0 = arith.constant 0 : i32
    %c0_i32_1 = arith.constant 0 : i32
    return %arg0, %c0_i32, %c0_i32_0 : i32, i32, i32
  }
}

</mosaic_0001>

<bundles_post_ra>
// kernel: roi_cost_head_forward.1
= control target key start
LH: loop header
LB: loop body
LE: loop exit
PB: predicated region body
PF: predicated region fallthrough
CT: control target
= control target key end

     0   :  { %v4583_v0 = vmov 0   ;;  %v7840_v5 = vlaneseq  ;;  %s4584_s5 = smov 1   ;;  %s4586_s12 = smov 3   ;;  %vm1543_vm0 = vcmask 1043456   ;;  %vm1851_vm2 = vcmask 1041409   ;;  %s7835_s0 = inlined_call_operand.vmem [shape: f32[4,4,1], index: 0, kind: input, shape index: {}]   ;;  %s7836_s3 = inlined_call_operand.vmem [shape: bf16[8,4,256], index: 3, kind: input, shape index: {}]   ;;  %s7837_s2 = inlined_call_operand.vmem [shape: bf16[8,4,256], index: 2, kind: input, shape index: {}]   ;;  %s7838_s1 = inlined_call_operand.vmem [shape: f32[1,8,1], index: 1, kind: input, shape index: {}]   ;;  %s7839_s4 = inlined_call_operand.vmem [shape: f32[1,8,256], index: 4, kind: output, shape index: {}]  }
   0x1   :  { %4518 = vset.pattern.permute.xlu1 %v4583_v0  ;;  %4517 = vset.pattern.permute.xlu0 %v4583_v0  ;;  %v4469_v1 = vld [vmem:[%s7835_s0 + $0x8] sm:$0xf]  ;;  %v49_v2 = vld [vmem:[%s7835_s0] sm:$0xf]  ;;  %v4470_v3 = vld [vmem:[%s7835_s0 + $0xc] sm:$0xf] }
   0x2   :  { %754 = vperm.xlu1 %4518, %v4469_v1   ;;  %52 = vperm.xlu0 %4517, %v49_v2   ;;  %v4468_v4 = vld [vmem:[%s7835_s0 + $0x4] sm:$0xf]  ;;  %v4629_v6 = vshrl.u32 %v7840_v5, 7  ;;  %v4506_v14 = vld [vmem:[%s7836_s3 + $0x8] sm:$0xff]   ;;  %v4507_v15 = vld [vmem:[%s7836_s3 + $0x10] sm:$0xff]   ;;  %s4587_s13 = smov 4  }
   0x3   :  { %v4488_v7 = vld [vmem:[%s7836_s3] sm:$0xff]   ;;  %v4508_v18 = vld [vmem:[%s7836_s3 + $0x18] sm:$0xff]   ;;  %v4669_v22 = vunpack.c.h.bf16 %v4506_v14  ;;  %v4673_v24 = vunpack.c.l.bf16 %v4506_v14  ;;  %v4675_v25 = vunpack.c.h.bf16 %v4507_v15  ;;  %v4677_v26 = vunpack.c.l.bf16 %v4507_v15  ;;  %s4588_s14 = smov 5   ;;  %s4589_s15 = smov 6  }
   0x4   :  { %v4634_v8 = vunpack.c.h.bf16 %v4488_v7  ;;  %v4637_v9 = vsub.s32 0, %v4629_v6  ;;  %v4640_v10 = vsub.s32 1, %v4629_v6  ;;  %v4643_v11 = vsub.s32 2, %v4629_v6  ;;  %s4590_s16 = smov 7  }
   0x5   :  { %v4646_v12 = vsub.s32 3, %v4629_v6  ;;  %v4648_v13 = vunpack.c.l.bf16 %v4488_v7  ;;  %v4679_v27 = vunpack.c.h.bf16 %v4508_v18  ;;  %v4681_v28 = vunpack.c.l.bf16 %v4508_v18 }
   0x6   :  { %1113 = vperm.xlu1 %4518, %v4470_v3   ;;  %395 = vperm.xlu0 %4517, %v4468_v4   ;;  %v242_v16 = vrot.slane %v4634_v8, %v4637_v9  ;;  %v585_v17 = vrot.slane %v4634_v8, %v4640_v10  ;;  %v944_v19 = vrot.slane %v4634_v8, %v4643_v11  ;;  %v4684_v29 = vsub.s32 4, %v4629_v6 }
   0x7   :  { %v1303_v20 = vrot.slane %v4634_v8, %v4646_v12  ;;  %v234_v21 = vrot.slane %v4648_v13, %v4637_v9  ;;  %v577_v23 = vrot.slane %v4648_v13, %v4640_v10  ;;  %v936_v32 = vrot.slane %v4648_v13, %v4643_v11 }
   0x8   :  { %7942 = vst [vmem:[#allocation2_spill] sm:$0xff] %v4684_v29  ;;  %v4687_v30 = vrot.slane %v242_v16, %v4637_v9  ;;  %v4690_v31 = vrot.slane %v585_v17, %v4640_v10  ;;  %v1295_v33 = vrot.slane %v4648_v13, %v4646_v12  ;;  %v4697_v34 = vrot.slane %v944_v19, %v4643_v11 }
   0x9   :  { %v4700_v35 = vrot.slane %v1303_v20, %v4646_v12  ;;  %v4703_v36 = vrot.slane %v234_v21, %v4637_v9  ;;  %v258_v37 = vrot.slane %v4669_v22, %v4637_v9  ;;  %v4708_v38 = vrot.slane %v577_v23, %v4640_v10 }
   0xa   :  { %v601_v39 = vrot.slane %v4669_v22, %v4640_v10  ;;  %v960_v40 = vrot.slane %v4669_v22, %v4643_v11  ;;  %v1319_v41 = vrot.slane %v4669_v22, %v4646_v12  ;;  %v250_v42 = vrot.slane %v4673_v24, %v4637_v9 }
   0xb   :  { %v593_v43 = vrot.slane %v4673_v24, %v4640_v10  ;;  %v952_v44 = vrot.slane %v4673_v24, %v4643_v11  ;;  %v1311_v45 = vrot.slane %v4673_v24, %v4646_v12  ;;  %v4725_v46 = vrot.slane %v936_v32, %v4643_v11 }
   0xc   :  { %v4728_v47 = vrot.slane %v1295_v33, %v4646_v12  ;;  %v274_v48 = vrot.slane %v4675_v25, %v4637_v9  ;;  %v617_v49 = vrot.slane %v4675_v25, %v4640_v10  ;;  %v4735_v50 = vrot.slane %v258_v37, %v4637_v9 }
   0xd   :  { %v976_v51 = vrot.slane %v4675_v25, %v4643_v11  ;;  %v1335_v52 = vrot.slane %v4675_v25, %v4646_v12  ;;  %v266_v53 = vrot.slane %v4677_v26, %v4637_v9  ;;  %v4744_v54 = vrot.slane %v601_v39, %v4640_v10 }
   0xe   :  { %v4747_v55 = vrot.slane %v960_v40, %v4643_v11  ;;  %v4750_v56 = vrot.slane %v1319_v41, %v4646_v12  ;;  %v609_v57 = vrot.slane %v4677_v26, %v4640_v10  ;;  %v4755_v58 = vrot.slane %v250_v42, %v4637_v9 }
   0xf   :  { %v4758_v59 = vrot.slane %v593_v43, %v4640_v10  ;;  %v4761_v60 = vrot.slane %v952_v44, %v4643_v11  ;;  %v4764_v61 = vrot.slane %v1311_v45, %v4646_v12  ;;  %v4767_v62 = vrot.slane %v274_v48, %v4637_v9 }
  0x10   :  { %v4770_v63 = vrot.slane %v617_v49, %v4640_v10  ;;  %v968_v0 = vrot.slane %v4677_v26, %v4643_v11  ;;  %v1327_v1 = vrot.slane %v4677_v26, %v4646_v12  ;;  %v4777_v2 = vrot.slane %v976_v51, %v4643_v11 }
  0x11   :  { %v4780_v3 = vrot.slane %v1335_v52, %v4646_v12  ;;  %v4783_v4 = vrot.slane %v266_v53, %v4637_v9  ;;  %v290_v7 = vrot.slane %v4679_v27, %v4637_v9  ;;  %v4788_v14 = vrot.slane %v609_v57, %v4640_v10 }
  0x12   :  { %v633_v15 = vrot.slane %v4679_v27, %v4640_v10  ;;  %v4793_v16 = vsub.s32 5, %v4629_v6  ;;  %v4796_v17 = vsub.s32 6, %v4629_v6  ;;  %v992_v18 = vrot.slane %v4679_v27, %v4643_v11 }
  0x13   :  { %v1351_v19 = vrot.slane %v4679_v27, %v4646_v12  ;;  %v282_v20 = vrot.slane %v4681_v28, %v4637_v9  ;;  %v625_v21 = vrot.slane %v4681_v28, %v4640_v10  ;;  %v4807_v23 = vrot.slane %v968_v0, %v4643_v11 }
  0x14   :  { %7943 = vst [vmem:[#allocation3_spill] sm:$0xff] %v4793_v16  ;;  %v4810_v32 = vrot.slane %v1327_v1, %v4646_v12  ;;  %v984_v33 = vrot.slane %v4681_v28, %v4643_v11  ;;  %v1343_v37 = vrot.slane %v4681_v28, %v4646_v12  ;;  %v4817_v39 = vrot.slane %v290_v7, %v4637_v9 }
  0x15   :  { %v246_v40 = vrot.slane %v4634_v8, %v4684_v29  ;;  %v4822_v41 = vsub.s32 7, %v4629_v6  ;;  %v238_v42 = vrot.slane %v4648_v13, %v4684_v29  ;;  %v4827_v43 = vrot.slane %v633_v15, %v4640_v10 }
  0x16   :  { %v589_v44 = vrot.slane %v4634_v8, %v4793_v16  ;;  %v948_v45 = vrot.slane %v4634_v8, %v4796_v17  ;;  %v581_v48 = vrot.slane %v4648_v13, %v4793_v16  ;;  %v4836_v49 = vrot.slane %v992_v18, %v4643_v11 }
  0x17   :  { %v4839_v6 = vrot.slane %v1351_v19, %v4646_v12  ;;  %v4842_v51 = vrot.slane %v282_v20, %v4637_v9  ;;  %v4845_v52 = vrot.slane %v625_v21, %v4640_v10  ;;  %v4848_v53 = vrot.slane %v984_v33, %v4643_v11 }
  0x18   :  { %v4851_v57 = vrot.slane %v1343_v37, %v4646_v12  ;;  %v262_v0 = vrot.slane %v4669_v22, %v4684_v29  ;;  %v254_v1 = vrot.slane %v4673_v24, %v4684_v29  ;;  %v4858_v7 = vrot.slane %v246_v40, %v4637_v9 }
  0x19   :  { %v1307_v15 = vrot.slane %v4634_v8, %v4822_v41  ;;  %v4863_v18 = vrot.slane %v238_v42, %v4637_v9  ;;  %v940_v19 = vrot.slane %v4648_v13, %v4796_v17  ;;  %v4868_v20 = vrot.slane %v589_v44, %v4640_v10 }
  0x1a   :  { %7944 = vst [vmem:[#allocation4_spill] sm:$0xff] %v4851_v57  ;;  %v4871_v21 = vrot.slane %v948_v45, %v4643_v11  ;;  %v4874_v33 = vrot.slane %v581_v48, %v4640_v10  ;;  %v1299_v37 = vrot.slane %v4648_v13, %v4822_v41  ;;  %v605_v8 = vrot.slane %v4669_v22, %v4793_v16 }
  0x1b   :  { %7945 = vst [vmem:[#allocation5_spill] sm:$0xff] %v4863_v18  ;;  %7946 = vst [vmem:[#allocation6_spill] sm:$0xff] %v4868_v20  ;;  %v964_v40 = vrot.slane %v4669_v22, %v4796_v17  ;;  %v1323_v42 = vrot.slane %v4669_v22, %v4822_v41  ;;  %v597_v44 = vrot.slane %v4673_v24, %v4793_v16  ;;  %vm1853_vm3 = vcmask 1042434  }
  0x1c   :  { %7947 = vst [vmem:[#allocation7_spill] sm:$0xff] %v4871_v21  ;;  %7948 = vst [vmem:[#allocation8_spill] sm:$0xff] %v4874_v33  ;;  %v4887_v45 = vrot.slane %v262_v0, %v4637_v9  ;;  %v956_v48 = vrot.slane %v4673_v24, %v4796_v17  ;;  %v1315_v13 = vrot.slane %v4673_v24, %v4822_v41  ;;  %vm1855_vm4 = vcmask 1043459  }
  0x1d   :  { %v278_v5 = vrot.slane %v4675_v25, %v4684_v29  ;;  %v4896_v21 = vrot.slane %v1307_v15, %v4646_v12  ;;  %v4899_v22 = vrot.slane %v940_v19, %v4643_v11  ;;  %v621_v57 = vrot.slane %v4675_v25, %v4793_v16 }
  0x1e   :  { %7949 = vst [vmem:[#allocation9_spill] sm:$0xff] %v4887_v45  ;;  %v980_v0 = vrot.slane %v4675_v25, %v4796_v17  ;;  %v4472_v45 = vld [vmem:[%s7837_s2] sm:$0xff]   ;;  %v4909_v24 = vrot.slane %v1299_v37, %v4646_v12  ;;  %v4912_v33 = vrot.slane %v254_v1, %v4637_v9  ;;  %v1339_v15 = vrot.slane %v4675_v25, %v4822_v41 }
  0x1f   :  { %7950 = vst [vmem:[#allocation10_spill] sm:$0xff] %v4896_v21  ;;  %7951 = vst [vmem:[#allocation11_spill] sm:$0xff] %v4899_v22  ;;  %v270_v19 = vrot.slane %v4677_v26, %v4684_v29  ;;  %v4919_v21 = vrot.slane %v605_v8, %v4640_v10  ;;  %v4922_v22 = vrot.slane %v964_v40, %v4643_v11  ;;  %v4939_v8 = vunpack.c.h.bf16 %v4472_v45 }
  0x20   :  { %7952 = vst [vmem:[#allocation12_spill] sm:$0xff] %v4909_v24  ;;  %7953 = vst [vmem:[#allocation13_spill] sm:$0xff] %v4912_v33  ;;  %v4925_v18 = vrot.slane %v1323_v42, %v4646_v12  ;;  %v4928_v37 = vrot.slane %v597_v44, %v4640_v10  ;;  %v4931_v1 = vrot.slane %v956_v48, %v4643_v11  ;;  %vm1857_vm6 = vcmask 1044484  }
  0x21   :  { %7954 = vst [vmem:[#allocation14_spill] sm:$0xff] %v4919_v21  ;;  %7955 = vst [vmem:[#allocation15_spill] sm:$0xff] %v4922_v22  ;;  %v4934_v25 = vrot.slane %v1315_v13, %v4646_v12  ;;  %v4937_v33 = vrot.slane %v278_v5, %v4637_v9  ;;  %v4942_v40 = vrot.slane %v621_v57, %v4640_v10  ;;  %vm1859_vm7 = vcmask 1045509  }
  0x22   :  { %7956 = vst [vmem:[#allocation16_spill] sm:$0xff] %v4925_v18  ;;  %7957 = vst [vmem:[#allocation17_spill] sm:$0xff] %v4928_v37  ;;  %v4945_v42 = vrot.slane %v980_v0, %v4643_v11  ;;  %v613_v44 = vrot.slane %v4677_v26, %v4793_v16  ;;  %v972_v48 = vrot.slane %v4677_v26, %v4796_v17  ;;  %vm1861_vm8 = vcmask 1046534  }
  0x23   :  { %7958 = vst [vmem:[#allocation18_spill] sm:$0xff] %v4931_v1  ;;  %7959 = vst [vmem:[#allocation19_spill] sm:$0xff] %v4934_v25  ;;  %v4952_v13 = vrot.slane %v1339_v15, %v4646_v12  ;;  %v4955_v5 = vrot.slane %v270_v19, %v4637_v9  ;;  %v1331_v25 = vrot.slane %v4677_v26, %v4822_v41  ;;  %v4983_v1 = vunpack.c.l.bf16 %v4472_v45 }
  0x24   :  { %7960 = vst [vmem:[#allocation20_spill] sm:$0xff] %v4937_v33  ;;  %7961 = vst [vmem:[#allocation21_spill] sm:$0xff] %v4939_v8  ;;  %v294_v57 = vrot.slane %v4679_v27, %v4684_v29  ;;  %v637_v0 = vrot.slane %v4679_v27, %v4793_v16  ;;  %v1355_v18 = vrot.slane %v4679_v27, %v4822_v41  ;;  %vm1863_vm9 = vcmask 1047559  }
  0x25   :  { %7962 = vst [vmem:[#allocation22_spill] sm:$0xff] %v4942_v40  ;;  %7963 = vst [vmem:[#allocation23_spill] sm:$0xff] %v4945_v42  ;;  %v996_v42 = vrot.slane %v4679_v27, %v4796_v17  ;;  %v286_v15 = vrot.slane %v4681_v28, %v4684_v29  ;;  %v629_v19 = vrot.slane %v4681_v28, %v4793_v16 }
  0x26   :  { %7964 = vst [vmem:[#allocation24_spill] sm:$0xff] %v4952_v13  ;;  %7965 = vst [vmem:[#allocation25_spill] sm:$0xff] %v4955_v5  ;;  %v988_v26 = vrot.slane %v4681_v28, %v4796_v17  ;;  %v1347_v13 = vrot.slane %v4681_v28, %v4822_v41  ;;  %v78_v5 = vrot.slane %v4939_v8, %v4684_v29 }
  0x27   :  { %v413_v40 = vrot.slane %v4939_v8, %v4793_v16  ;;  %v772_v27 = vrot.slane %v4939_v8, %v4796_v17  ;;  %v1131_v33 = vrot.slane %v4939_v8, %v4822_v41  ;;  %v4986_v22 = vrot.slane %v613_v44, %v4640_v10 }
  0x28   :  { %v4989_v37 = vrot.slane %v972_v48, %v4643_v11  ;;  %v4992_v28 = vrot.slane %v1331_v25, %v4646_v12  ;;  %v4995_v24 = vrot.slane %v294_v57, %v4637_v9  ;;  %v4998_v21 = vrot.slane %v637_v0, %v4640_v10 }
  0x29   :  { %v5001_v20 = vrot.slane %v996_v42, %v4643_v11  ;;  %v5004_v45 = vrot.slane %v1355_v18, %v4646_v12  ;;  %v5007_v44 = vrot.slane %v286_v15, %v4637_v9  ;;  %v5010_v48 = vrot.slane %v629_v19, %v4640_v10 }
  0x2a   :  { %v5013_v25 = vrot.slane %v988_v26, %v4643_v11  ;;  %v5016_v57 = vrot.slane %v1347_v13, %v4646_v12  ;;  %v5019_v0 = vrot.slane %v78_v5, %v4637_v9  ;;  %v5026_v18 = vrot.slane %v413_v40, %v4640_v10 }
  0x2b   :  { %7966 = vst [vmem:[#allocation26_spill] sm:$0xff] %v5001_v20  ;;  %7967 = vst [vmem:[#allocation27_spill] sm:$0xff] %v5004_v45  ;;  %v5029_v15 = vrot.slane %v772_v27, %v4643_v11  ;;  %v5032_v19 = vrot.slane %v1131_v33, %v4646_v12  ;;  %v70_v13 = vrot.slane %v4983_v1, %v4684_v29 }
  0x2c   :  { %7968 = vst [vmem:[#allocation28_spill] sm:$0xff] %v5013_v25  ;;  %7969 = vst [vmem:[#allocation29_spill] sm:$0xff] %v5016_v57  ;;  %v405_v57 = vrot.slane %v4983_v1, %v4793_v16 }
  0x2d   :  { %7970 = vst [vmem:[#allocation30_spill] sm:$0xff] %v5019_v0  ;;  %7971 = vst [vmem:[#allocation31_spill] sm:$0xff] %v5026_v18 }
  0x2e   :  { %7972 = vst [vmem:[#allocation32_spill] sm:$0xff] %v5029_v15  ;;  %7973 = vst [vmem:[#allocation33_spill] sm:$0xff] %v5032_v19 }
  0x81   :  { %v5021_v42 = vpop.permute.xlu1 %754  ;;  %v5023_v8 = vpop.permute.xlu0 %52 }
  0x82   :  { %v377_v5 = vmul.f32 %v4687_v30, %v5023_v8  ;;  %v1079_v26 = vmul.f32 %v4697_v34, %v5021_v42  ;;  %v375_v27 = vmul.f32 %v4703_v36, %v5023_v8  ;;  %v1077_v33 = vmul.f32 %v4725_v46, %v5021_v42 }
  0x83   :  { %v381_v19 = vmul.f32 %v4735_v50, %v5023_v8  ;;  %v1083_v30 = vmul.f32 %v4747_v55, %v5021_v42  ;;  %v379_v34 = vmul.f32 %v4755_v58, %v5023_v8  ;;  %v1081_v15 = vmul.f32 %v4761_v60, %v5021_v42 }
  0x84   :  { %v385_v40 = vmul.f32 %v4767_v62, %v5023_v8  ;;  %v1087_v36 = vmul.f32 %v4777_v2, %v5021_v42  ;;  %v383_v50 = vmul.f32 %v4783_v4, %v5023_v8  ;;  %v1085_v55 = vmul.f32 %v4807_v23, %v5021_v42 }
  0x85   :  { %v5060_v45 = vpop.permute.xlu1 %1113  ;;  %v5062_v46 = vpop.permute.xlu0 %395  ;;  %v389_v58 = vmul.f32 %v4817_v39, %v5023_v8  ;;  %v1091_v60 = vmul.f32 %v4836_v49, %v5021_v42  ;;  %v387_v4 = vmul.f32 %v4842_v51, %v5023_v8 }
  0x86   :  { %v720_v62 = vmul.f32 %v4690_v31, %v5062_v46  ;;  %v1438_v2 = vmul.f32 %v4700_v35, %v5060_v45  ;;  %v718_v18 = vmul.f32 %v4708_v38, %v5062_v46  ;;  %v1436_v23 = vmul.f32 %v4728_v47, %v5060_v45 }
  0x87   :  { %v724_v39 = vmul.f32 %v4744_v54, %v5062_v46  ;;  %v1442_v49 = vmul.f32 %v4750_v56, %v5060_v45  ;;  %v722_v31 = vmul.f32 %v4758_v59, %v5062_v46  ;;  %v1440_v38 = vmul.f32 %v4764_v61, %v5060_v45 }
  0x88   :  { %v736_v0 = vadd.f32 %v720_v62, %v377_v5  ;;  %v734_v35 = vadd.f32 %v718_v18, %v375_v27  ;;  %v728_v51 = vmul.f32 %v4770_v63, %v5062_v46  ;;  %v1446_v47 = vmul.f32 %v4780_v3, %v5060_v45 }
  0x89   :  { %v740_v16 = vadd.f32 %v724_v39, %v381_v19  ;;  %v738_v25 = vadd.f32 %v722_v31, %v379_v34  ;;  %v726_v54 = vmul.f32 %v4788_v14, %v5062_v46  ;;  %v732_v59 = vmul.f32 %v4827_v43, %v5062_v46 }
  0x8a   :  { %v1095_v56 = vadd.f32 %v1079_v26, %v736_v0  ;;  %v1093_v20 = vadd.f32 %v1077_v33, %v734_v35  ;;  %v744_v29 = vadd.f32 %v728_v51, %v385_v40  ;;  %v1444_v63 = vmul.f32 %v4810_v32, %v5060_v45  ;;  %v7981_v35 = vld [vmem:[#allocation7_spill] sm:$0xff] }
  0x8b   :  { %v1099_v18 = vadd.f32 %v1083_v30, %v740_v16  ;;  %v1097_v5 = vadd.f32 %v1081_v15, %v738_v25  ;;  %v742_v61 = vadd.f32 %v726_v54, %v383_v50  ;;  %v748_v62 = vadd.f32 %v732_v59, %v389_v58 }
  0x8c   :  { %v1454_v19 = vadd.f32 %v1438_v2, %v1095_v56  ;;  %v1452_v27 = vadd.f32 %v1436_v23, %v1093_v20  ;;  %v1103_v34 = vadd.f32 %v1087_v36, %v744_v29  ;;  %v730_v14 = vmul.f32 %v4845_v52, %v5062_v46  ;;  %v7977_v36 = vld [vmem:[#allocation6_spill] sm:$0xff]  ;;  %v7984_v56 = vld [vmem:[#allocation9_spill] sm:$0xff] }
  0x8d   :  { %v1458_v3 = vadd.f32 %v1442_v49, %v1099_v18  ;;  %v1456_v39 = vadd.f32 %v1440_v38, %v1097_v5  ;;  %v1101_v31 = vadd.f32 %v1085_v55, %v742_v61  ;;  %v1107_v43 = vadd.f32 %v1091_v60, %v748_v62  ;;  %v7978_v60 = vld [vmem:[#allocation5_spill] sm:$0xff]  ;;  %v7985_v18 = vld [vmem:[#allocation14_spill] sm:$0xff] }
  0x8e   :  { %v5102_v0 = vmax.f32 %v1454_v19, 0.0  ;;  %v5104_v26 = vmax.f32 %v1452_v27, 0.0  ;;  %v1462_v16 = vadd.f32 %v1446_v47, %v1103_v34  ;;  %v746_v25 = vadd.f32 %v730_v14, %v387_v4  ;;  %v7986_v19 = vld [vmem:[#allocation10_spill] sm:$0xff]  ;;  %v7987_v34 = vld [vmem:[#allocation12_spill] sm:$0xff]  ;;  %v7988_v14 = vld [vmem:[#allocation13_spill] sm:$0xff] }
  0x8f   :  { %v1089_v32 = vmul.f32 %v4848_v53, %v5021_v42  ;;  %v5109_v20 = vrot.slane %v70_v13, %v4637_v9  ;;  %v1123_v29 = vrot.slane %v4983_v1, %v4822_v41  ;;  %v5117_v52 = vmax.f32 %v1458_v3, 0.0  ;;  %v4503_v3 = vld [vmem:[%s7837_s2 + $0x8] sm:$0xff]  }
  0x90   :  { %7974 = vst [vmem:[#allocation34_spill] sm:$0xff] %v5102_v0  ;;  %1658 = vrot.lane.b32.xlu1 %v5102_v0, %s4584_s5  ;;  %1656 = vrot.lane.b32.xlu0 %v5104_v26, %s4584_s5  ;;  %v1460_v15 = vadd.f32 %v1444_v63, %v1101_v31  ;;  %v1450_v40 = vmul.f32 %v4839_v6, %v5060_v45  ;;  %v5124_v13 = vmax.f32 %v1456_v39, 0.0  ;;  %v5130_v55 = vmax.f32 %v1462_v16, 0.0  ;;  %v7979_v6 = vld [vmem:[#allocation8_spill] sm:$0xff] }
  0x91   :  { %7975 = vst [vmem:[#allocation35_spill] sm:$0xff] %v5117_v52  ;;  %v5122_v53 = vrot.slane %v405_v57, %v4640_v10  ;;  %v1105_v33 = vadd.f32 %v1089_v32, %v746_v25  ;;  %v378_v30 = vmul.f32 %v4858_v7, %v5023_v8  ;;  %v721_v50 = vmul.f32 %v7977_v36, %v5062_v46  ;;  %v7980_v57 = vld [vmem:[#allocation4_spill] sm:$0xff]  ;;  %v7982_v7 = vld [vmem:[#allocation11_spill] sm:$0xff] }
  0x92   :  { %7976 = vst [vmem:[#allocation36_spill] sm:$0xff] %v5124_v13  ;;  %v1466_v58 = vadd.f32 %v1450_v40, %v1107_v43  ;;  %v376_v2 = vmul.f32 %v7978_v60, %v5023_v8  ;;  %v719_v4 = vmul.f32 %v7979_v6, %v5062_v46  ;;  %v1448_v23 = vmul.f32 %v7980_v57, %v5060_v45  ;;  %v7989_v43 = vld [vmem:[#allocation17_spill] sm:$0xff] }
  0x93   :  { %v737_v49 = vadd.f32 %v721_v50, %v378_v30  ;;  %v1080_v38 = vmul.f32 %v7981_v35, %v5021_v42  ;;  %v1078_v51 = vmul.f32 %v7982_v7, %v5021_v42  ;;  %v5146_v47 = vmax.f32 %v1460_v15, 0.0  ;;  %v7990_v15 = vld [vmem:[#allocation15_spill] sm:$0xff]  ;;  %v7995_v35 = vld [vmem:[#allocation22_spill] sm:$0xff] }
  0x94   :  { %1662 = vrot.lane.b32.xlu1 %v5117_v52, %s4584_s5  ;;  %1660 = vrot.lane.b32.xlu0 %v5124_v13, %s4584_s5  ;;  %v735_v54 = vadd.f32 %v719_v4, %v376_v2  ;;  %v382_v59 = vmul.f32 %v7984_v56, %v5023_v8  ;;  %v725_v5 = vmul.f32 %v7985_v18, %v5062_v46  ;;  %v7992_v2 = vld [vmem:[#allocation18_spill] sm:$0xff]  ;;  %v5180_v4 = vunpack.c.h.bf16 %v4503_v3 }
  0x95   :  { %7983 = vst [vmem:[#allocation6_spill] sm:$0xff] %v5146_v47  ;;  %v1464_v61 = vadd.f32 %v1448_v23, %v1105_v33  ;;  %v1096_v63 = vadd.f32 %v1080_v38, %v737_v49  ;;  %v1439_v27 = vmul.f32 %v7986_v19, %v5060_v45  ;;  %v1437_v62 = vmul.f32 %v7987_v34, %v5060_v45  ;;  %v7994_v49 = vld [vmem:[#allocation20_spill] sm:$0xff]  ;;  %v8002_v34 = vld [vmem:[#allocation23_spill] sm:$0xff] }
  0x96   :  { %v1094_v39 = vadd.f32 %v1078_v51, %v735_v54  ;;  %v741_v31 = vadd.f32 %v725_v5, %v382_v59  ;;  %v380_v16 = vmul.f32 %v7988_v14, %v5023_v8  ;;  %v723_v25 = vmul.f32 %v7989_v43, %v5062_v46  ;;  %v7997_v51 = vld [vmem:[#allocation16_spill] sm:$0xff]  ;;  %v7998_v59 = vld [vmem:[#allocation19_spill] sm:$0xff] }
  0x97   :  { %v1455_v32 = vadd.f32 %v1439_v27, %v1096_v63  ;;  %v1084_v40 = vmul.f32 %v7990_v15, %v5021_v42  ;;  %v7991_v33 = vrot.slane %v4983_v1, %v4796_v17  ;;  %v5172_v36 = vrot.slane %v1123_v29, %v4646_v12  ;;  %v8000_v63 = vld [vmem:[#allocation25_spill] sm:$0xff] }
  0x98   :  { %1666 = vrot.lane.b32.xlu1 %v5130_v55, %s4584_s5  ;;  %1664 = vrot.lane.b32.xlu0 %v5146_v47, %s4584_s5  ;;  %v1453_v50 = vadd.f32 %v1437_v62, %v1094_v39  ;;  %v739_v60 = vadd.f32 %v723_v25, %v380_v16  ;;  %v1082_v6 = vmul.f32 %v7992_v2, %v5021_v42  ;;  %v5182_v57 = vmax.f32 %v1466_v58, 0.0 }
  0x99   :  { %v5169_v30 = vrot.slane %v7991_v33, %v4643_v11  ;;  %v1100_v23 = vadd.f32 %v1084_v40, %v741_v31  ;;  %v386_v29 = vmul.f32 %v7994_v49, %v5023_v8  ;;  %v729_v38 = vmul.f32 %v7995_v35, %v5062_v46  ;;  %v8003_v33 = vld [vmem:[#allocation24_spill] sm:$0xff] }
  0x9a   :  { %7993 = vst [vmem:[#allocation5_spill] sm:$0xff] %v5182_v57  ;;  %v5188_v7 = vmax.f32 %v1464_v61, 0.0  ;;  %v1443_v54 = vmul.f32 %v7997_v51, %v5060_v45  ;;  %v1098_v56 = vadd.f32 %v1082_v6, %v739_v60  ;;  %v1441_v18 = vmul.f32 %v7998_v59, %v5060_v45  ;;  %v8004_v60 = vld [vmem:[#allocation2_spill] sm:$0xff]  ;;  %v8006_v6 = vld [vmem:[#allocation28_spill] sm:$0xff] }
  0x9b   :  { %v5194_v5 = vmax.f32 %v1455_v32, 0.0  ;;  %v745_v58 = vadd.f32 %v729_v38, %v386_v29  ;;  %v384_v19 = vmul.f32 %v8000_v63, %v5023_v8  ;;  %v727_v27 = vmul.f32 %v4986_v22, %v5062_v46  ;;  %v4504_v51 = vld [vmem:[%s7837_s2 + $0x10] sm:$0xff]  }
  0x9c   :  { %7996 = vst [vmem:[#allocation8_spill] sm:$0xff] %v5188_v7  ;;  %1670 = vrot.lane.b32.xlu1 %v5182_v57, %s4584_s5  ;;  %1668 = vrot.lane.b32.xlu0 %v5188_v7, %s4584_s5  ;;  %v5204_v61 = vmax.f32 %v1453_v50, 0.0  ;;  %v1088_v62 = vmul.f32 %v8002_v34, %v5021_v42  ;;  %v390_v39 = vmul.f32 %v4995_v24, %v5023_v8  ;;  %v5238_v38 = vunpack.c.l.bf16 %v4503_v3 }
  0x9d   :  { %7999 = vst [vmem:[#allocation4_spill] sm:$0xff] %v5194_v5  ;;  %v733_v31 = vmul.f32 %v4998_v21, %v5062_v46  ;;  %v1459_v14 = vadd.f32 %v1443_v54, %v1100_v23  ;;  %v1457_v16 = vadd.f32 %v1441_v18, %v1098_v56  ;;  %v743_v22 = vadd.f32 %v727_v27, %v384_v19  ;;  %v8010_v19 = vld [vmem:[#allocation31_spill] sm:$0xff] }
  0x9e   :  { %8001 = vst [vmem:[#allocation7_spill] sm:$0xff] %v5204_v61  ;;  %v1086_v43 = vmul.f32 %v4989_v37, %v5021_v42  ;;  %v1104_v25 = vadd.f32 %v1088_v62, %v745_v58  ;;  %v388_v15 = vmul.f32 %v5007_v44, %v5023_v8  ;;  %v731_v40 = vmul.f32 %v5010_v48, %v5062_v46  ;;  %v8005_v37 = vld [vmem:[#allocation26_spill] sm:$0xff]  ;;  %v8011_v62 = vld [vmem:[#allocation27_spill] sm:$0xff] }
  0x9f   :  { %v749_v32 = vadd.f32 %v733_v31, %v390_v39  ;;  %v1447_v24 = vmul.f32 %v8003_v33, %v5060_v45  ;;  %v1445_v21 = vmul.f32 %v4992_v28, %v5060_v45  ;;  %v94_v2 = vrot.slane %v5180_v4, %v8004_v60  ;;  %v8008_v28 = vld [vmem:[#allocation3_spill] sm:$0xff]  ;;  %v8009_v58 = vld [vmem:[#allocation30_spill] sm:$0xff]  ;;  %v8012_v31 = vld [vmem:[#allocation29_spill] sm:$0xff] }
  0xa0   :  { %v1102_v50 = vadd.f32 %v1086_v43, %v743_v22  ;;  %1674 = vrot.lane.b32.xlu1 %v5194_v5, %s4584_s5  ;;  %1672 = vrot.lane.b32.xlu0 %v5204_v61, %s4584_s5  ;;  %v1092_v44 = vmul.f32 %v8005_v37, %v5021_v42  ;;  %v747_v48 = vadd.f32 %v731_v40, %v388_v15  ;;  %v5232_v49 = vmax.f32 %v1459_v14, 0.0  ;;  %v8013_v43 = vld [vmem:[#allocation32_spill] sm:$0xff]  ;;  %v8015_v37 = vld [vmem:[#allocation33_spill] sm:$0xff] }
  0xa1   :  { %v1090_v23 = vmul.f32 %v8006_v6, %v5021_v42  ;;  %v5234_v29 = vmax.f32 %v1457_v16, 0.0  ;;  %v429_v35 = vrot.slane %v5180_v4, %v8008_v28  ;;  %v1463_v54 = vadd.f32 %v1447_v24, %v1104_v25 }
  0xa2   :  { %v1461_v56 = vadd.f32 %v1445_v21, %v1102_v50  ;;  %v1108_v59 = vadd.f32 %v1092_v44, %v749_v32  ;;  %v210_v63 = vmul.f32 %v8009_v58, %v5023_v8  ;;  %v545_v27 = vmul.f32 %v8010_v19, %v5062_v46 }
  0xa3   :  { %8007 = vst [vmem:[#allocation11_spill] sm:$0xff] %v5234_v29  ;;  %v1106_v18 = vadd.f32 %v1090_v23, %v747_v48  ;;  %v788_v34 = vrot.slane %v5180_v4, %v4796_v17  ;;  %v1147_v3 = vrot.slane %v5180_v4, %v4822_v41  ;;  %v1451_v39 = vmul.f32 %v8011_v62, %v5060_v45 }
  0xa4   :  { %1678 = vrot.lane.b32.xlu1 %v5232_v49, %s4584_s5  ;;  %1676 = vrot.lane.b32.xlu0 %v5234_v29, %s4584_s5  ;;  %v1449_v14 = vmul.f32 %v8012_v31, %v5060_v45  ;;  %v174_v16 = vrot.slane %v94_v2, %v4637_v9  ;;  %v5260_v22 = vunpack.c.h.bf16 %v4504_v51  ;;  %v904_v25 = vmul.f32 %v8013_v43, %v5021_v42 }
  0xa5   :  { %v561_v32 = vadd.f32 %v545_v27, %v210_v63  ;;  %v509_v15 = vrot.slane %v429_v35, %v4640_v10  ;;  %v86_v40 = vrot.slane %v5238_v38, %v8004_v60  ;;  %v5267_v33 = vmax.f32 %v1463_v54, 0.0  ;;  %v4505_v27 = vld [vmem:[%s7837_s2 + $0x18] sm:$0xff]   ;;  %s4585_s2 = smov 2  }
  0xa6   :  { %v5269_v24 = vmax.f32 %v1461_v56, 0.0  ;;  %v1467_v50 = vadd.f32 %v1451_v39, %v1108_v59  ;;  %v1465_v21 = vadd.f32 %v1449_v14, %v1106_v18  ;;  %v1263_v2 = vmul.f32 %v8015_v37, %v5060_v45 }
  0xa7   :  { %v920_v44 = vadd.f32 %v904_v25, %v561_v32  ;;  %v208_v48 = vmul.f32 %v5109_v20, %v5023_v8  ;;  %v543_v6 = vmul.f32 %v5122_v53, %v5062_v46  ;;  %v868_v23 = vrot.slane %v788_v34, %v4643_v11 }
  0xa8   :  { %8014 = vst [vmem:[#allocation9_spill] sm:$0xff] %v5269_v24  ;;  %1682 = vrot.lane.b32.xlu1 %v5267_v33, %s4584_s5  ;;  %1680 = vrot.lane.b32.xlu0 %v5269_v24, %s4584_s5  ;;  %v1227_v35 = vrot.slane %v1147_v3, %v4646_v12  ;;  %v421_v54 = vrot.slane %v5238_v38, %v8008_v28  ;;  %v5291_v18 = vmax.f32 %v1467_v50, 0.0  ;;  %v5293_v58 = vmax.f32 %v1465_v21, 0.0 }
  0xa9   :  { %v5285_v56 = vadd.f32 %v1263_v2, %v920_v44  ;;  %v902_v20 = vmul.f32 %v5169_v30, %v5021_v42  ;;  %v559_v59 = vadd.f32 %v543_v6, %v208_v48  ;;  %v780_v53 = vrot.slane %v5238_v38, %v4796_v17 }
  0xaa   :  { %8016 = vst [vmem:[#allocation14_spill] sm:$0xff] %v5291_v18  ;;  %8017 = vst [vmem:[#allocation10_spill] sm:$0xff] %v5293_v58  ;;  %v166_v63 = vrot.slane %v86_v40, %v4637_v9  ;;  %v1139_v19 = vrot.slane %v5238_v38, %v4822_v41  ;;  %v1261_v30 = vmul.f32 %v5172_v36, %v5060_v45  ;;  %v5318_v25 = vunpack.c.l.bf16 %v4504_v51 }
  0xab   :  { %v918_v34 = vadd.f32 %v902_v20, %v559_v59  ;;  %v110_v3 = vrot.slane %v5260_v22, %v8004_v60  ;;  %v445_v62 = vrot.slane %v5260_v22, %v8008_v28  ;;  %v214_v39 = vmul.f32 %v174_v16, %v5023_v8 }
  0xac   :  { %1686 = vrot.lane.b32.xlu1 %v5291_v18, %s4584_s5  ;;  %1684 = vrot.lane.b32.xlu0 %v5293_v58, %s4584_s5  ;;  %v549_v31 = vmul.f32 %v509_v15, %v5062_v46  ;;  %v501_v14 = vrot.slane %v421_v54, %v4640_v10  ;;  %v804_v43 = vrot.slane %v5260_v22, %v4796_v17  ;;  %v5320_v32 = vunpack.c.h.bf16 %v4505_v27 }
  0xad   :  { %v5314_v36 = vadd.f32 %v1261_v30, %v918_v34  ;;  %v908_v40 = vmul.f32 %v868_v23, %v5021_v42  ;;  %v860_v21 = vrot.slane %v780_v53, %v4643_v11  ;;  %v1163_v16 = vrot.slane %v5260_v22, %v4822_v41 }
  0xae   :  { %v565_v50 = vadd.f32 %v549_v31, %v214_v39  ;;  %v1267_v15 = vmul.f32 %v1227_v35, %v5060_v45  ;;  %v1219_v37 = vrot.slane %v1139_v19, %v4646_v12  ;;  %v190_v2 = vrot.slane %v110_v3, %v4637_v9 }
  0xaf   :  { %v525_v44 = vrot.slane %v445_v62, %v4640_v10  ;;  %v212_v48 = vmul.f32 %v166_v63, %v5023_v8  ;;  %v547_v6 = vmul.f32 %v501_v14, %v5062_v46  ;;  %v884_v23 = vrot.slane %v804_v43, %v4643_v11 }
  0xb0   :  { %1878 = vrot.lane.b32.xlu1 %v5102_v0, %s4585_s2  ;;  %1876 = vrot.lane.b32.xlu0 %v5104_v26, %s4585_s2  ;;  %v924_v51 = vadd.f32 %v908_v40, %v565_v50  ;;  %v102_v35 = vrot.slane %v5318_v25, %v8004_v60  ;;  %v437_v54 = vrot.slane %v5318_v25, %v8008_v28 }
  0xb1   :  { %v906_v59 = vmul.f32 %v860_v21, %v5021_v42  ;;  %v563_v53 = vadd.f32 %v547_v6, %v212_v48  ;;  %v1243_v19 = vrot.slane %v1163_v16, %v4646_v12  ;;  %v1265_v30 = vmul.f32 %v1219_v37, %v5060_v45 }
  0xb2   :  { %v5341_v20 = vadd.f32 %v1267_v15, %v924_v51  ;;  %v796_v63 = vrot.slane %v5318_v25, %v4796_v17  ;;  %v126_v34 = vrot.slane %v5320_v32, %v8004_v60  ;;  %v461_v3 = vrot.slane %v5320_v32, %v8008_v28 }
  0xb3   :  { %v922_v62 = vadd.f32 %v906_v59, %v563_v53  ;;  %v218_v39 = vmul.f32 %v190_v2, %v5023_v8  ;;  %v553_v31 = vmul.f32 %v525_v44, %v5062_v46  ;;  %v182_v14 = vrot.slane %v102_v35, %v4637_v9 }
  0xb4   :  { %1882 = vrot.lane.b32.xlu1 %v5117_v52, %s4585_s2  ;;  %1880 = vrot.lane.b32.xlu0 %v5124_v13, %s4585_s2  ;;  %v517_v43 = vrot.slane %v437_v54, %v4640_v10  ;;  %v1155_v40 = vrot.slane %v5318_v25, %v4822_v41  ;;  %v912_v21 = vmul.f32 %v884_v23, %v5021_v42  ;;  %v5371_v51 = vunpack.c.l.bf16 %v4505_v27 }
  0xb5   :  { %v5362_v50 = vadd.f32 %v1265_v30, %v922_v62  ;;  %v569_v16 = vadd.f32 %v553_v31, %v218_v39  ;;  %v820_v15 = vrot.slane %v5320_v32, %v4796_v17  ;;  %v876_v37 = vrot.slane %v796_v63, %v4643_v11 }
  0xb6   :  { %v206_v2 = vrot.slane %v126_v34, %v4637_v9  ;;  %v1179_v44 = vrot.slane %v5320_v32, %v4822_v41  ;;  %v1271_v48 = vmul.f32 %v1243_v19, %v5060_v45  ;;  %v541_v23 = vrot.slane %v461_v3, %v4640_v10 }
  0xb7   :  { %v928_v6 = vadd.f32 %v912_v21, %v569_v16  ;;  %v216_v35 = vmul.f32 %v182_v14, %v5023_v8  ;;  %v1235_v54 = vrot.slane %v1155_v40, %v4646_v12  ;;  %v551_v59 = vmul.f32 %v517_v43, %v5062_v46 }
  0xb8   :  { %1886 = vrot.lane.b32.xlu1 %v5130_v55, %s4585_s2  ;;  %1884 = vrot.lane.b32.xlu0 %v5146_v47, %s4585_s2  ;;  %v900_v27 = vrot.slane %v820_v15, %v4643_v11  ;;  %v910_v30 = vmul.f32 %v876_v37, %v5021_v42  ;;  %v118_v34 = vrot.slane %v5371_v51, %v8004_v60 }
  0xb9   :  { %v5382_v53 = vadd.f32 %v1271_v48, %v928_v6  ;;  %v567_v63 = vadd.f32 %v551_v59, %v216_v35  ;;  %v453_v19 = vrot.slane %v5371_v51, %v8008_v28  ;;  %v222_v3 = vmul.f32 %v206_v2, %v5023_v8 }
  0xba   :  { %v1259_v62 = vrot.slane %v1179_v44, %v4646_v12  ;;  %v557_v39 = vmul.f32 %v541_v23, %v5062_v46  ;;  %v1269_v31 = vmul.f32 %v1235_v54, %v5060_v45  ;;  %v812_v60 = vrot.slane %v5371_v51, %v4796_v17 }
  0xbb   :  { %v926_v14 = vadd.f32 %v910_v30, %v567_v63  ;;  %v916_v28 = vmul.f32 %v900_v27, %v5021_v42  ;;  %v198_v21 = vrot.slane %v118_v34, %v4637_v9  ;;  %v533_v16 = vrot.slane %v453_v19, %v4640_v10  ;;  %v8020_v30 = vld [vmem:[#allocation21_spill] sm:$0xff] }
  0xbc   :  { %1890 = vrot.lane.b32.xlu1 %v5182_v57, %s4585_s2  ;;  %1888 = vrot.lane.b32.xlu0 %v5188_v7, %s4585_s2  ;;  %v573_v43 = vadd.f32 %v557_v39, %v222_v3  ;;  %v1171_v15 = vrot.slane %v5371_v51, %v4822_v41  ;;  %v1275_v17 = vmul.f32 %v1259_v62, %v5060_v45 }
  0xbd   :  { %v5401_v40 = vadd.f32 %v1269_v31, %v926_v14  ;;  %v892_v2 = vrot.slane %v812_v60, %v4643_v11  ;;  %v220_v48 = vmul.f32 %v198_v21, %v5023_v8  ;;  %v555_v23 = vmul.f32 %v533_v16, %v5062_v46 }
  0xbe   :  { %v932_v37 = vadd.f32 %v916_v28, %v573_v43  ;;  %v1251_v6 = vrot.slane %v1171_v15, %v4646_v12  ;;  %v74_v63 = vrot.slane %v8020_v30, %v4637_v9  ;;  %v409_v34 = vrot.slane %v8020_v30, %v4640_v10 }
  0xbf   :  { %v914_v41 = vmul.f32 %v892_v2, %v5021_v42  ;;  %v571_v35 = vadd.f32 %v555_v23, %v220_v48  ;;  %v768_v19 = vrot.slane %v8020_v30, %v4643_v11  ;;  %v1127_v3 = vrot.slane %v8020_v30, %v4646_v12 }
  0xc0   :  { %1894 = vrot.lane.b32.xlu1 %v5194_v5, %s4585_s2  ;;  %1892 = vrot.lane.b32.xlu0 %v5204_v61, %s4585_s2  ;;  %v5413_v44 = vadd.f32 %v1275_v17, %v932_v37  ;;  %v1273_v54 = vmul.f32 %v1251_v6, %v5060_v45  ;;  %v66_v62 = vrot.slane %v4983_v1, %v4637_v9 }
  0xc1   :  { %v930_v59 = vadd.f32 %v914_v41, %v571_v35  ;;  %v401_v39 = vrot.slane %v4983_v1, %v4640_v10  ;;  %v760_v31 = vrot.slane %v4983_v1, %v4643_v11  ;;  %v1119_v14 = vrot.slane %v4983_v1, %v4646_v12 }
  0xc2   :  { %8018 = vst [vmem:[#allocation12_spill] sm:$0xff] %v5413_v44  ;;  %v90_v60 = vrot.slane %v5180_v4, %v4637_v9  ;;  %v154_v28 = vrot.slane %v74_v63, %v4637_v9  ;;  %v489_v43 = vrot.slane %v409_v34, %v4640_v10  ;;  %v425_v21 = vrot.slane %v5180_v4, %v4640_v10 }
  0xc3   :  { %v5428_v27 = vadd.f32 %v1273_v54, %v930_v59  ;;  %v5465_v16 = vrot.slane %v768_v19, %v4643_v11  ;;  %v784_v1 = vrot.slane %v5180_v4, %v4643_v11  ;;  %v1143_v15 = vrot.slane %v5180_v4, %v4646_v12 }
  0xc4   :  { %1898 = vrot.lane.b32.xlu1 %v5232_v49, %s4585_s2  ;;  %1896 = vrot.lane.b32.xlu0 %v5234_v29, %s4585_s2  ;;  %v5472_v17 = vrot.slane %v1127_v3, %v4646_v12  ;;  %v146_v37 = vrot.slane %v66_v62, %v4637_v9  ;;  %v481_v2 = vrot.slane %v401_v39, %v4640_v10 }
  0xc5   :  { %8019 = vst [vmem:[#allocation13_spill] sm:$0xff] %v5428_v27  ;;  %v82_v48 = vrot.slane %v5238_v38, %v4637_v9  ;;  %v840_v6 = vrot.slane %v760_v31, %v4643_v11  ;;  %v5480_v23 = vrot.slane %v1119_v14, %v4646_v12  ;;  %v170_v41 = vrot.slane %v90_v60, %v4637_v9 }
  0xc6   :  { %v417_v4 = vrot.slane %v5238_v38, %v4640_v10  ;;  %v505_v35 = vrot.slane %v425_v21, %v4640_v10  ;;  %v776_v54 = vrot.slane %v5238_v38, %v4643_v11  ;;  %v1135_v59 = vrot.slane %v5238_v38, %v4646_v12 }
  0xc7   :  { %v106_v30 = vrot.slane %v5260_v22, %v4637_v9  ;;  %v864_v63 = vrot.slane %v784_v1, %v4643_v11  ;;  %v5498_v34 = vrot.slane %v1143_v15, %v4646_v12  ;;  %v441_v19 = vrot.slane %v5260_v22, %v4640_v10 }
  0xc8   :  { %1902 = vrot.lane.b32.xlu1 %v5267_v33, %s4585_s2  ;;  %1900 = vrot.lane.b32.xlu0 %v5269_v24, %s4585_s2  ;;  %v162_v3 = vrot.slane %v82_v48, %v4637_v9  ;;  %v800_v38 = vrot.slane %v5260_v22, %v4643_v11  ;;  %v1159_v62 = vrot.slane %v5260_v22, %v4646_v12 }
  0xc9   :  { %v98_v39 = vrot.slane %v5318_v25, %v4637_v9  ;;  %v497_v31 = vrot.slane %v417_v4, %v4640_v10  ;;  %v433_v14 = vrot.slane %v5318_v25, %v4640_v10  ;;  %v792_v60 = vrot.slane %v5318_v25, %v4643_v11 }
  0xca   :  { %v1151_v21 = vrot.slane %v5318_v25, %v4646_v12  ;;  %v856_v1 = vrot.slane %v776_v54, %v4643_v11  ;;  %v5518_v15 = vrot.slane %v1135_v59, %v4646_v12  ;;  %v186_v22 = vrot.slane %v106_v30, %v4637_v9 }
  0xcb   :  { %v122_v48 = vrot.slane %v5320_v32, %v4637_v9  ;;  %v521_v4 = vrot.slane %v441_v19, %v4640_v10  ;;  %v457_v25 = vrot.slane %v5320_v32, %v4640_v10  ;;  %v816_v54 = vrot.slane %v5320_v32, %v4643_v11 }
  0xcc   :  { %1906 = vrot.lane.b32.xlu1 %v5291_v18, %s4585_s2  ;;  %1904 = vrot.lane.b32.xlu0 %v5293_v58, %s4585_s2  ;;  %v542_v59 = vmul.f32 %v481_v2, %v5062_v46  ;;  %v880_v30 = vrot.slane %v800_v38, %v4643_v11  ;;  %v1239_v18 = vrot.slane %v1159_v62, %v4646_v12 }
  0xcd   :  { %v178_v57 = vrot.slane %v98_v39, %v4637_v9  ;;  %v513_v58 = vrot.slane %v433_v14, %v4640_v10  ;;  %v872_v7 = vrot.slane %v792_v60, %v4643_v11  ;;  %v1231_v19 = vrot.slane %v1151_v21, %v4646_v12 }
  0xce   :  { %v544_v27 = vmul.f32 %v489_v43, %v5062_v46  ;;  %v548_v2 = vmul.f32 %v505_v35, %v5062_v46  ;;  %v202_v38 = vrot.slane %v122_v48, %v4637_v9  ;;  %v546_v62 = vmul.f32 %v497_v31, %v5062_v46 }
  0xcf   :  { %v537_v39 = vrot.slane %v457_v25, %v4640_v10  ;;  %v5552_v14 = vrot.slane %v816_v54, %v4643_v11  ;;  %v209_v43 = vmul.f32 %v154_v28, %v5023_v8  ;;  %v213_v35 = vmul.f32 %v170_v41, %v5023_v8 }
  0xd0   :  { %2091 = vrot.lane.b32.xlu1 %v5102_v0, %s4586_s12  ;;  %2089 = vrot.lane.b32.xlu0 %v5104_v26, %s4586_s12  ;;  %v552_v60 = vmul.f32 %v521_v4, %v5062_v46  ;;  %v211_v21 = vmul.f32 %v162_v3, %v5023_v8  ;;  %v550_v48 = vmul.f32 %v513_v58, %v5062_v46 }
  0xd1   :  { %v114_v44 = vrot.slane %v5371_v51, %v4637_v9  ;;  %v449_v31 = vrot.slane %v5371_v51, %v4640_v10  ;;  %v560_v25 = vadd.f32 %v544_v27, %v209_v43  ;;  %v901_v54 = vmul.f32 %v840_v6, %v5021_v42 }
  0xd2   :  { %v562_v28 = vadd.f32 %v546_v62, %v211_v21  ;;  %v215_v58 = vmul.f32 %v178_v57, %v5023_v8  ;;  %v808_v41 = vrot.slane %v5371_v51, %v4643_v11  ;;  %v903_v27 = vmul.f32 %v5465_v16, %v5021_v42 }
  0xd3   :  { %v907_v6 = vmul.f32 %v864_v63, %v5021_v42  ;;  %v1167_v62 = vrot.slane %v5371_v51, %v4646_v12  ;;  %v1260_v57 = vmul.f32 %v5480_v23, %v5060_v45  ;;  %v911_v21 = vmul.f32 %v880_v30, %v5021_v42 }
  0xd4   :  { %2107 = vrot.lane.b32.xlu1 %v5194_v5, %s4586_s12  ;;  %2105 = vrot.lane.b32.xlu0 %v5204_v61, %s4586_s12  ;;  %v919_v43 = vadd.f32 %v903_v27, %v560_v25  ;;  %v909_v63 = vmul.f32 %v872_v7, %v5021_v42  ;;  %v1262_v51 = vmul.f32 %v5472_v17, %v5060_v45 }
  0xd5   :  { %v1264_v30 = vmul.f32 %v5518_v15, %v5060_v45 }
  0xd8   :  { %2109 = vrot.lane.b32.xlu1 %v5234_v29, %s4586_s12  ;;  %2093 = vrot.lane.b32.xlu0 %v5124_v13, %s4586_s12 }
  0xdc   :  { %2111 = vrot.lane.b32.xlu1 %v5232_v49, %s4586_s12  ;;  %2095 = vrot.lane.b32.xlu0 %v5117_v52, %s4586_s12  ;;  %v207_v52 = vmul.f32 %v146_v37, %v5023_v8 }
  0xde   :  { %v558_v37 = vadd.f32 %v542_v59, %v207_v52  ;;  %v217_v52 = vmul.f32 %v186_v22, %v5023_v8  ;;  %v905_v22 = vmul.f32 %v856_v1, %v5021_v42  ;;  %v566_v59 = vadd.f32 %v550_v48, %v215_v58 }
  0xe0   :  { %2304 = vrot.lane.b32.xlu1 %v5102_v0, %s4587_s13  ;;  %2302 = vrot.lane.b32.xlu0 %v5104_v26, %s4587_s13  ;;  %v564_v0 = vadd.f32 %v548_v2, %v213_v35  ;;  %v917_v3 = vadd.f32 %v901_v54, %v558_v37  ;;  %v568_v4 = vadd.f32 %v552_v60, %v217_v52 }
  0xe1   :  { %v529_v2 = vrot.slane %v449_v31, %v4640_v10  ;;  %v921_v16 = vadd.f32 %v905_v22, %v562_v28  ;;  %v194_v10 = vrot.slane %v114_v44, %v4637_v9  ;;  %v925_v37 = vadd.f32 %v909_v63, %v566_v59 }
  0xe2   :  { %v923_v35 = vadd.f32 %v907_v6, %v564_v0  ;;  %v1276_v1 = vadd.f32 %v1260_v57, %v917_v3  ;;  %v1266_v0 = vmul.f32 %v5498_v34, %v5060_v45  ;;  %v927_v23 = vadd.f32 %v911_v21, %v568_v4 }
  0xe3   :  { %v888_v60 = vrot.slane %v808_v41, %v4643_v11  ;;  %v554_v48 = vmul.f32 %v529_v2, %v5062_v46  ;;  %v1278_v31 = vadd.f32 %v1262_v51, %v919_v43  ;;  %v1270_v9 = vmul.f32 %v1239_v18, %v5060_v45 }
  0xe4   :  { %2320 = vrot.lane.b32.xlu1 %v5194_v5, %s4587_s13  ;;  %2318 = vrot.lane.b32.xlu0 %v5204_v61, %s4587_s13  ;;  %v1282_v7 = vadd.f32 %v1266_v0, %v923_v35  ;;  %v556_v44 = vmul.f32 %v537_v39, %v5062_v46  ;;  %v1280_v17 = vadd.f32 %v1264_v30, %v921_v16  ;;  %v5604_v15 = vmax.f32 %v1276_v1, 0.0  ;;  %v8032_v35 = vld [vmem:[#allocation34_spill] sm:$0xff] }
  0xe5   :  { %v1268_v34 = vmul.f32 %v1231_v19, %v5060_v45  ;;  %v219_v11 = vmul.f32 %v194_v10, %v5023_v8  ;;  %v1286_v25 = vadd.f32 %v1270_v9, %v927_v23  ;;  %v221_v54 = vmul.f32 %v202_v38, %v5023_v8 }
  0xe6   :  { %v8021_v46 = vrot.slane %v5320_v32, %v4646_v12  ;;  %v5612_v39 = vmax.f32 %v5314_v36, 0.0  ;;  %v1247_v28 = vrot.slane %v1167_v62, %v4646_v12  ;;  %v8022_v19 = vlaneseq }
  0xe7   :  { %v1284_v52 = vadd.f32 %v1268_v34, %v925_v37  ;;  %v570_v58 = vadd.f32 %v554_v48, %v219_v11  ;;  %v5618_v27 = vmax.f32 %v1278_v31, 0.0  ;;  %v5621_v3 = vmax.f32 %v5285_v56, 0.0 }
  0xe8   :  { %2113 = vrot.lane.b32.xlu1 %v5269_v24, %s4586_s12  ;;  %2097 = vrot.lane.b32.xlu0 %v5146_v47, %s4586_s12  ;;  %v1255_v18 = vrot.slane %v8021_v46, %v4646_v12  ;;  %v5616_v41 = vand.u32 127, %v8022_v19  ;;  %v572_v8 = vadd.f32 %v556_v44, %v221_v54  ;;  %v5627_v36 = vmax.f32 %v1282_v7, 0.0 }
  0xe9   :  { %v5630_v12 = vmax.f32 %v5341_v20, 0.0  ;;  %v5632_v32 = vmax.f32 %v1280_v17, 0.0  ;;  %v913_v38 = vmul.f32 %v888_v60, %v5021_v42  ;;  %v5636_v6 = vmax.f32 %v5362_v50, 0.0 }
  0xea   :  { %8023 = vst [vmem:[#allocation17_spill] sm:$0xff] %v5627_v36  ;;  %v5638_v56 = vmax.f32 %v1286_v25, 0.0  ;;  %v915_v4 = vmul.f32 %v5552_v14, %v5021_v42  ;;  %v1527_v22 = vmul.f32 %v5104_v26, %v5604_v15  ;;  %v5644_v59 = vmax.f32 %v1284_v52, 0.0  ;;  %v8031_v14 = vld [vmem:[#allocation35_spill] sm:$0xff] }
  0xeb   :  { %8024 = vst [vmem:[#allocation15_spill] sm:$0xff] %v5630_v12  ;;  %8025 = vst [vmem:[#allocation18_spill] sm:$0xff] %v5632_v32  ;;  %v5647_v20 = vmax.f32 %v5401_v40, 0.0  ;;  %v929_v2 = vadd.f32 %v913_v38, %v570_v58  ;;  %v1528_v62 = vmul.f32 %v5204_v61, %v5612_v39  ;;  %v5652_v50 = vmax.f32 %v5382_v53, 0.0 }
  0xec   :  { %2322 = vrot.lane.b32.xlu1 %v5234_v29, %s4587_s13  ;;  %2306 = vrot.lane.b32.xlu0 %v5124_v13, %s4587_s13  ;;  %8026 = vst [vmem:[#allocation20_spill] sm:$0xff] %v5636_v6  ;;  %8027 = vst [vmem:[#allocation22_spill] sm:$0xff] %v5638_v56  ;;  %v1274_v43 = vmul.f32 %v1255_v18, %v5060_v45  ;;  %v931_v57 = vadd.f32 %v915_v4, %v572_v8  ;;  %v5661_v40 = vadd.s32 128, %v5616_v41  ;;  %v8035_v18 = vld [vmem:[#allocation13_spill] sm:$0xff] }
  0xed   :  { %8028 = vst [vmem:[#allocation16_spill] sm:$0xff] %v5644_v59  ;;  %8029 = vst [vmem:[#allocation19_spill] sm:$0xff] %v5647_v20  ;;  %v1272_v42 = vmul.f32 %v1247_v28, %v5060_v45  ;;  %v1529_v21 = vmul.f32 %v8032_v35, %v5618_v27  ;;  %v1530_v53 = vmul.f32 %v5194_v5, %v5621_v3  ;;  %v1544_v51 = vsel %vm1543_vm0, %v1527_v22, 0.0 }
  0xee   :  { %8030 = vst [vmem:[#allocation25_spill] sm:$0xff] %v5652_v50  ;;  %v1531_v16 = vmul.f32 %v5124_v13, %v5632_v32  ;;  %v1532_v45 = vmul.f32 %v5234_v29, %v5636_v6  ;;  %v1533_v63 = vmul.f32 %v8031_v14, %v5627_v36  ;;  %v1534_v10 = vmul.f32 %v5232_v49, %v5630_v12 }
  0xef   :  { %v1288_v1 = vadd.f32 %v1272_v42, %v929_v2  ;;  %v1535_v0 = vmul.f32 %v5146_v47, %v5644_v59  ;;  %v1536_v23 = vmul.f32 %v5269_v24, %v5647_v20  ;;  %v1551_v30 = vsel %vm1543_vm0, %v1528_v62, 0.0  ;;  %v8038_v42 = vld [vmem:[#allocation12_spill] sm:$0xff] }
  0xf0   :  { %2115 = vrot.lane.b32.xlu1 %v5267_v33, %s4586_s12  ;;  %2099 = vrot.lane.b32.xlu0 %v5130_v55, %s4586_s12  ;;  %v1290_v37 = vadd.f32 %v1274_v43, %v931_v57  ;;  %v5682_v60 = vand.u32 15, %v5616_v41  ;;  %v1537_v48 = vmul.f32 %v5130_v55, %v5638_v56  ;;  %v1538_v31 = vmul.f32 %v5267_v33, %v5652_v50  ;;  %v8042_v50 = vld [vmem:[#allocation5_spill] sm:$0xff] }
  0xf1   :  { %v1545_v7 = vrot.slane %v1544_v51, 4  ;;  %v1558_v9 = vsel %vm1543_vm0, %v1529_v21, 0.0  ;;  %v1565_v44 = vsel %vm1543_vm0, %v1530_v53, 0.0  ;;  %v1572_v17 = vsel %vm1543_vm0, %v1531_v16, 0.0 }
  0xf2   :  { %8033 = vst [vmem:[#allocation23_spill] sm:$0xff] %v5682_v60  ;;  %v1552_v34 = vrot.slane %v1551_v30, 4  ;;  %v1579_v11 = vsel %vm1543_vm0, %v1532_v45, 0.0  ;;  %v1586_v25 = vsel %vm1543_vm0, %v1533_v63, 0.0  ;;  %v1593_v54 = vsel %vm1543_vm0, %v1534_v10, 0.0  ;;  %v8040_v10 = vld [vmem:[#allocation8_spill] sm:$0xff] }
  0xf3   :  { %v5698_v46 = vmax.f32 %v1288_v1, 0.0  ;;  %v5701_v52 = vmax.f32 %v8035_v18, 0.0  ;;  %v1600_v28 = vsel %vm1543_vm0, %v1535_v0, 0.0  ;;  %v1607_v58 = vsel %vm1543_vm0, %v1536_v23, 0.0  ;;  %v8041_v0 = vld [vmem:[#allocation10_spill] sm:$0xff] }
  0xf4   :  { %2324 = vrot.lane.b32.xlu1 %v5232_v49, %s4587_s13  ;;  %2308 = vrot.lane.b32.xlu0 %v8031_v14, %s4587_s13  ;;  %v1559_v19 = vrot.slane %v1558_v9, 4  ;;  %v1566_v8 = vrot.slane %v1565_v44, 4  ;;  %v1573_v38 = vrot.slane %v1572_v17, 4  ;;  %v1614_v4 = vsel %vm1543_vm0, %v1537_v48, 0.0 }
  0xf5   :  { %8034 = vst [vmem:[#allocation24_spill] sm:$0xff] %v5698_v46  ;;  %8036 = vst [vmem:[#allocation2_spill] sm:$0xff] %v5701_v52  ;;  %v1546_v22 = vadd.f32 %v1545_v7, %v1544_v51  ;;  %v1580_v2 = vrot.slane %v1579_v11, 4  ;;  %v1587_v62 = vrot.slane %v1586_v25, 4  ;;  %v1594_v43 = vrot.slane %v1593_v54, 4 }
  0xf6   :  { %v5710_v57 = vmax.f32 %v1290_v37, 0.0  ;;  %v5713_v21 = vmax.f32 %v8038_v42, 0.0  ;;  %v1601_v53 = vrot.slane %v1600_v28, 4  ;;  %v1608_v16 = vrot.slane %v1607_v58, 4 }
  0xf7   :  { %v1615_v45 = vrot.slane %v1614_v4, 4  ;;  %v1621_v63 = vsel %vm1543_vm0, %v1538_v31, 0.0  ;;  %v1539_v1 = vmul.f32 %v8040_v10, %v5698_v46  ;;  %v1540_v23 = vmul.f32 %v8041_v0, %v5701_v52 }
  0xf8   :  { %2517 = vrot.lane.b32.xlu1 %v8032_v35, %s4588_s14  ;;  %2515 = vrot.lane.b32.xlu0 %v5104_v26, %s4588_s14  ;;  %8037 = vst [vmem:[#allocation26_spill] sm:$0xff] %v5710_v57  ;;  %8039 = vst [vmem:[#allocation28_spill] sm:$0xff] %v5713_v21  ;;  %v1553_v51 = vadd.f32 %v1552_v34, %v1551_v30  ;;  %v1560_v48 = vadd.f32 %v1559_v19, %v1558_v9  ;;  %v1547_v37 = vrot.slane %v1546_v22, 2 }
  0xf9   :  { %v1567_v7 = vadd.f32 %v1566_v8, %v1565_v44  ;;  %v1574_v18 = vadd.f32 %v1573_v38, %v1572_v17  ;;  %v1581_v42 = vadd.f32 %v1580_v2, %v1579_v11  ;;  %v1588_v60 = vadd.f32 %v1587_v62, %v1586_v25  ;;  %v8043_v17 = vld [vmem:[#allocation14_spill] sm:$0xff] }
  0xfa   :  { %v1595_v31 = vadd.f32 %v1594_v43, %v1593_v54  ;;  %v1602_v20 = vadd.f32 %v1601_v53, %v1600_v28  ;;  %v1609_v59 = vadd.f32 %v1608_v16, %v1607_v58  ;;  %v1622_v46 = vrot.slane %v1621_v63, 4 }
  0xfb   :  { %v1541_v52 = vmul.f32 %v8042_v50, %v5710_v57  ;;  %v1616_v44 = vadd.f32 %v1615_v45, %v1614_v4  ;;  %v1542_v34 = vmul.f32 %v8043_v17, %v5713_v21  ;;  %v1628_v19 = vsel %vm1543_vm0, %v1539_v1, 0.0 }
  0xfc   :  { %2533 = vrot.lane.b32.xlu1 %v5194_v5, %s4588_s14  ;;  %2531 = vrot.lane.b32.xlu0 %v5204_v61, %s4588_s14  ;;  %v1635_v11 = vsel %vm1543_vm0, %v1540_v23, 0.0  ;;  %v1554_v25 = vrot.slane %v1553_v51, 2  ;;  %v1561_v54 = vrot.slane %v1560_v48, 2  ;;  %v1568_v28 = vrot.slane %v1567_v7, 2 }
  0xfd   :  { %v1575_v58 = vrot.slane %v1574_v18, 2  ;;  %v1548_v8 = vadd.f32 %v1547_v37, %v1546_v22  ;;  %v1582_v38 = vrot.slane %v1581_v42, 2  ;;  %v1589_v4 = vrot.slane %v1588_v60, 2 }
  0xfe   :  { %v1596_v2 = vrot.slane %v1595_v31, 2  ;;  %v1603_v62 = vrot.slane %v1602_v20, 2  ;;  %v1610_v43 = vrot.slane %v1609_v59, 2  ;;  %v1629_v53 = vrot.slane %v1628_v19, 4 }
  0xff   :  { %v1636_v16 = vrot.slane %v1635_v11, 4  ;;  %v1617_v23 = vrot.slane %v1616_v44, 2  ;;  %v1623_v21 = vadd.f32 %v1622_v46, %v1621_v63  ;;  %v1642_v57 = vsel %vm1543_vm0, %v1541_v52, 0.0 }
 0x100   :  { %2117 = vrot.lane.b32.xlu1 %v8041_v0, %s4586_s12  ;;  %2101 = vrot.lane.b32.xlu0 %v8040_v10, %s4586_s12  ;;  %v1649_v56 = vsel %vm1543_vm0, %v1542_v34, 0.0  ;;  %v1569_v22 = vadd.f32 %v1568_v28, %v1567_v7  ;;  %v1576_v37 = vadd.f32 %v1575_v58, %v1574_v18  ;;  %vm1688_vm1 = vcmp.lt.s32.totalorder %v5616_v41, 1 }
 0x101   :  { %v1549_v10 = vrot.slane %v1548_v8, 1  ;;  %v1583_v0 = vadd.f32 %v1582_v38, %v1581_v42  ;;  %v1590_v61 = vadd.f32 %v1589_v4, %v1588_v60  ;;  %v1597_v46 = vadd.f32 %v1596_v2, %v1595_v31 }
 0x102   :  { %v5726_v30 = vpop.permute.xlu1 %1658  ;;  %v5728_v9 = vpop.permute.xlu0 %1656  ;;  %v1630_v63 = vadd.f32 %v1629_v53, %v1628_v19  ;;  %v1637_v52 = vadd.f32 %v1636_v16, %v1635_v11  ;;  %v1643_v5 = vrot.slane %v1642_v57, 4  ;;  %v1650_v34 = vrot.slane %v1649_v56, 4 }
 0x103   :  { %v1604_v7 = vadd.f32 %v1603_v62, %v1602_v20  ;;  %v1611_v18 = vadd.f32 %v1610_v43, %v1609_v59  ;;  %v5757_v60 = vadd.f32 %v1549_v10, %v1548_v8  ;;  %v1584_v42 = vrot.slane %v1583_v0, 1 }
 0x104   :  { %2326 = vrot.lane.b32.xlu1 %v5269_v24, %s4587_s13  ;;  %2310 = vrot.lane.b32.xlu0 %v5146_v47, %s4587_s13  ;;  %v1555_v24 = vadd.f32 %v1554_v25, %v1553_v51  ;;  %v1562_v47 = vadd.f32 %v1561_v54, %v1560_v48  ;;  %v1618_v25 = vadd.f32 %v1617_v23, %v1616_v44  ;;  %v1624_v54 = vrot.slane %v1623_v21, 2 }
 0x105   :  { %8044 = vst [vmem:[#allocation3_spill] sm:$0xff] %v5757_v60  ;;  %v1591_v31 = vrot.slane %v1590_v61, 1  ;;  %v1598_v19 = vrot.slane %v1597_v46, 1  ;;  %v1631_v11 = vrot.slane %v1630_v63, 2  ;;  %v1638_v20 = vrot.slane %v1637_v52, 2  ;;  %v8066_v60 = vld [vmem:[#allocation11_spill] sm:$0xff] }
 0x106   :  { %v5738_v45 = vpop.permute.xlu1 %1662  ;;  %v5740_v1 = vpop.permute.xlu0 %1660  ;;  %v1556_v28 = vrot.slane %v1555_v24, 1  ;;  %v1563_v58 = vrot.slane %v1562_v47, 1  ;;  %v1644_v59 = vadd.f32 %v1643_v5, %v1642_v57  ;;  %v1651_v44 = vadd.f32 %v1650_v34, %v1649_v56 }
 0x107   :  { %v1605_v2 = vrot.slane %v1604_v7, 1  ;;  %v1612_v62 = vrot.slane %v1611_v18, 1  ;;  %v1619_v43 = vrot.slane %v1618_v25, 1  ;;  %v5763_v53 = vadd.f32 %v1624_v54, %v1623_v21 }
 0x108   :  { %2535 = vrot.lane.b32.xlu1 %v5234_v29, %s4588_s14  ;;  %2519 = vrot.lane.b32.xlu0 %v5124_v13, %s4588_s14  ;;  %v1570_v13 = vrot.slane %v1569_v22, 1  ;;  %v1577_v29 = vrot.slane %v1576_v37, 1  ;;  %v5765_v16 = vadd.f32 %v1556_v28, %v1555_v24  ;;  %v5767_v10 = vadd.f32 %v1563_v58, %v1562_v47 }
 0x109   :  { %v5778_v5 = vand.u32 15, %v5661_v40  ;;  %v5780_v56 = vadd.f32 %v1584_v42, %v1583_v0  ;;  %v5782_v57 = vadd.f32 %v1591_v31, %v1590_v61  ;;  %v5784_v24 = vadd.f32 %v1598_v19, %v1597_v46 }
 0x10a   :  { %v5749_v51 = vpop.permute.xlu1 %1666  ;;  %v5751_v48 = vpop.permute.xlu0 %1664  ;;  %8045 = vst [vmem:[#allocation30_spill] sm:$0xff] %v5765_v16  ;;  %8046 = vst [vmem:[#allocation31_spill] sm:$0xff] %v5767_v10  ;;  %v5769_v8 = vadd.f32 %v1570_v13, %v1569_v22  ;;  %v5771_v23 = vadd.f32 %v1577_v29, %v1576_v37  ;;  %v5786_v47 = vadd.f32 %v1631_v11, %v1630_v63  ;;  %v1645_v29 = vrot.slane %v1644_v59, 2 }
 0x10b   :  { %8049 = vst [vmem:[#allocation32_spill] sm:$0xff] %v5778_v5  ;;  %8050 = vst [vmem:[#allocation33_spill] sm:$0xff] %v5780_v56  ;;  %v5788_v13 = vadd.f32 %v1638_v20, %v1637_v52  ;;  %v1652_v21 = vrot.slane %v1651_v44, 2  ;;  %v5790_v34 = vadd.f32 %v1605_v2, %v1604_v7  ;;  %v5792_v54 = vadd.f32 %v1612_v62, %v1611_v18 }
 0x10c   :  { %2119 = vrot.lane.b32.xlu1 %v8043_v17, %s4586_s12  ;;  %2103 = vrot.lane.b32.xlu0 %v8042_v50, %s4586_s12  ;;  %8047 = vst [vmem:[#allocation27_spill] sm:$0xff] %v5769_v8  ;;  %8048 = vst [vmem:[#allocation29_spill] sm:$0xff] %v5771_v23  ;;  %v5794_v40 = vadd.f32 %v1619_v43, %v1618_v25  ;;  %v5819_v42 = vadd.f32 %v1645_v29, %v1644_v59  ;;  %vm1908_vm5 = vcmp.lt.s32.totalorder %v5616_v41, 2 }
 0x10d   :  { %8051 = vst [vmem:[#allocation21_spill] sm:$0xff] %v5782_v57  ;;  %8052 = vst [vmem:[#allocation34_spill] sm:$0xff] %v5784_v24  ;;  %v8059_v57 = vld [vmem:[#allocation8_spill] sm:$0xff]  ;;  %vm1834_vm11 = vcmp.ge.s32.totalorder %v5778_v5, 1  ;;  %vm2121_vm12 = vcmp.lt.s32.totalorder %v5616_v41, 3  ;;  %vm2054_vm14 = vcmp.ge.s32.totalorder %v5778_v5, 2 }
 0x10e   :  { %v5759_v38 = vpop.permute.xlu1 %1670  ;;  %v5761_v4 = vpop.permute.xlu0 %1668  ;;  %8053 = vst [vmem:[#allocation13_spill] sm:$0xff] %v5790_v34  ;;  %8054 = vst [vmem:[#allocation12_spill] sm:$0xff] %v5792_v54  ;;  %vm2334_vm15 = vcmp.lt.s32.totalorder %v5616_v41, 4 }
 0x10f   :  { %8055 = vst [vmem:[#allocation5_spill] sm:$0xff] %v5794_v40 }
 0x110   :  { %2328 = vrot.lane.b32.xlu1 %v5267_v33, %s4587_s13  ;;  %2312 = vrot.lane.b32.xlu0 %v5130_v55, %s4587_s13 }
 0x112   :  { %v1675_v22 = vpop.permute.xlu1 %1674  ;;  %v1673_v37 = vpop.permute.xlu0 %1672 }
 0x113   :  { %v1690_v61 = vsel %vm1688_vm1, %v5726_v30, %v1675_v22  ;;  %v1698_v46 = vsel %vm1688_vm1, %v1675_v22, %v5726_v30  ;;  %v1689_v63 = vsel %vm1688_vm1, %v5728_v9, %v1673_v37  ;;  %v1697_v52 = vsel %vm1688_vm1, %v1673_v37, %v5728_v9 }
 0x114   :  { %v1707_v7 = vmul.f32 %v1698_v46, %v5618_v27  ;;  %v1708_v18 = vmul.f32 %v1690_v61, %v5621_v3  ;;  %v1705_v25 = vmul.f32 %v1697_v52, %v5604_v15  ;;  %v1706_v28 = vmul.f32 %v1689_v63, %v5612_v39  ;;  %2537 = vrot.lane.b32.xlu1 %v5232_v49, %s4588_s14 }
 0x115   :  { %2521 = vrot.lane.b32.xlu0 %v8031_v14, %s4588_s14  ;;  %v5821_v9 = vadd.f32 %v1652_v21, %v1651_v44 }
 0x116   :  { %v1735_v31 = vsel %vm1543_vm0, %v1707_v7, 0.0  ;;  %v1742_v19 = vsel %vm1543_vm0, %v1708_v18, 0.0  ;;  %v1721_v11 = vsel %vm1543_vm0, %v1705_v25, 0.0  ;;  %v1728_v20 = vsel %vm1543_vm0, %v1706_v28, 0.0  ;;  %v1679_v2 = vpop.permute.xlu1 %1678  ;;  %v1677_v62 = vpop.permute.xlu0 %1676 }
 0x117   :  { %v1736_v43 = vrot.slane %v1735_v31, 4  ;;  %v1743_v22 = vrot.slane %v1742_v19, 4  ;;  %v1722_v37 = vrot.slane %v1721_v11, 4  ;;  %v1729_v61 = vrot.slane %v1728_v20, 4 }
 0x118   :  { %v1692_v59 = vsel %vm1688_vm1, %v5738_v45, %v1679_v2  ;;  %v1700_v44 = vsel %vm1688_vm1, %v1679_v2, %v5738_v45  ;;  %v1691_v29 = vsel %vm1688_vm1, %v5740_v1, %v1677_v62  ;;  %v1699_v21 = vsel %vm1688_vm1, %v1677_v62, %v5740_v1  ;;  %2730 = vrot.lane.b32.xlu1 %v8032_v35, %s4589_s15 }
 0x119   :  { %v1737_v46 = vadd.f32 %v1736_v43, %v1735_v31  ;;  %v1744_v63 = vadd.f32 %v1743_v22, %v1742_v19  ;;  %v1723_v52 = vadd.f32 %v1722_v37, %v1721_v11  ;;  %v1730_v7 = vadd.f32 %v1729_v61, %v1728_v20  ;;  %2728 = vrot.lane.b32.xlu0 %v5104_v26, %s4589_s15  ;;  %v8056_v22 = vld [vmem:[#allocation4_spill] sm:$0xff] }
 0x11a   :  { %v1711_v45 = vmul.f32 %v1700_v44, %v5627_v36  ;;  %v1712_v18 = vmul.f32 %v1692_v59, %v5630_v12  ;;  %v1709_v25 = vmul.f32 %v1699_v21, %v5632_v32  ;;  %v1710_v28 = vmul.f32 %v1691_v29, %v5636_v6  ;;  %v1683_v1 = vpop.permute.xlu1 %1682  ;;  %v1681_v2 = vpop.permute.xlu0 %1680  ;;  %v8057_v29 = vld [vmem:[#allocation7_spill] sm:$0xff] }
 0x11b   :  { %v1738_v62 = vrot.slane %v1737_v46, 2  ;;  %v1745_v58 = vrot.slane %v1744_v63, 2  ;;  %v1724_v30 = vrot.slane %v1723_v52, 2  ;;  %v1731_v31 = vrot.slane %v1730_v7, 2 }
 0x11c   :  { %v1763_v19 = vsel %vm1543_vm0, %v1711_v45, 0.0  ;;  %v1770_v11 = vsel %vm1543_vm0, %v1712_v18, 0.0  ;;  %v1749_v20 = vsel %vm1543_vm0, %v1709_v25, 0.0  ;;  %v1756_v43 = vsel %vm1543_vm0, %v1710_v28, 0.0  ;;  %2746 = vrot.lane.b32.xlu1 %v8056_v22, %s4589_s15 }
 0x11d   :  { %v1739_v37 = vadd.f32 %v1738_v62, %v1737_v46  ;;  %v1746_v61 = vadd.f32 %v1745_v58, %v1744_v63  ;;  %v1725_v59 = vadd.f32 %v1724_v30, %v1723_v52  ;;  %v1732_v44 = vadd.f32 %v1731_v31, %v1730_v7  ;;  %2744 = vrot.lane.b32.xlu0 %v8057_v29, %s4589_s15  ;;  %v8058_v52 = vld [vmem:[#allocation10_spill] sm:$0xff] }
 0x11e   :  { %v1764_v21 = vrot.slane %v1763_v19, 4  ;;  %v1771_v0 = vrot.slane %v1770_v11, 4  ;;  %v1750_v40 = vrot.slane %v1749_v20, 4  ;;  %v1757_v45 = vrot.slane %v1756_v43, 4  ;;  %v5855_v54 = vpop.permute.xlu1 %1686  ;;  %v5857_v18 = vpop.permute.xlu0 %1684 }
 0x11f   :  { %v1740_v25 = vrot.slane %v1739_v37, 1  ;;  %v1747_v28 = vrot.slane %v1746_v61, 1  ;;  %v1726_v34 = vrot.slane %v1725_v59, 1  ;;  %v1733_v24 = vrot.slane %v1732_v44, 1 }
 0x120   :  { %v1765_v46 = vadd.f32 %v1764_v21, %v1763_v19  ;;  %v1772_v58 = vadd.f32 %v1771_v0, %v1770_v11  ;;  %v1751_v30 = vadd.f32 %v1750_v40, %v1749_v20  ;;  %v1758_v63 = vadd.f32 %v1757_v45, %v1756_v43  ;;  %2330 = vrot.lane.b32.xlu1 %v8058_v52, %s4587_s13  ;;  %v8060_v21 = vld [vmem:[#allocation9_spill] sm:$0xff]  ;;  %v8061_v45 = vld [vmem:[#allocation22_spill] sm:$0xff] }
 0x121   :  { %v1741_v7 = vadd.f32 %v1740_v25, %v1739_v37  ;;  %v1748_v62 = vadd.f32 %v1747_v28, %v1746_v61  ;;  %v1734_v31 = vadd.f32 %v1733_v24, %v1732_v44  ;;  %2314 = vrot.lane.b32.xlu0 %v8059_v57, %s4587_s13  ;;  %v1727_v0 = vadd.f32 %v1726_v34, %v1725_v59  ;;  %v8062_v34 = vld [vmem:[#allocation25_spill] sm:$0xff] }
 0x122   :  { %v1766_v23 = vrot.slane %v1765_v46, 2  ;;  %v1773_v8 = vrot.slane %v1772_v58, 2  ;;  %v1752_v10 = vrot.slane %v1751_v30, 2  ;;  %v1759_v16 = vrot.slane %v1758_v63, 2  ;;  %v5864_v19 = vpop.permute.xlu1 %1878  ;;  %v5866_v40 = vpop.permute.xlu0 %1876 }
 0x123   :  { %v1865_v11 = vsel %vm1851_vm2, %v1748_v62, %v1734_v31  ;;  %v1694_v24 = vsel %vm1688_vm1, %v5749_v51, %v1683_v1  ;;  %v1702_v20 = vsel %vm1688_vm1, %v1683_v1, %v5749_v51  ;;  %v1693_v28 = vsel %vm1688_vm1, %v5751_v48, %v1681_v2  ;;  %v8063_v51 = vld [vmem:[#allocation6_spill] sm:$0xff] }
 0x124   :  { %v1767_v43 = vadd.f32 %v1766_v23, %v1765_v46  ;;  %v1774_v37 = vadd.f32 %v1773_v8, %v1772_v58  ;;  %v1753_v61 = vadd.f32 %v1752_v10, %v1751_v30  ;;  %v1760_v44 = vadd.f32 %v1759_v16, %v1758_v63  ;;  %2539 = vrot.lane.b32.xlu1 %v8060_v21, %s4588_s14  ;;  %v8064_v63 = vld [vmem:[#allocation16_spill] sm:$0xff] }
 0x125   :  { %v1715_v25 = vmul.f32 %v1702_v20, %v8061_v45  ;;  %v1716_v59 = vmul.f32 %v1694_v24, %v8062_v34  ;;  %v1701_v62 = vsel %vm1688_vm1, %v1681_v2, %v5751_v48  ;;  %2523 = vrot.lane.b32.xlu0 %v8063_v51, %s4588_s14  ;;  %v8065_v24 = vld [vmem:[#allocation19_spill] sm:$0xff]  ;;  %v1852_v48 = vsel %vm1851_vm2, %v1741_v7, %v1727_v0 }
 0x126   :  { %v1768_v10 = vrot.slane %v1767_v43, 1  ;;  %v1775_v16 = vrot.slane %v1774_v37, 1  ;;  %v1754_v8 = vrot.slane %v1753_v61, 1  ;;  %v1761_v23 = vrot.slane %v1760_v44, 1  ;;  %v5887_v1 = vpop.permute.xlu1 %1882  ;;  %v5889_v46 = vpop.permute.xlu0 %1880 }
 0x127   :  { %v1791_v58 = vsel %vm1543_vm0, %v1715_v25, 0.0  ;;  %v1798_v30 = vsel %vm1543_vm0, %v1716_v59, 0.0  ;;  %v1713_v31 = vmul.f32 %v1701_v62, %v8064_v63  ;;  %v1714_v20 = vmul.f32 %v1693_v28, %v8065_v24  ;;  %v8067_v59 = vld [vmem:[#allocation36_spill] sm:$0xff] }
 0x128   :  { %v1776_v2 = vadd.f32 %v1775_v16, %v1774_v37  ;;  %v1762_v56 = vadd.f32 %v1761_v23, %v1760_v44  ;;  %2748 = vrot.lane.b32.xlu1 %v8066_v60, %s4589_s15  ;;  %v1792_v45 = vrot.slane %v1791_v58, 4  ;;  %v1799_v6 = vrot.slane %v1798_v30, 4 }
 0x129   :  { %v1777_v32 = vsel %vm1543_vm0, %v1713_v31, 0.0  ;;  %v1784_v25 = vsel %vm1543_vm0, %v1714_v20, 0.0  ;;  %2732 = vrot.lane.b32.xlu0 %v8067_v59, %s4589_s15  ;;  %v5903_v62 = vadd.f32 %v1768_v10, %v1767_v43  ;;  %v1755_v16 = vadd.f32 %v1754_v8, %v1753_v61  ;;  %v8069_v61 = vld [vmem:[#allocation26_spill] sm:$0xff] }
 0x12a   :  { %v1866_v7 = vsel %vm1853_vm3, %v1762_v56, %v1865_v11  ;;  %v1778_v0 = vrot.slane %v1777_v32, 4  ;;  %v1785_v37 = vrot.slane %v1784_v25, 4  ;;  %v5906_v44 = vpop.permute.xlu1 %1886  ;;  %v5908_v28 = vpop.permute.xlu0 %1884  ;;  %v1793_v23 = vadd.f32 %v1792_v45, %v1791_v58 }
 0x12b   :  { %8068 = vst [vmem:[#allocation14_spill] sm:$0xff] %v5908_v28  ;;  %v1800_v31 = vadd.f32 %v1799_v6, %v1798_v30  ;;  %v1867_v20 = vsel %vm1855_vm4, %v1776_v2, %v1866_v7  ;;  %v1696_v56 = vsel %vm1688_vm1, %v5759_v38, %v5855_v54  ;;  %v1704_v11 = vsel %vm1688_vm1, %v5855_v54, %v5759_v38  ;;  %v8074_v28 = vld [vmem:[#allocation2_spill] sm:$0xff] }
 0x12c   :  { %v1779_v34 = vadd.f32 %v1778_v0, %v1777_v32  ;;  %v1786_v24 = vadd.f32 %v1785_v37, %v1784_v25  ;;  %2332 = vrot.lane.b32.xlu1 %v8043_v17, %s4587_s13  ;;  %v1794_v6 = vrot.slane %v1793_v23, 2  ;;  %v1719_v45 = vmul.f32 %v1704_v11, %v8069_v61  ;;  %v8070_v32 = vld [vmem:[#allocation28_spill] sm:$0xff] }
 0x12d   :  { %v1801_v43 = vrot.slane %v1800_v31, 2  ;;  %v1720_v10 = vmul.f32 %v1696_v56, %v8070_v32  ;;  %2316 = vrot.lane.b32.xlu0 %v8042_v50, %s4587_s13  ;;  %v1695_v38 = vsel %vm1688_vm1, %v5761_v4, %v5857_v18  ;;  %v1703_v54 = vsel %vm1688_vm1, %v5857_v18, %v5761_v4  ;;  %v8073_v18 = vld [vmem:[#allocation24_spill] sm:$0xff] }
 0x12e   :  { %v1780_v8 = vrot.slane %v1779_v34, 2  ;;  %v1787_v58 = vrot.slane %v1786_v24, 2  ;;  %v5934_v30 = vpop.permute.xlu1 %1890  ;;  %v5936_v2 = vpop.permute.xlu0 %1888  ;;  %v1795_v25 = vadd.f32 %v1794_v6, %v1793_v23  ;;  %v1819_v0 = vsel %vm1543_vm0, %v1719_v45, 0.0 }
 0x12f   :  { %8071 = vst [vmem:[#allocation4_spill] sm:$0xff] %v5934_v30  ;;  %8072 = vst [vmem:[#allocation7_spill] sm:$0xff] %v5936_v2  ;;  %v1802_v7 = vadd.f32 %v1801_v43, %v1800_v31  ;;  %v1826_v37 = vsel %vm1543_vm0, %v1720_v10, 0.0  ;;  %v1820_v32 = vrot.slane %v1819_v0, 4  ;;  %v1854_v63 = vsel %vm1853_vm3, %v1755_v16, %v1852_v48 }
 0x130   :  { %v1781_v56 = vadd.f32 %v1780_v8, %v1779_v34  ;;  %v1788_v11 = vadd.f32 %v1787_v58, %v1786_v24  ;;  %v1827_v61 = vrot.slane %v1826_v37, 4  ;;  %2541 = vrot.lane.b32.xlu1 %v5267_v33, %s4588_s14  ;;  %v1717_v30 = vmul.f32 %v1703_v54, %v8073_v18 }
 0x131   :  { %v1803_v4 = vrot.slane %v1802_v7, 1  ;;  %v1718_v2 = vmul.f32 %v1695_v38, %v8074_v28  ;;  %2525 = vrot.lane.b32.xlu0 %v5130_v55, %s4588_s14  ;;  %v1821_v6 = vadd.f32 %v1820_v32, %v1819_v0  ;;  %v1796_v45 = vrot.slane %v1795_v25, 1 }
 0x132   :  { %v1782_v23 = vrot.slane %v1781_v56, 1  ;;  %v1789_v31 = vrot.slane %v1788_v11, 1  ;;  %v1828_v34 = vadd.f32 %v1827_v61, %v1826_v37  ;;  %v1895_v24 = vpop.permute.xlu1 %1894  ;;  %v1893_v43 = vpop.permute.xlu0 %1892  ;;  %v1805_v8 = vsel %vm1543_vm0, %v1717_v30, 0.0 }
 0x133   :  { %v1804_v10 = vadd.f32 %v1803_v4, %v1802_v7  ;;  %v1812_v48 = vsel %vm1543_vm0, %v1718_v2, 0.0  ;;  %v1822_v54 = vrot.slane %v1821_v6, 2  ;;  %v1806_v38 = vrot.slane %v1805_v8, 4 }
 0x134   :  { %v1783_v16 = vadd.f32 %v1782_v23, %v1781_v56  ;;  %v1790_v58 = vadd.f32 %v1789_v31, %v1788_v11  ;;  %v1829_v18 = vrot.slane %v1828_v34, 2  ;;  %2750 = vrot.lane.b32.xlu1 %v5232_v49, %s4589_s15  ;;  %v1813_v28 = vrot.slane %v1812_v48, 4 }
 0x135   :  { %v1910_v61 = vsel %vm1908_vm5, %v5864_v19, %v1895_v24  ;;  %v1918_v32 = vsel %vm1908_vm5, %v1895_v24, %v5864_v19  ;;  %2734 = vrot.lane.b32.xlu0 %v8031_v14, %s4589_s15  ;;  %v1856_v30 = vsel %vm1855_vm4, %v5903_v62, %v1854_v63  ;;  %v1823_v7 = vadd.f32 %v1822_v54, %v1821_v6  ;;  %v8075_v14 = vld [vmem:[#allocation23_spill] sm:$0xff] }
 0x136   :  { %v1868_v2 = vsel %vm1857_vm6, %v1790_v58, %v1867_v20  ;;  %v1830_v0 = vadd.f32 %v1829_v18, %v1828_v34  ;;  %v1899_v37 = vpop.permute.xlu1 %1898  ;;  %v5962_v56 = vpop.permute.xlu0 %1896  ;;  %v1797_v11 = vadd.f32 %v1796_v45, %v1795_v25  ;;  %v1807_v4 = vadd.f32 %v1806_v38, %v1805_v8 }
 0x137   :  { %v1814_v23 = vadd.f32 %v1813_v28, %v1812_v48  ;;  %v1869_v19 = vsel %vm1859_vm7, %v1804_v10, %v1868_v2  ;;  %v1858_v31 = vsel %vm1857_vm6, %v1783_v16, %v1856_v30  ;;  %v1824_v24 = vrot.slane %v1823_v7, 1 }
 0x138   :  { %vm1833_vm10 = vcmp.ge.s32.totalorder %v8075_v14, 1  ;;  %v1927_v63 = vmul.f32 %v1918_v32, %v5618_v27  ;;  %v1928_v62 = vmul.f32 %v1910_v61, %v5621_v3  ;;  %2943 = vrot.lane.b32.xlu1 %v8032_v35, %s4590_s16  ;;  %v1808_v20 = vrot.slane %v1807_v4, 2 }
 0x139   :  { %v1815_v25 = vrot.slane %v1814_v23, 2  ;;  %v1909_v28 = vsel %vm1908_vm5, %v5866_v40, %v1893_v43  ;;  %v1917_v18 = vsel %vm1908_vm5, %v1893_v43, %v5866_v40  ;;  %2941 = vrot.lane.b32.xlu0 %v5104_v26, %s4590_s16  ;;  %v1825_v6 = vadd.f32 %v1824_v24, %v1823_v7 }
 0x13a   :  { %v1831_v34 = vrot.slane %v1830_v0, 1  ;;  %v1955_v45 = vsel %vm1543_vm0, %v1927_v63, 0.0  ;;  %v1962_v10 = vsel %vm1543_vm0, %v1928_v62, 0.0  ;;  %v5982_v35 = vpop.permute.xlu1 %1902  ;;  %v5984_v8 = vpop.permute.xlu0 %1900  ;;  %v1809_v48 = vadd.f32 %v1808_v20, %v1807_v4 }
 0x13b   :  { %v1816_v16 = vadd.f32 %v1815_v25, %v1814_v23  ;;  %v1956_v58 = vrot.slane %v1955_v45, 4  ;;  %v1963_v54 = vrot.slane %v1962_v10, 4  ;;  %v1925_v38 = vmul.f32 %v1917_v18, %v5604_v15 }
 0x13c   :  { %v1926_v40 = vmul.f32 %v1909_v28, %v5612_v39  ;;  %v1912_v26 = vsel %vm1908_vm5, %v5887_v1, %v1899_v37  ;;  %v1920_v43 = vsel %vm1908_vm5, %v1899_v37, %v5887_v1  ;;  %2959 = vrot.lane.b32.xlu1 %v8056_v22, %s4590_s16  ;;  %v1810_v61 = vrot.slane %v1809_v48, 1 }
 0x13d   :  { %v1817_v32 = vrot.slane %v1816_v16, 1  ;;  %v1957_v30 = vadd.f32 %v1956_v58, %v1955_v45  ;;  %v1964_v2 = vadd.f32 %v1963_v54, %v1962_v10  ;;  %2957 = vrot.lane.b32.xlu0 %v8057_v29, %s4590_s16  ;;  %v1832_v7 = vadd.f32 %v1831_v34, %v1830_v0 }
 0x13e   :  { %v1941_v4 = vsel %vm1543_vm0, %v1925_v38, 0.0  ;;  %v1948_v23 = vsel %vm1543_vm0, %v1926_v40, 0.0  ;;  %v1932_v24 = vmul.f32 %v1912_v26, %v5630_v12  ;;  %v1811_v63 = vadd.f32 %v1810_v61, %v1809_v48  ;;  %v6001_v20 = vpop.permute.xlu1 %1906  ;;  %v6003_v22 = vpop.permute.xlu0 %1904 }
 0x13f   :  { %v1818_v62 = vadd.f32 %v1817_v32, %v1816_v16  ;;  %v1958_v1 = vrot.slane %v1957_v30, 2  ;;  %v1965_v37 = vrot.slane %v1964_v2, 2  ;;  %v1860_v25 = vsel %vm1859_vm7, %v1797_v11, %v1858_v31 }
 0x140   :  { %v1942_v28 = vrot.slane %v1941_v4, 4  ;;  %v1949_v18 = vrot.slane %v1948_v23, 4  ;;  %v1931_v29 = vmul.f32 %v1920_v43, %v5627_v36  ;;  %2543 = vrot.lane.b32.xlu1 %v8058_v52, %s4588_s14  ;;  %v1862_v0 = vsel %vm1861_vm8, %v1811_v63, %v1860_v25 }
 0x141   :  { %v1870_v34 = vsel %vm1861_vm8, %v1818_v62, %v1869_v19  ;;  %v1959_v45 = vadd.f32 %v1958_v1, %v1957_v30  ;;  %v1966_v10 = vadd.f32 %v1965_v37, %v1964_v2  ;;  %2527 = vrot.lane.b32.xlu0 %v8059_v57, %s4588_s14  ;;  %v1864_v48 = vsel %vm1863_vm9, %v1825_v6, %v1862_v0 }
 0x142   :  { %v1871_v11 = vsel %vm1863_vm9, %v1832_v7, %v1870_v34  ;;  %v1943_v31 = vadd.f32 %v1942_v28, %v1941_v4  ;;  %v1950_v16 = vadd.f32 %v1949_v18, %v1948_v23  ;;  %v6017_v58 = vsel %vm1833_vm10, %v1864_v48, -1e+30  ;;  %v6048_v23 = vpop.permute.xlu1 %2091  ;;  %v8094_v7 = vld [vmem:[#allocation19_spill] sm:$0xff] }
 0x143   :  { %8076 = vst [vmem:[#allocation10_spill] sm:$0xff] %v6017_v58  ;;  %v6021_v54 = vsel %vm1834_vm11, %v1871_v11, -1e+30  ;;  %v1960_v19 = vrot.slane %v1959_v45, 1  ;;  %v1967_v38 = vrot.slane %v1966_v10, 1  ;;  %v8078_v6 = vrot.slane %v5763_v53, 1 }
 0x144   :  { %8077 = vst [vmem:[#allocation8_spill] sm:$0xff] %v6021_v54  ;;  %2752 = vrot.lane.b32.xlu1 %v8060_v21, %s4589_s15  ;;  %v8080_v26 = vrot.slane %v5786_v47, 1  ;;  %v8082_v61 = vrot.slane %v5788_v13, 1  ;;  %v8084_v30 = vrot.slane %v5819_v42, 1  ;;  %v1990_v4 = vsel %vm1543_vm0, %v1932_v24, 0.0 }
 0x145   :  { %v6028_v40 = vadd.f32 %v8078_v6, %v5763_v53  ;;  %v1983_v53 = vsel %vm1543_vm0, %v1931_v29, 0.0  ;;  %2736 = vrot.lane.b32.xlu0 %v8063_v51, %s4589_s15  ;;  %v1961_v37 = vadd.f32 %v1960_v19, %v1959_v45  ;;  %v1968_v25 = vadd.f32 %v1967_v38, %v1966_v10  ;;  %v8088_v10 = vld [vmem:[#allocation18_spill] sm:$0xff]  ;;  %v8089_v19 = vld [vmem:[#allocation20_spill] sm:$0xff] }
 0x146   :  { %v6033_v43 = vadd.f32 %v8080_v26, %v5786_v47  ;;  %v6038_v32 = vadd.f32 %v8082_v61, %v5788_v13  ;;  %v6043_v2 = vadd.f32 %v8084_v30, %v5819_v42  ;;  %v6050_v47 = vpop.permute.xlu0 %2089  ;;  %v8086_v13 = vrot.slane %v5821_v9, 1  ;;  %v6087_v30 = vpop.permute.xlu1 %2107 }
 0x147   :  { %8079 = vst [vmem:[#allocation9_spill] sm:$0xff] %v6028_v40  ;;  %v1944_v28 = vrot.slane %v1943_v31, 2  ;;  %v1951_v18 = vrot.slane %v1950_v16, 2  ;;  %v1984_v29 = vrot.slane %v1983_v53, 4  ;;  %v1991_v0 = vrot.slane %v1990_v4, 4 }
 0x148   :  { %8081 = vst [vmem:[#allocation6_spill] sm:$0xff] %v6033_v43  ;;  %8083 = vst [vmem:[#allocation11_spill] sm:$0xff] %v6038_v32  ;;  %v6057_v63 = vadd.f32 %v8086_v13, %v5821_v9  ;;  %v1911_v9 = vsel %vm1908_vm5, %v5889_v46, %v5962_v56  ;;  %v1919_v34 = vsel %vm1908_vm5, %v5962_v56, %v5889_v46  ;;  %2961 = vrot.lane.b32.xlu1 %v8066_v60, %s4590_s16 }
 0x149   :  { %8085 = vst [vmem:[#allocation36_spill] sm:$0xff] %v6043_v2  ;;  %v1945_v48 = vadd.f32 %v1944_v28, %v1943_v31  ;;  %v1952_v45 = vadd.f32 %v1951_v18, %v1950_v16  ;;  %v1929_v11 = vmul.f32 %v1919_v34, %v8088_v10  ;;  %v1930_v38 = vmul.f32 %v1911_v9, %v8089_v19  ;;  %v8095_v2 = vld [vmem:[#allocation4_spill] sm:$0xff] }
 0x14a   :  { %8087 = vst [vmem:[#allocation37_spill] sm:$0xff] %v6057_v63  ;;  %2945 = vrot.lane.b32.xlu0 %v8067_v59, %s4590_s16  ;;  %v1985_v6 = vadd.f32 %v1984_v29, %v1983_v53  ;;  %v1992_v26 = vadd.f32 %v1991_v0, %v1990_v4  ;;  %v1914_v61 = vsel %vm1908_vm5, %v5906_v44, %v5982_v35  ;;  %v6089_v59 = vpop.permute.xlu0 %2105  ;;  %v8091_v0 = vld [vmem:[#allocation25_spill] sm:$0xff]  ;;  %vm2053_vm13 = vcmp.ge.s32.totalorder %v8075_v14, 2 }
 0x14b   :  { %v1922_v60 = vsel %vm1908_vm5, %v5982_v35, %v5906_v44  ;;  %v1946_v46 = vrot.slane %v1945_v48, 1  ;;  %v1953_v56 = vrot.slane %v1952_v45, 1  ;;  %v1969_v31 = vsel %vm1543_vm0, %v1929_v11, 0.0  ;;  %v8090_v44 = vld [vmem:[#allocation22_spill] sm:$0xff] }
 0x14c   :  { %v1976_v16 = vsel %vm1543_vm0, %v1930_v38, 0.0  ;;  %v1986_v53 = vrot.slane %v1985_v6, 2  ;;  %v1993_v4 = vrot.slane %v1992_v26, 2  ;;  %v1970_v13 = vrot.slane %v1969_v31, 4  ;;  %2545 = vrot.lane.b32.xlu1 %v8043_v17, %s4588_s14 }
 0x14d   :  { %v1977_v28 = vrot.slane %v1976_v16, 4  ;;  %v1947_v18 = vadd.f32 %v1946_v46, %v1945_v48  ;;  %v1954_v29 = vadd.f32 %v1953_v56, %v1952_v45  ;;  %v1935_v35 = vmul.f32 %v1922_v60, %v8090_v44 }
 0x14e   :  { %v1936_v9 = vmul.f32 %v1914_v61, %v8091_v0  ;;  %2529 = vrot.lane.b32.xlu0 %v8042_v50, %s4588_s14  ;;  %v1987_v34 = vadd.f32 %v1986_v53, %v1985_v6  ;;  %v1994_v11 = vadd.f32 %v1993_v4, %v1992_v26  ;;  %v1971_v38 = vadd.f32 %v1970_v13, %v1969_v31  ;;  %v8092_v26 = vld [vmem:[#allocation14_spill] sm:$0xff]  ;;  %v6111_v31 = vpop.permute.xlu1 %2109 }
 0x14f   :  { %v1978_v24 = vadd.f32 %v1977_v28, %v1976_v16  ;;  %v2071_v1 = vsel %vm1851_vm2, %v1961_v37, %v1947_v18  ;;  %v2078_v62 = vsel %vm1851_vm2, %v1968_v25, %v1954_v29  ;;  %v2011_v42 = vsel %vm1543_vm0, %v1935_v35, 0.0  ;;  %v6113_v16 = vpop.permute.xlu0 %2093  ;;  %v8093_v35 = vld [vmem:[#allocation16_spill] sm:$0xff] }
 0x150   :  { %v2018_v48 = vsel %vm1543_vm0, %v1936_v9, 0.0  ;;  %v1988_v45 = vrot.slane %v1987_v34, 1  ;;  %v1995_v46 = vrot.slane %v1994_v11, 1  ;;  %v1972_v60 = vrot.slane %v1971_v38, 2  ;;  %2754 = vrot.lane.b32.xlu1 %v5267_v33, %s4589_s15 }
 0x151   :  { %v1979_v56 = vrot.slane %v1978_v24, 2  ;;  %v2012_v61 = vrot.slane %v2011_v42, 4  ;;  %v2019_v6 = vrot.slane %v2018_v48, 4  ;;  %v1913_v37 = vsel %vm1908_vm5, %v8092_v26, %v5984_v8 }
 0x152   :  { %v1921_v25 = vsel %vm1908_vm5, %v5984_v8, %v8092_v26  ;;  %2738 = vrot.lane.b32.xlu0 %v5130_v55, %s4589_s15  ;;  %v1989_v53 = vadd.f32 %v1988_v45, %v1987_v34  ;;  %v1996_v4 = vadd.f32 %v1995_v46, %v1994_v11  ;;  %v1973_v13 = vadd.f32 %v1972_v60, %v1971_v38 }
 0x153   :  { %v1980_v28 = vadd.f32 %v1979_v56, %v1978_v24  ;;  %v2013_v18 = vadd.f32 %v2012_v61, %v2011_v42  ;;  %v2020_v29 = vadd.f32 %v2019_v6, %v2018_v48  ;;  %v1933_v9 = vmul.f32 %v1921_v25, %v8093_v35  ;;  %v8096_v48 = vld [vmem:[#allocation35_spill] sm:$0xff]  ;;  %v6138_v43 = vpop.permute.xlu0 %2095 }
 0x154   :  { %v1934_v63 = vmul.f32 %v1913_v37, %v8094_v7  ;;  %v1974_v8 = vrot.slane %v1973_v13, 1  ;;  %v1916_v32 = vsel %vm1908_vm5, %v8095_v2, %v6001_v20  ;;  %v1924_v24 = vsel %vm1908_vm5, %v6001_v20, %v8095_v2  ;;  %2963 = vrot.lane.b32.xlu1 %v5232_v49, %s4590_s16  ;;  %v8097_v37 = vld [vmem:[#allocation26_spill] sm:$0xff]  ;;  %v8098_v2 = vld [vmem:[#allocation28_spill] sm:$0xff]  ;;  %v6136_v49 = vpop.permute.xlu1 %2111 }
 0x155   :  { %v1981_v26 = vrot.slane %v1980_v28, 1  ;;  %v2014_v42 = vrot.slane %v2013_v18, 2  ;;  %v2021_v34 = vrot.slane %v2020_v29, 2  ;;  %v1997_v11 = vsel %vm1543_vm0, %v1933_v9, 0.0 }
 0x156   :  { %v2004_v38 = vsel %vm1543_vm0, %v1934_v63, 0.0  ;;  %2947 = vrot.lane.b32.xlu0 %v8096_v48, %s4590_s16  ;;  %v1975_v45 = vadd.f32 %v1974_v8, %v1973_v13  ;;  %v1998_v60 = vrot.slane %v1997_v11, 4  ;;  %v1939_v20 = vmul.f32 %v1924_v24, %v8097_v37 }
 0x157   :  { %v1982_v46 = vadd.f32 %v1981_v26, %v1980_v28  ;;  %v2005_v56 = vrot.slane %v2004_v38, 4  ;;  %v2015_v61 = vadd.f32 %v2014_v42, %v2013_v18  ;;  %v2022_v6 = vadd.f32 %v2021_v34, %v2020_v29 }
 0x158   :  { %v1940_v25 = vmul.f32 %v1916_v32, %v8098_v2  ;;  %v2072_v9 = vsel %vm1853_vm3, %v1975_v45, %v2071_v1  ;;  %v1999_v40 = vadd.f32 %v1998_v60, %v1997_v11  ;;  %2756 = vrot.lane.b32.xlu1 %v8058_v52, %s4589_s15  ;;  %v2039_v1 = vsel %vm1543_vm0, %v1939_v20, 0.0  ;;  %v8099_v45 = vld [vmem:[#allocation7_spill] sm:$0xff]  ;;  %v6162_v20 = vpop.permute.xlu1 %2304 }
 0x159   :  { %v2079_v63 = vsel %vm1853_vm3, %v1982_v46, %v2078_v62  ;;  %v2006_v48 = vadd.f32 %v2005_v56, %v2004_v38  ;;  %v2016_v13 = vrot.slane %v2015_v61, 1  ;;  %v2023_v28 = vrot.slane %v2022_v6, 1  ;;  %v8100_v56 = vld [vmem:[#allocation24_spill] sm:$0xff] }
 0x15a   :  { %v2073_v18 = vsel %vm1855_vm4, %v1989_v53, %v2072_v9  ;;  %v2080_v29 = vsel %vm1855_vm4, %v1996_v4, %v2079_v63  ;;  %2740 = vrot.lane.b32.xlu0 %v8059_v57, %s4589_s15  ;;  %v2000_v32 = vrot.slane %v1999_v40, 2  ;;  %v2046_v62 = vsel %vm1543_vm0, %v1940_v25, 0.0  ;;  %v6164_v25 = vpop.permute.xlu0 %2302 }
 0x15b   :  { %v2007_v8 = vrot.slane %v2006_v48, 2  ;;  %v2017_v26 = vadd.f32 %v2016_v13, %v2015_v61  ;;  %v2024_v24 = vadd.f32 %v2023_v28, %v2022_v6  ;;  %v2040_v42 = vrot.slane %v2039_v1, 4  ;;  %v8101_v6 = vld [vmem:[#allocation2_spill] sm:$0xff] }
 0x15c   :  { %v2047_v34 = vrot.slane %v2046_v62, 4  ;;  %v2001_v11 = vadd.f32 %v2000_v32, %v1999_v40  ;;  %v1915_v53 = vsel %vm1908_vm5, %v8099_v45, %v6003_v22  ;;  %v1923_v4 = vsel %vm1908_vm5, %v6003_v22, %v8099_v45  ;;  %2965 = vrot.lane.b32.xlu1 %v8060_v21, %s4590_s16 }
 0x15d   :  { %v2008_v38 = vadd.f32 %v2007_v8, %v2006_v48  ;;  %v2041_v46 = vadd.f32 %v2040_v42, %v2039_v1  ;;  %v1937_v61 = vmul.f32 %v1923_v4, %v8100_v56  ;;  %v1938_v40 = vmul.f32 %v1915_v53, %v8101_v6 }
 0x15e   :  { %v2048_v60 = vadd.f32 %v2047_v34, %v2046_v62  ;;  %2949 = vrot.lane.b32.xlu0 %v8063_v51, %s4590_s16  ;;  %v2002_v9 = vrot.slane %v2001_v11, 1  ;;  %v2123_v21 = vsel %vm2121_vm12, %v6048_v23, %v6087_v30  ;;  %v2131_v22 = vsel %vm2121_vm12, %v6087_v30, %v6048_v23 }
 0x15f   :  { %v2009_v63 = vrot.slane %v2008_v38, 1  ;;  %v2042_v48 = vrot.slane %v2041_v46, 2  ;;  %v2025_v28 = vsel %vm1543_vm0, %v1937_v61, 0.0  ;;  %v2032_v32 = vsel %vm1543_vm0, %v1938_v40, 0.0  ;;  %v6190_v40 = vpop.permute.xlu1 %2320 }
 0x160   :  { %v2049_v13 = vrot.slane %v2048_v60, 2  ;;  %v2003_v8 = vadd.f32 %v2002_v9, %v2001_v11  ;;  %v2026_v1 = vrot.slane %v2025_v28, 4  ;;  %v2033_v62 = vrot.slane %v2032_v32, 4  ;;  %2758 = vrot.lane.b32.xlu1 %v8043_v17, %s4589_s15  ;;  %v6192_v9 = vpop.permute.xlu0 %2318 }
 0x161   :  { %v2010_v51 = vadd.f32 %v2009_v63, %v2008_v38  ;;  %v2043_v42 = vadd.f32 %v2042_v48, %v2041_v46  ;;  %v2140_v45 = vmul.f32 %v2131_v22, %v5618_v27  ;;  %v2141_v53 = vmul.f32 %v2123_v21, %v5621_v3 }
 0x162   :  { %v2050_v34 = vadd.f32 %v2049_v13, %v2048_v60  ;;  %2742 = vrot.lane.b32.xlu0 %v8042_v50, %s4589_s15  ;;  %v2074_v23 = vsel %vm1857_vm6, %v2003_v8, %v2073_v18  ;;  %v2027_v11 = vadd.f32 %v2026_v1, %v2025_v28  ;;  %v2034_v38 = vadd.f32 %v2033_v62, %v2032_v32 }
 0x163   :  { %v2081_v30 = vsel %vm1857_vm6, %v2010_v51, %v2080_v29  ;;  %v2044_v4 = vrot.slane %v2043_v42, 1  ;;  %v2075_v46 = vsel %vm1859_vm7, %v2017_v26, %v2074_v23  ;;  %v2168_v29 = vsel %vm1543_vm0, %v2140_v45, 0.0 }
 0x164   :  { %v2051_v61 = vrot.slane %v2050_v34, 1  ;;  %v2082_v60 = vsel %vm1859_vm7, %v2024_v24, %v2081_v30  ;;  %v2028_v63 = vrot.slane %v2027_v11, 2  ;;  %v2035_v18 = vrot.slane %v2034_v38, 2  ;;  %2967 = vrot.lane.b32.xlu1 %v5267_v33, %s4590_s16  ;;  %v6222_v30 = vpop.permute.xlu1 %2113 }
 0x165   :  { %v2175_v21 = vsel %vm1543_vm0, %v2141_v53, 0.0  ;;  %v2045_v22 = vadd.f32 %v2044_v4, %v2043_v42  ;;  %v2169_v13 = vrot.slane %v2168_v29, 4  ;;  %v2122_v32 = vsel %vm2121_vm12, %v6050_v47, %v6089_v59 }
 0x166   :  { %v2052_v48 = vadd.f32 %v2051_v61, %v2050_v34  ;;  %v2176_v28 = vrot.slane %v2175_v21, 4  ;;  %2951 = vrot.lane.b32.xlu0 %v5130_v55, %s4590_s16  ;;  %v2029_v26 = vadd.f32 %v2028_v63, %v2027_v11  ;;  %v2036_v24 = vadd.f32 %v2035_v18, %v2034_v38  ;;  %v6224_v11 = vpop.permute.xlu0 %2097 }
 0x167   :  { %v2130_v8 = vsel %vm2121_vm12, %v6089_v59, %v6050_v47  ;;  %v2170_v33 = vadd.f32 %v2169_v13, %v2168_v29  ;;  %v2139_v62 = vmul.f32 %v2122_v32, %v5612_v39  ;;  %v2124_v34 = vsel %vm2121_vm12, %v6113_v16, %v6111_v31 }
 0x168   :  { %v2177_v51 = vadd.f32 %v2176_v28, %v2175_v21  ;;  %v2138_v1 = vmul.f32 %v2130_v8, %v5604_v15  ;;  %v2030_v42 = vrot.slane %v2029_v26, 1  ;;  %v2037_v55 = vrot.slane %v2036_v24, 1  ;;  %2969 = vrot.lane.b32.xlu1 %v8058_v52, %s4590_s16 }
 0x169   :  { %v2132_v45 = vsel %vm2121_vm12, %v6111_v31, %v6113_v16  ;;  %v2171_v47 = vrot.slane %v2170_v33, 2  ;;  %v2161_v23 = vsel %vm1543_vm0, %v2139_v62, 0.0  ;;  %v2143_v18 = vmul.f32 %v2124_v34, %v8089_v19 }
 0x16a   :  { %v2178_v59 = vrot.slane %v2177_v51, 2  ;;  %v2154_v53 = vsel %vm1543_vm0, %v2138_v1, 0.0  ;;  %2953 = vrot.lane.b32.xlu0 %v8059_v57, %s4590_s16  ;;  %v2031_v38 = vadd.f32 %v2030_v42, %v2029_v26  ;;  %v2038_v4 = vadd.f32 %v2037_v55, %v2036_v24  ;;  %v6254_v1 = vpop.permute.xlu1 %2322  ;;  %v6256_v62 = vpop.permute.xlu0 %2306 }
 0x16b   :  { %v2155_v61 = vrot.slane %v2154_v53, 4  ;;  %v2162_v31 = vrot.slane %v2161_v23, 4  ;;  %v2172_v52 = vadd.f32 %v2171_v47, %v2170_v33  ;;  %vm2547_vm1 = vcmp.lt.s32.totalorder %v5616_v41, 5 }
 0x16c   :  { %v2179_v63 = vadd.f32 %v2178_v59, %v2177_v51  ;;  %v2076_v29 = vsel %vm1861_vm8, %v2031_v38, %v2075_v46  ;;  %v2083_v21 = vsel %vm1861_vm8, %v2038_v4, %v2082_v60  ;;  %2971 = vrot.lane.b32.xlu1 %v8043_v17, %s4590_s16  ;;  %v4326_v46 = vld [vmem:[%s7838_s1] sm:$0xff]  ;;  %v8110_v16 = vrot.slane %v6017_v58, 2 }
 0x16d   :  { %v2156_v13 = vadd.f32 %v2155_v61, %v2154_v53  ;;  %v2163_v28 = vadd.f32 %v2162_v31, %v2161_v23  ;;  %v2077_v24 = vsel %vm1863_vm9, %v2045_v22, %v2076_v29  ;;  %v2084_v32 = vsel %vm1863_vm9, %v2052_v48, %v2083_v21 }
 0x16e   :  { %2955 = vrot.lane.b32.xlu0 %v8042_v50, %s4590_s16  ;;  %v6246_v60 = vsel %vm2053_vm13, %v2077_v24, -1e+30  ;;  %v6250_v17 = vsel %vm2054_vm14, %v2084_v32, -1e+30  ;;  %v2173_v8 = vrot.slane %v2172_v52, 1  ;;  %v2180_v33 = vrot.slane %v2179_v63, 1 }
 0x16f   :  { %8102 = vst [vmem:[#allocation14_spill] sm:$0xff] %v6246_v60  ;;  %8103 = vst [vmem:[#allocation16_spill] sm:$0xff] %v6250_v17  ;;  %v2157_v48 = vrot.slane %v2156_v13, 2  ;;  %v2164_v51 = vrot.slane %v2163_v28, 2  ;;  %v2142_v50 = vmul.f32 %v2132_v45, %v8088_v10  ;;  %v2189_v32 = vsel %vm1543_vm0, %v2143_v18, 0.0  ;;  %v6282_v18 = vpop.permute.xlu0 %2099 }
 0x170   :  { %v2174_v61 = vadd.f32 %v2173_v8, %v2172_v52  ;;  %v2181_v31 = vadd.f32 %v2180_v33, %v2179_v63  ;;  %v2190_v59 = vrot.slane %v2189_v32, 4  ;;  %v2125_v45 = vsel %vm2121_vm12, %v6138_v43, %v6136_v49  ;;  %v6280_v8 = vpop.permute.xlu1 %2115 }
 0x171   :  { %v2158_v29 = vadd.f32 %v2157_v48, %v2156_v13  ;;  %v2165_v21 = vadd.f32 %v2164_v51, %v2163_v28  ;;  %v2182_v24 = vsel %vm1543_vm0, %v2142_v50, 0.0  ;;  %v2145_v28 = vmul.f32 %v2125_v45, %v5630_v12 }
 0x172   :  { %4329 = vperm.xlu0 %4517, %v4326_v46   ;;  %v2183_v55 = vrot.slane %v2182_v24, 4  ;;  %v2133_v46 = vsel %vm2121_vm12, %v6136_v49, %v6138_v43  ;;  %v2191_v48 = vadd.f32 %v2190_v59, %v2189_v32  ;;  %v2336_v51 = vsel %vm2334_vm15, %v6162_v20, %v6190_v40 }
 0x173   :  { %v2159_v52 = vrot.slane %v2158_v29, 1  ;;  %v2166_v63 = vrot.slane %v2165_v21, 1  ;;  %v2144_v13 = vmul.f32 %v2133_v46, %v5627_v36  ;;  %v2344_v43 = vsel %vm2334_vm15, %v6190_v40, %v6162_v20 }
 0x174   :  { %v2184_v33 = vadd.f32 %v2183_v55, %v2182_v24  ;;  %v2203_v46 = vsel %vm1543_vm0, %v2145_v28, 0.0  ;;  %v2192_v38 = vrot.slane %v2191_v48, 2  ;;  %v2353_v23 = vmul.f32 %v2344_v43, %v5618_v27 }
 0x175   :  { %v2160_v49 = vadd.f32 %v2159_v52, %v2158_v29  ;;  %v2167_v50 = vadd.f32 %v2166_v63, %v2165_v21  ;;  %v2196_v45 = vsel %vm1543_vm0, %v2144_v13, 0.0  ;;  %v2204_v59 = vrot.slane %v2203_v46, 4 }
 0x176   :  { %v2185_v4 = vrot.slane %v2184_v33, 2  ;;  %v2197_v55 = vrot.slane %v2196_v45, 4  ;;  %v2354_v53 = vmul.f32 %v2336_v51, %v5621_v3  ;;  %v2193_v20 = vadd.f32 %v2192_v38, %v2191_v48 }
 0x177   :  { %v2284_v24 = vsel %vm1851_vm2, %v2174_v61, %v2160_v49  ;;  %v2291_v32 = vsel %vm1851_vm2, %v2181_v31, %v2167_v50  ;;  %v2205_v29 = vadd.f32 %v2204_v59, %v2203_v46  ;;  %v2381_v21 = vsel %vm1543_vm0, %v2353_v23, 0.0  ;;  %v6308_v31 = vpop.permute.xlu1 %2324 }
 0x178   :  { %v2186_v47 = vadd.f32 %v2185_v4, %v2184_v33  ;;  %v2198_v40 = vadd.f32 %v2197_v55, %v2196_v45  ;;  %v2388_v52 = vsel %vm1543_vm0, %v2354_v53, 0.0  ;;  %v2335_v63 = vsel %vm2334_vm15, %v6164_v25, %v6192_v9  ;;  %v6310_v4 = vpop.permute.xlu0 %2308 }
 0x179   :  { %v2343_v61 = vsel %vm2334_vm15, %v6192_v9, %v6164_v25  ;;  %v2194_v13 = vrot.slane %v2193_v20, 1  ;;  %v2206_v23 = vrot.slane %v2205_v29, 2  ;;  %v2382_v33 = vrot.slane %v2381_v21, 4 }
 0x17a   :  { %v2187_v38 = vrot.slane %v2186_v47, 1  ;;  %v2199_v28 = vrot.slane %v2198_v40, 2  ;;  %v2389_v53 = vrot.slane %v2388_v52, 4  ;;  %v2351_v48 = vmul.f32 %v2343_v61, %v5604_v15 }
 0x17b   :  { %v2352_v51 = vmul.f32 %v2335_v63, %v5612_v39  ;;  %v2195_v49 = vadd.f32 %v2194_v13, %v2193_v20  ;;  %v2207_v45 = vadd.f32 %v2206_v23, %v2205_v29  ;;  %v2383_v46 = vadd.f32 %v2382_v33, %v2381_v21 }
 0x17c   :  { %v2188_v43 = vadd.f32 %v2187_v38, %v2186_v47  ;;  %v2200_v50 = vadd.f32 %v2199_v28, %v2198_v40  ;;  %v2390_v25 = vadd.f32 %v2389_v53, %v2388_v52  ;;  %v2367_v9 = vsel %vm1543_vm0, %v2351_v48, 0.0  ;;  %v6318_v47 = vpop.permute.xlu1 %2517  ;;  %v6320_v20 = vpop.permute.xlu0 %2515 }
 0x17d   :  { %v2374_v55 = vsel %vm1543_vm0, %v2352_v51, 0.0  ;;  %v2292_v34 = vsel %vm1853_vm3, %v2195_v49, %v2291_v32  ;;  %v2208_v22 = vrot.slane %v2207_v45, 1  ;;  %v2384_v26 = vrot.slane %v2383_v46, 2 }
 0x17e   :  { %v2285_v59 = vsel %vm1853_vm3, %v2188_v43, %v2284_v24  ;;  %v2201_v42 = vrot.slane %v2200_v50, 1  ;;  %v2391_v61 = vrot.slane %v2390_v25, 2  ;;  %v2368_v57 = vrot.slane %v2367_v9, 4 }
 0x17f   :  { %v2375_v63 = vrot.slane %v2374_v55, 4  ;;  %v2209_v29 = vadd.f32 %v2208_v22, %v2207_v45  ;;  %v2126_v21 = vsel %vm2121_vm12, %v6224_v11, %v6222_v30  ;;  %v2134_v24 = vsel %vm2121_vm12, %v6222_v30, %v6224_v11 }
 0x180   :  { %v2202_v40 = vadd.f32 %v2201_v42, %v2200_v50  ;;  %v2385_v32 = vadd.f32 %v2384_v26, %v2383_v46  ;;  %v2392_v52 = vadd.f32 %v2391_v61, %v2390_v25  ;;  %v2369_v38 = vadd.f32 %v2368_v57, %v2367_v9  ;;  %v6348_v45 = vpop.permute.xlu1 %2533  ;;  %v6350_v46 = vpop.permute.xlu0 %2531 }
 0x181   :  { %v2376_v13 = vadd.f32 %v2375_v63, %v2374_v55  ;;  %v6334_v42 = vsel %vm1855_vm4, %v2209_v29, %v2292_v34  ;;  %v2146_v22 = vmul.f32 %v2134_v24, %v8093_v35  ;;  %v2147_v23 = vmul.f32 %v2126_v21, %v8094_v7 }
 0x182   :  { %v6331_v28 = vsel %vm1855_vm4, %v2202_v40, %v2285_v59  ;;  %v2386_v33 = vrot.slane %v2385_v32, 1  ;;  %v2393_v53 = vrot.slane %v2392_v52, 1  ;;  %v2370_v48 = vrot.slane %v2369_v38, 2 }
 0x183   :  { %v2377_v51 = vrot.slane %v2376_v13, 2  ;;  %v2210_v30 = vsel %vm1543_vm0, %v2146_v22, 0.0  ;;  %v2217_v11 = vsel %vm1543_vm0, %v2147_v23, 0.0  ;;  %v2337_v57 = vsel %vm2334_vm15, %v6256_v62, %v6254_v1 }
 0x184   :  { %v2345_v26 = vsel %vm2334_vm15, %v6254_v1, %v6256_v62  ;;  %v2387_v34 = vadd.f32 %v2386_v33, %v2385_v32  ;;  %v2394_v43 = vadd.f32 %v2393_v53, %v2392_v52  ;;  %v2371_v49 = vadd.f32 %v2370_v48, %v2369_v38 }
 0x185   :  { %v2378_v50 = vadd.f32 %v2377_v51, %v2376_v13  ;;  %v2211_v25 = vrot.slane %v2210_v30, 4  ;;  %v2218_v9 = vrot.slane %v2217_v11, 4  ;;  %v2355_v55 = vmul.f32 %v2345_v26, %v8088_v10 }
 0x186   :  { %v2356_v59 = vmul.f32 %v2337_v57, %v8089_v19  ;;  %v2372_v61 = vrot.slane %v2371_v49, 1  ;;  %v2127_v1 = vsel %vm2121_vm12, %v6282_v18, %v6280_v8  ;;  %v2135_v62 = vsel %vm2121_vm12, %v6280_v8, %v6282_v18 }
 0x187   :  { %v2379_v63 = vrot.slane %v2378_v50, 1  ;;  %v2212_v40 = vadd.f32 %v2211_v25, %v2210_v30  ;;  %v2219_v29 = vadd.f32 %v2218_v9, %v2217_v11  ;;  %v2395_v21 = vsel %vm1543_vm0, %v2355_v55, 0.0  ;;  %v6368_v30 = vpop.permute.xlu1 %2117  ;;  %v6370_v11 = vpop.permute.xlu0 %2101 }
 0x188   :  { %v2402_v24 = vsel %vm1543_vm0, %v2356_v59, 0.0  ;;  %v2373_v32 = vadd.f32 %v2372_v61, %v2371_v49  ;;  %v2396_v38 = vrot.slane %v2395_v21, 4  ;;  %v2148_v33 = vmul.f32 %v2135_v62, %v8090_v44 }
 0x189   :  { %v2380_v52 = vadd.f32 %v2379_v63, %v2378_v50  ;;  %v2403_v13 = vrot.slane %v2402_v24, 4  ;;  %v2213_v22 = vrot.slane %v2212_v40, 2  ;;  %v2220_v23 = vrot.slane %v2219_v29, 2 }
 0x18a   :  { %v2149_v53 = vmul.f32 %v2127_v1, %v8091_v0  ;;  %v2497_v48 = vsel %vm1851_vm2, %v2387_v34, %v2373_v32  ;;  %v2397_v18 = vadd.f32 %v2396_v38, %v2395_v21  ;;  %v2224_v49 = vsel %vm1543_vm0, %v2148_v33, 0.0 }
 0x18b   :  { %v2504_v8 = vsel %vm1851_vm2, %v2394_v43, %v2380_v52  ;;  %v2404_v51 = vadd.f32 %v2403_v13, %v2402_v24  ;;  %v2214_v57 = vadd.f32 %v2213_v22, %v2212_v40  ;;  %v2221_v26 = vadd.f32 %v2220_v23, %v2219_v29  ;;  %v6384_v33 = vpop.permute.xlu1 %2326 }
 0x18c   :  { %v2231_v50 = vsel %vm1543_vm0, %v2149_v53, 0.0  ;;  %v2398_v25 = vrot.slane %v2397_v18, 2  ;;  %v2225_v55 = vrot.slane %v2224_v49, 4  ;;  %v2338_v43 = vsel %vm2334_vm15, %v6310_v4, %v6308_v31  ;;  %v6386_v53 = vpop.permute.xlu0 %2310 }
 0x18d   :  { %v2405_v9 = vrot.slane %v2404_v51, 2  ;;  %v2232_v59 = vrot.slane %v2231_v50, 4  ;;  %v2215_v61 = vrot.slane %v2214_v57, 1  ;;  %v2222_v34 = vrot.slane %v2221_v26, 1 }
 0x18e   :  { %v2346_v63 = vsel %vm2334_vm15, %v6308_v31, %v6310_v4  ;;  %v2399_v1 = vadd.f32 %v2398_v25, %v2397_v18  ;;  %v2226_v40 = vadd.f32 %v2225_v55, %v2224_v49  ;;  %v2358_v52 = vmul.f32 %v2338_v43, %v5630_v12 }
 0x18f   :  { %v2406_v62 = vadd.f32 %v2405_v9, %v2404_v51  ;;  %v2233_v29 = vadd.f32 %v2232_v59, %v2231_v50  ;;  %v2216_v21 = vadd.f32 %v2215_v61, %v2214_v57  ;;  %v2223_v24 = vadd.f32 %v2222_v34, %v2221_v26 }
 0x190   :  { %v2357_v32 = vmul.f32 %v2346_v63, %v5627_v36  ;;  %v2400_v38 = vrot.slane %v2399_v1, 1  ;;  %v2227_v22 = vrot.slane %v2226_v40, 2  ;;  %v2416_v51 = vsel %vm1543_vm0, %v2358_v52, 0.0 }
 0x191   :  { %v2407_v13 = vrot.slane %v2406_v62, 1  ;;  %v2234_v23 = vrot.slane %v2233_v29, 2  ;;  %v2287_v31 = vsel %vm1857_vm6, %v2216_v21, %v6331_v28  ;;  %v2294_v4 = vsel %vm1857_vm6, %v2223_v24, %v6334_v42  ;;  %v6413_v21 = vpop.permute.xlu0 %2519 }
 0x192   :  { %v2409_v18 = vsel %vm1543_vm0, %v2357_v32, 0.0  ;;  %v2401_v57 = vadd.f32 %v2400_v38, %v2399_v1  ;;  %v2228_v49 = vadd.f32 %v2227_v22, %v2226_v40  ;;  %v2417_v9 = vrot.slane %v2416_v51, 4 }
 0x193   :  { %v2408_v26 = vadd.f32 %v2407_v13, %v2406_v62  ;;  %v2235_v50 = vadd.f32 %v2234_v23, %v2233_v29  ;;  %v2410_v25 = vrot.slane %v2409_v18, 4  ;;  %v2128_v28 = vsel %vm2121_vm12, %v6370_v11, %v6368_v30  ;;  %v6411_v29 = vpop.permute.xlu1 %2535 }
 0x194   :  { %v2498_v55 = vsel %vm1853_vm3, %v2401_v57, %v2497_v48  ;;  %v2229_v59 = vrot.slane %v2228_v49, 1  ;;  %v2418_v43 = vadd.f32 %v2417_v9, %v2416_v51  ;;  %v2549_v63 = vsel %vm2547_vm1, %v6318_v47, %v6348_v45 }
 0x195   :  { %v2505_v42 = vsel %vm1853_vm3, %v2408_v26, %v2504_v8  ;;  %v2236_v61 = vrot.slane %v2235_v50, 1  ;;  %v2411_v34 = vadd.f32 %v2410_v25, %v2409_v18  ;;  %v2557_v1 = vsel %vm2547_vm1, %v6348_v45, %v6318_v47 }
 0x196   :  { %v2230_v62 = vadd.f32 %v2229_v59, %v2228_v49  ;;  %v2566_v48 = vmul.f32 %v2557_v1, %v5618_v27  ;;  %v2567_v8 = vmul.f32 %v2549_v63, %v5621_v3  ;;  %v2419_v32 = vrot.slane %v2418_v43, 2  ;;  %v6444_v63 = vpop.permute.xlu0 %2103 }
 0x197   :  { %v2237_v40 = vadd.f32 %v2236_v61, %v2235_v50  ;;  %v2412_v24 = vrot.slane %v2411_v34, 2  ;;  %v2548_v52 = vsel %vm2547_vm1, %v6320_v20, %v6350_v46  ;;  %v2556_v47 = vsel %vm2547_vm1, %v6350_v46, %v6320_v20 }
 0x198   :  { %v6424_v45 = vsel %vm1859_vm7, %v2230_v62, %v2287_v31  ;;  %v2594_v13 = vsel %vm1543_vm0, %v2566_v48, 0.0  ;;  %v2601_v22 = vsel %vm1543_vm0, %v2567_v8, 0.0  ;;  %v2420_v18 = vadd.f32 %v2419_v32, %v2418_v43  ;;  %v6442_v43 = vpop.permute.xlu1 %2119 }
 0x199   :  { %v6427_v38 = vsel %vm1859_vm7, %v2237_v40, %v2294_v4  ;;  %v2413_v23 = vadd.f32 %v2412_v24, %v2411_v34  ;;  %v2595_v51 = vrot.slane %v2594_v13, 4  ;;  %v2602_v57 = vrot.slane %v2601_v22, 4 }
 0x19a   :  { %v2564_v26 = vmul.f32 %v2556_v47, %v5604_v15  ;;  %v2565_v49 = vmul.f32 %v2548_v52, %v5612_v39  ;;  %v2136_v20 = vsel %vm2121_vm12, %v6368_v30, %v6370_v11  ;;  %v2151_v46 = vmul.f32 %v2128_v28, %v8101_v6 }
 0x19b   :  { %v2414_v31 = vrot.slane %v2413_v23, 1  ;;  %v2421_v4 = vrot.slane %v2420_v18, 1  ;;  %v2596_v50 = vadd.f32 %v2595_v51, %v2594_v13  ;;  %v2603_v25 = vadd.f32 %v2602_v57, %v2601_v22 }
 0x19c   :  { %v2580_v9 = vsel %vm1543_vm0, %v2564_v26, 0.0  ;;  %v2587_v59 = vsel %vm1543_vm0, %v2565_v49, 0.0  ;;  %v2150_v61 = vmul.f32 %v2136_v20, %v8100_v56  ;;  %v2245_v34 = vsel %vm1543_vm0, %v2151_v46, 0.0 }
 0x19d   :  { %v2415_v1 = vadd.f32 %v2414_v31, %v2413_v23  ;;  %v2422_v30 = vadd.f32 %v2421_v4, %v2420_v18  ;;  %v2597_v11 = vrot.slane %v2596_v50, 2  ;;  %v2604_v28 = vrot.slane %v2603_v25, 2  ;;  %v6461_v31 = vpop.permute.xlu1 %2328  ;;  %v6463_v4 = vpop.permute.xlu0 %2312 }
 0x19e   :  { %v2581_v62 = vrot.slane %v2580_v9, 4  ;;  %v2588_v40 = vrot.slane %v2587_v59, 4  ;;  %v2238_v48 = vsel %vm1543_vm0, %v2150_v61, 0.0  ;;  %v2246_v8 = vrot.slane %v2245_v34, 4 }
 0x19f   :  { %v6448_v24 = vsel %vm1855_vm4, %v2415_v1, %v2498_v55  ;;  %v6451_v32 = vsel %vm1855_vm4, %v2422_v30, %v2505_v42  ;;  %v2598_v52 = vadd.f32 %v2597_v11, %v2596_v50  ;;  %v2605_v47 = vadd.f32 %v2604_v28, %v2603_v25 }
 0x1a0   :  { %v2582_v13 = vadd.f32 %v2581_v62, %v2580_v9  ;;  %v2589_v22 = vadd.f32 %v2588_v40, %v2587_v59  ;;  %v2239_v51 = vrot.slane %v2238_v48, 4  ;;  %v2247_v23 = vadd.f32 %v2246_v8, %v2245_v34 }
 0x1a1   :  { %v2599_v18 = vrot.slane %v2598_v52, 1  ;;  %v2606_v57 = vrot.slane %v2605_v47, 1  ;;  %v2339_v26 = vsel %vm2334_vm15, %v6386_v53, %v6384_v33  ;;  %v2347_v55 = vsel %vm2334_vm15, %v6384_v33, %v6386_v53 }
 0x1a2   :  { %v2583_v42 = vrot.slane %v2582_v13, 2  ;;  %v2590_v49 = vrot.slane %v2589_v22, 2  ;;  %v2240_v20 = vadd.f32 %v2239_v51, %v2238_v48  ;;  %v2248_v46 = vrot.slane %v2247_v23, 2 }
 0x1a3   :  { %v2600_v50 = vadd.f32 %v2599_v18, %v2598_v52  ;;  %v2607_v25 = vadd.f32 %v2606_v57, %v2605_v47  ;;  %v2359_v9 = vmul.f32 %v2347_v55, %v8093_v35  ;;  %v2360_v59 = vmul.f32 %v2339_v26, %v8094_v7  ;;  %v6479_v26 = vpop.permute.xlu1 %2537  ;;  %v6481_v55 = vpop.permute.xlu0 %2521 }
 0x1a4   :  { %v2584_v61 = vadd.f32 %v2583_v42, %v2582_v13  ;;  %v2591_v34 = vadd.f32 %v2590_v49, %v2589_v22  ;;  %v2241_v1 = vrot.slane %v2240_v20, 2  ;;  %v2249_v30 = vadd.f32 %v2248_v46, %v2247_v23 }
 0x1a5   :  { %v2423_v33 = vsel %vm1543_vm0, %v2359_v9, 0.0  ;;  %v2430_v53 = vsel %vm1543_vm0, %v2360_v59, 0.0  ;;  %v2550_v11 = vsel %vm2547_vm1, %v6413_v21, %v6411_v29  ;;  %v2558_v28 = vsel %vm2547_vm1, %v6411_v29, %v6413_v21 }
 0x1a6   :  { %v2585_v62 = vrot.slane %v2584_v61, 1  ;;  %v2592_v40 = vrot.slane %v2591_v34, 1  ;;  %v2242_v48 = vadd.f32 %v2241_v1, %v2240_v20  ;;  %v2250_v8 = vrot.slane %v2249_v30, 1 }
 0x1a7   :  { %v2424_v52 = vrot.slane %v2423_v33, 4  ;;  %v2431_v47 = vrot.slane %v2430_v53, 4  ;;  %v2568_v13 = vmul.f32 %v2558_v28, %v8088_v10  ;;  %v2569_v22 = vmul.f32 %v2550_v11, %v8089_v19  ;;  %v8125_v19 = vld [vmem:[#allocation9_spill] sm:$0xff] }
 0x1a8   :  { %v2586_v51 = vadd.f32 %v2585_v62, %v2584_v61  ;;  %v2593_v23 = vadd.f32 %v2592_v40, %v2591_v34  ;;  %v2243_v18 = vrot.slane %v2242_v48, 1  ;;  %v2251_v57 = vadd.f32 %v2250_v8, %v2249_v30  ;;  %v8104_v8 = vld [vmem:[#allocation3_spill] sm:$0xff] }
 0x1a9   :  { %v2425_v42 = vadd.f32 %v2424_v52, %v2423_v33  ;;  %v2432_v29 = vadd.f32 %v2431_v47, %v2430_v53  ;;  %v2608_v21 = vsel %vm1543_vm0, %v2568_v13, 0.0  ;;  %v2615_v49 = vsel %vm1543_vm0, %v2569_v22, 0.0  ;;  %v8105_v52 = vld [vmem:[#allocation30_spill] sm:$0xff]  ;;  %v6510_v13 = vpop.permute.xlu1 %2730  ;;  %v6512_v22 = vpop.permute.xlu0 %2728 }
 0x1aa   :  { %v2710_v20 = vsel %vm1851_vm2, %v2600_v50, %v2586_v51  ;;  %v2717_v46 = vsel %vm1851_vm2, %v2607_v25, %v2593_v23  ;;  %v2244_v9 = vadd.f32 %v2243_v18, %v2242_v48  ;;  %v6489_v59 = vsel %vm1861_vm8, %v2251_v57, %v6427_v38 }
 0x1ab   :  { %v2426_v61 = vrot.slane %v2425_v42, 2  ;;  %v2433_v34 = vrot.slane %v2432_v29, 2  ;;  %v2609_v1 = vrot.slane %v2608_v21, 4  ;;  %v2616_v30 = vrot.slane %v2615_v49, 4 }
 0x1ac   :  { %v6495_v11 = vsel %vm1861_vm8, %v2244_v9, %v6424_v45  ;;  %v2129_v50 = vsel %vm2121_vm12, %v6444_v63, %v6442_v43  ;;  %v2137_v40 = vsel %vm2121_vm12, %v6442_v43, %v6444_v63  ;;  %v3186_v45 = vmax.f32 %v8104_v8, %v6017_v58  ;;  %v8109_v9 = vld [vmem:[#allocation27_spill] sm:$0xff]  ;;  %v8113_v8 = vld [vmem:[#allocation33_spill] sm:$0xff] }
 0x1ad   :  { %v2427_v25 = vadd.f32 %v2426_v61, %v2425_v42  ;;  %v2434_v38 = vadd.f32 %v2433_v34, %v2432_v29  ;;  %v2610_v28 = vadd.f32 %v2609_v1, %v2608_v21  ;;  %v2617_v62 = vadd.f32 %v2616_v30, %v2615_v49  ;;  %v8107_v29 = vld [vmem:[#allocation31_spill] sm:$0xff] }
 0x1ae   :  { %v2153_v48 = vmul.f32 %v2129_v50, %v8098_v2  ;;  %v3187_v47 = vmax.f32 %v8105_v52, %v6021_v54  ;;  %v2152_v42 = vmul.f32 %v2137_v40, %v8097_v37  ;;  %v8106_v63 = vrot.slane %v6017_v58, 1  ;;  %v8111_v40 = vld [vmem:[#allocation29_spill] sm:$0xff] }
 0x1af   :  { %v2428_v51 = vrot.slane %v2427_v25, 1  ;;  %v2435_v23 = vrot.slane %v2434_v38, 1  ;;  %v2611_v18 = vrot.slane %v2610_v28, 2  ;;  %v2618_v57 = vrot.slane %v2617_v62, 2  ;;  %v8123_v37 = vld [vmem:[#allocation5_spill] sm:$0xff] }
 0x1b0   :  { %v2259_v43 = vsel %vm1543_vm0, %v2153_v48, 0.0  ;;  %v3188_v21 = vmax.f32 %v8107_v29, %v8106_v63  ;;  %v8108_v49 = vrot.slane %v6021_v54, 1  ;;  %v2252_v53 = vsel %vm1543_vm0, %v2152_v42, 0.0  ;;  %v8117_v42 = vld [vmem:[#allocation34_spill] sm:$0xff] }
 0x1b1   :  { %v2429_v34 = vadd.f32 %v2428_v51, %v2427_v25  ;;  %v2436_v1 = vadd.f32 %v2435_v23, %v2434_v38  ;;  %v2612_v30 = vadd.f32 %v2611_v18, %v2610_v28  ;;  %v2619_v50 = vadd.f32 %v2618_v57, %v2617_v62  ;;  %v8115_v23 = vld [vmem:[#allocation21_spill] sm:$0xff] }
 0x1b2   :  { %v3189_v61 = vmax.f32 %v8109_v9, %v8108_v49  ;;  %v2260_v33 = vrot.slane %v2259_v43, 4  ;;  %v3190_v52 = vmax.f32 %v8111_v40, %v8110_v16  ;;  %v8112_v48 = vrot.slane %v6021_v54, 2 }
 0x1b3   :  { %v6531_v63 = vsel %vm1857_vm6, %v2429_v34, %v6448_v24  ;;  %v6535_v25 = vsel %vm1857_vm6, %v2436_v1, %v6451_v32  ;;  %v2613_v38 = vrot.slane %v2612_v30, 1  ;;  %v2620_v28 = vrot.slane %v2619_v50, 1  ;;  %v6544_v24 = vpop.permute.xlu1 %2746  ;;  %v6546_v34 = vpop.permute.xlu0 %2744 }
 0x1b4   :  { %v3191_v2 = vmax.f32 %v8113_v8, %v8112_v48  ;;  %vm2267_vm5 = vcmp.ge.s32.totalorder %v5778_v5, 3  ;;  %v2253_v62 = vrot.slane %v2252_v53, 4  ;;  %v2261_v51 = vadd.f32 %v2260_v33, %v2259_v43  ;;  %v8119_v8 = vld [vmem:[#allocation13_spill] sm:$0xff]  ;;  %v8121_v43 = vld [vmem:[#allocation12_spill] sm:$0xff] }
 0x1b5   :  { %v8114_v16 = vrot.slane %v6017_v58, 3  ;;  %v8116_v57 = vrot.slane %v6021_v54, 3  ;;  %v2614_v32 = vadd.f32 %v2613_v38, %v2612_v30  ;;  %v2621_v1 = vadd.f32 %v2620_v28, %v2619_v50 }
 0x1b6   :  { %v8118_v48 = vrot.slane %v6017_v58, 4  ;;  %v8120_v33 = vrot.slane %v6021_v54, 4  ;;  %v2254_v29 = vadd.f32 %v2253_v62, %v2252_v53  ;;  %v6567_v38 = vmax.f32 %v3186_v45, %v6246_v60 }
 0x1b7   :  { %v3192_v18 = vmax.f32 %v8115_v23, %v8114_v16  ;;  %v3193_v49 = vmax.f32 %v8117_v42, %v8116_v57  ;;  %v2262_v16 = vrot.slane %v2261_v51, 2  ;;  %v8122_v23 = vrot.slane %v6017_v58, 5 }
 0x1b8   :  { %v3194_v40 = vmax.f32 %v8119_v8, %v8118_v48  ;;  %v3195_v9 = vmax.f32 %v8121_v43, %v8120_v33  ;;  %v8124_v42 = vrot.slane %v6021_v54, 5  ;;  %v6561_v30 = vsel %vm1853_vm3, %v2614_v32, %v2710_v20  ;;  %8126 = vst [vmem:[#allocation19_spill] sm:$0xff] %v6567_v38 }
 0x1b9   :  { %v3196_v57 = vmax.f32 %v8123_v37, %v8122_v23  ;;  %v6564_v50 = vsel %vm1853_vm3, %v2621_v1, %v2717_v46  ;;  %v6570_v53 = vmax.f32 %v3187_v47, %v6250_v17  ;;  %v2255_v28 = vrot.slane %v2254_v29, 2 }
 0x1ba   :  { %v3197_v10 = vmax.f32 %v8125_v19, %v8124_v42  ;;  %v2263_v62 = vadd.f32 %v2262_v16, %v2261_v51  ;;  %v8127_v23 = vrot.slane %v6246_v60, 1  ;;  %v8128_v33 = vrot.slane %v6250_v17, 1 }
 0x1bb   :  { %v8129_v20 = vrot.slane %v6246_v60, 2  ;;  %v8130_v46 = vrot.slane %v6250_v17, 2  ;;  %v8131_v45 = vrot.slane %v6246_v60, 3  ;;  %v8132_v47 = vrot.slane %v6250_v17, 3 }
 0x1bc   :  { %v3236_v48 = vmax.f32 %v3188_v21, %v8127_v23  ;;  %v3237_v42 = vmax.f32 %v3189_v61, %v8128_v33  ;;  %v2256_v43 = vadd.f32 %v2255_v28, %v2254_v29  ;;  %v2264_v51 = vrot.slane %v2263_v62, 1  ;;  %v6588_v33 = vpop.permute.xlu1 %2330 }
 0x1bd   :  { %v3238_v32 = vmax.f32 %v3190_v52, %v8129_v20  ;;  %v3239_v1 = vmax.f32 %v3191_v2, %v8130_v46  ;;  %v3240_v19 = vmax.f32 %v3192_v18, %v8131_v45  ;;  %v3241_v37 = vmax.f32 %v3193_v49, %v8132_v47  ;;  %v6590_v52 = vpop.permute.xlu0 %2314 }
 0x1be   :  { %v8133_v16 = vrot.slane %v6246_v60, 4  ;;  %v8134_v23 = vrot.slane %v6250_v17, 4  ;;  %v8135_v2 = vrot.slane %v6246_v60, 5  ;;  %v8136_v18 = vrot.slane %v6250_v17, 5 }
 0x1bf   :  { %v2340_v29 = vsel %vm2334_vm15, %v6463_v4, %v6461_v31  ;;  %v2265_v49 = vadd.f32 %v2264_v51, %v2263_v62  ;;  %v2559_v47 = vsel %vm2547_vm1, %v6479_v26, %v6481_v55  ;;  %vm2266_vm10 = vcmp.ge.s32.totalorder %v8075_v14, 3 }
 0x1c0   :  { %v3242_v21 = vmax.f32 %v3194_v40, %v8133_v16  ;;  %v3243_v61 = vmax.f32 %v3195_v9, %v8134_v23  ;;  %v3244_v20 = vmax.f32 %v3196_v57, %v8135_v2  ;;  %v3245_v46 = vmax.f32 %v3197_v10, %v8136_v18 }
 0x1c1   :  { %v2348_v9 = vsel %vm2334_vm15, %v6461_v31, %v6463_v4  ;;  %v2257_v40 = vrot.slane %v2256_v43, 1  ;;  %v2362_v45 = vmul.f32 %v2340_v29, %v8091_v0  ;;  %v2551_v10 = vsel %vm2547_vm1, %v6481_v55, %v6479_v26 }
 0x1c2   :  { %v2361_v28 = vmul.f32 %v2348_v9, %v8090_v44  ;;  %v6619_v31 = vsel %vm2334_vm15, %v6590_v52, %v6588_v33  ;;  %v2297_v51 = vsel %vm1863_vm9, %v2265_v49, %v6489_v59  ;;  %vm2760_vm11 = vcmp.lt.s32.totalorder %v5616_v41, 6 }
 0x1c3   :  { %v2258_v62 = vadd.f32 %v2257_v40, %v2256_v43  ;;  %v6628_v23 = vsel %vm2267_vm5, %v2297_v51, -1e+30  ;;  %v2444_v18 = vsel %vm1543_vm0, %v2362_v45, 0.0  ;;  %vm2973_vm12 = vcmp.lt.s32.totalorder %v5616_v41, 7 }
 0x1c4   :  { %v2437_v26 = vsel %vm1543_vm0, %v2361_v28, 0.0  ;;  %v3253_v2 = vrot.slane %v6628_v23, 1  ;;  %v3255_v43 = vrot.slane %v6628_v23, 2  ;;  %v3257_v29 = vrot.slane %v6628_v23, 3 }
 0x1c5   :  { %v2290_v55 = vsel %vm1863_vm9, %v2258_v62, %v6495_v11  ;;  %v3259_v9 = vrot.slane %v6628_v23, 4  ;;  %v3261_v40 = vrot.slane %v6628_v23, 5  ;;  %v2438_v16 = vrot.slane %v2437_v26, 4 }
 0x1c6   :  { %v6637_v59 = vsel %vm2266_vm10, %v2290_v55, -1e+30  ;;  %v2445_v45 = vrot.slane %v2444_v18, 4  ;;  %v2570_v55 = vmul.f32 %v2559_v47, %v5627_v36  ;;  %v6654_v54 = vmax.f32 %v3237_v42, %v3253_v2 }
 0x1c7   :  { %v3252_v49 = vrot.slane %v6637_v59, 1  ;;  %v3254_v28 = vrot.slane %v6637_v59, 2  ;;  %v3256_v11 = vrot.slane %v6637_v59, 3  ;;  %v3258_v62 = vrot.slane %v6637_v59, 4 }
 0x1c8   :  { %v3260_v51 = vrot.slane %v6637_v59, 5  ;;  %v6658_v5 = vmax.f32 %v3239_v1, %v3255_v43  ;;  %v6662_v44 = vmax.f32 %v3241_v37, %v3257_v29  ;;  %v6666_v47 = vmax.f32 %v3243_v61, %v3259_v9 }
 0x1c9   :  { %v6652_v8 = vmax.f32 %v3236_v48, %v3252_v49  ;;  %v6656_v58 = vmax.f32 %v3238_v32, %v3254_v28  ;;  %v6660_v14 = vmax.f32 %v3240_v19, %v3256_v11  ;;  %v6664_v0 = vmax.f32 %v3242_v21, %v3258_v62 }
 0x1ca   :  { %v6668_v4 = vmax.f32 %v3244_v20, %v3260_v51  ;;  %v6670_v38 = vmax.f32 %v3245_v46, %v3261_v40  ;;  %v2439_v48 = vadd.f32 %v2438_v16, %v2437_v26  ;;  %v2446_v49 = vadd.f32 %v2445_v45, %v2444_v18  ;;  %v6688_v16 = vpop.permute.xlu1 %2539  ;;  %v2524_v40 = vpop.permute.xlu0 %2523 }
 0x1cb   :  { %v2571_v42 = vmul.f32 %v2551_v10, %v5630_v12  ;;  %v2622_v32 = vsel %vm1543_vm0, %v2570_v55, 0.0  ;;  %v2762_v19 = vsel %vm2760_vm11, %v6510_v13, %v6544_v24  ;;  %v2770_v37 = vsel %vm2760_vm11, %v6544_v24, %v6510_v13 }
 0x1cc   :  { %v2623_v1 = vrot.slane %v2622_v32, 4  ;;  %v2761_v21 = vsel %vm2760_vm11, %v6512_v22, %v6546_v34  ;;  %v2440_v61 = vrot.slane %v2439_v48, 2  ;;  %v2447_v20 = vrot.slane %v2446_v49, 2 }
 0x1cd   :  { %v2629_v46 = vsel %vm1543_vm0, %v2571_v42, 0.0  ;;  %v2779_v10 = vmul.f32 %v2770_v37, %v5618_v27  ;;  %v2780_v43 = vmul.f32 %v2762_v19, %v5621_v3  ;;  %v2769_v13 = vsel %vm2760_vm11, %v6546_v34, %v6512_v22 }
 0x1ce   :  { %v2624_v26 = vadd.f32 %v2623_v1, %v2622_v32  ;;  %v2630_v2 = vrot.slane %v2629_v46, 4  ;;  %v2441_v24 = vadd.f32 %v2440_v61, %v2439_v48  ;;  %v2448_v18 = vadd.f32 %v2447_v20, %v2446_v49  ;;  %v2749_v20 = vpop.permute.xlu1 %2748 }
 0x1cf   :  { %v2807_v29 = vsel %vm1543_vm0, %v2779_v10, 0.0  ;;  %v2777_v9 = vmul.f32 %v2769_v13, %v5604_v15  ;;  %v2814_v51 = vsel %vm1543_vm0, %v2780_v43, 0.0  ;;  %v2778_v32 = vmul.f32 %v2761_v21, %v5612_v39 }
 0x1d0   :  { %v2625_v28 = vrot.slane %v2624_v26, 2  ;;  %v2631_v11 = vadd.f32 %v2630_v2, %v2629_v46  ;;  %v2808_v62 = vrot.slane %v2807_v29, 4  ;;  %v2442_v45 = vrot.slane %v2441_v24, 1 }
 0x1d1   :  { %v2449_v55 = vrot.slane %v2448_v18, 1  ;;  %v2815_v42 = vrot.slane %v2814_v51, 4  ;;  %v2793_v34 = vsel %vm1543_vm0, %v2777_v9, 0.0  ;;  %v2800_v43 = vsel %vm1543_vm0, %v2778_v32, 0.0 }
 0x1d2   :  { %v2626_v1 = vadd.f32 %v2625_v28, %v2624_v26  ;;  %v2632_v19 = vrot.slane %v2631_v11, 2  ;;  %v2809_v22 = vadd.f32 %v2808_v62, %v2807_v29  ;;  %v2443_v48 = vadd.f32 %v2442_v45, %v2441_v24  ;;  %v2733_v24 = vpop.permute.xlu0 %2732 }
 0x1d3   :  { %v2450_v49 = vadd.f32 %v2449_v55, %v2448_v18  ;;  %v2816_v37 = vadd.f32 %v2815_v42, %v2814_v51  ;;  %v2794_v61 = vrot.slane %v2793_v34, 4  ;;  %v2801_v62 = vrot.slane %v2800_v43, 4 }
 0x1d4   :  { %v2627_v10 = vrot.slane %v2626_v1, 1  ;;  %v2633_v46 = vadd.f32 %v2632_v19, %v2631_v11  ;;  %v2810_v2 = vrot.slane %v2809_v22, 2  ;;  %v6703_v13 = vsel %vm1859_vm7, %v2443_v48, %v6531_v63  ;;  %v2333_v48 = vpop.permute.xlu1 %2332 }
 0x1d5   :  { %v6707_v21 = vsel %vm1859_vm7, %v2450_v49, %v6535_v25  ;;  %v2817_v26 = vrot.slane %v2816_v37, 2  ;;  %v2795_v29 = vadd.f32 %v2794_v61, %v2793_v34  ;;  %v2349_v45 = vsel %vm2334_vm15, %v6588_v33, %v6590_v52 }
 0x1d6   :  { %v2628_v18 = vadd.f32 %v2627_v10, %v2626_v1  ;;  %v2634_v9 = vrot.slane %v2633_v46, 1  ;;  %v2811_v28 = vadd.f32 %v2810_v2, %v2809_v22  ;;  %v2364_v63 = vmul.f32 %v6619_v31, %v8101_v6 }
 0x1d7   :  { %v2818_v51 = vadd.f32 %v2817_v26, %v2816_v37  ;;  %v2796_v11 = vrot.slane %v2795_v29, 2  ;;  %v2802_v32 = vadd.f32 %v2801_v62, %v2800_v43  ;;  %v2363_v22 = vmul.f32 %v2349_v45, %v8100_v56 }
 0x1d8   :  { %v2635_v55 = vadd.f32 %v2634_v9, %v2633_v46  ;;  %v6717_v25 = vsel %vm1855_vm4, %v2628_v18, %v6561_v30  ;;  %v2812_v42 = vrot.slane %v2811_v28, 1  ;;  %v2458_v34 = vsel %vm1543_vm0, %v2364_v63, 0.0  ;;  %v2317_v46 = vpop.permute.xlu0 %2316 }
 0x1d9   :  { %v2819_v1 = vrot.slane %v2818_v51, 1  ;;  %v2797_v19 = vadd.f32 %v2796_v11, %v2795_v29  ;;  %v2803_v31 = vrot.slane %v2802_v32, 2  ;;  %v2459_v49 = vrot.slane %v2458_v34, 4 }
 0x1da   :  { %v6723_v33 = vsel %vm1855_vm4, %v2635_v55, %v6564_v50  ;;  %v2813_v52 = vadd.f32 %v2812_v42, %v2811_v28  ;;  %v2451_v30 = vsel %vm1543_vm0, %v2363_v22, 0.0  ;;  %v2552_v10 = vsel %vm2547_vm1, %v2524_v40, %v6688_v16 }
 0x1db   :  { %v2820_v37 = vadd.f32 %v2819_v1, %v2818_v51  ;;  %v2798_v61 = vrot.slane %v2797_v19, 1  ;;  %v2804_v2 = vadd.f32 %v2803_v31, %v2802_v32  ;;  %v2452_v43 = vrot.slane %v2451_v30, 4  ;;  %v2542_v32 = vpop.permute.xlu1 %2541 }
 0x1dc   :  { %v2460_v26 = vadd.f32 %v2459_v49, %v2458_v34  ;;  %v2560_v50 = vsel %vm2547_vm1, %v6688_v16, %v2524_v40  ;;  %v2573_v9 = vmul.f32 %v2552_v10, %v8094_v7  ;;  %v2763_v28 = vsel %vm2760_vm11, %v2733_v24, %v2749_v20  ;;  %v8137_v40 = vld [vmem:[#allocation18_spill] sm:$0xff] }
 0x1dd   :  { %v2799_v29 = vadd.f32 %v2798_v61, %v2797_v19  ;;  %v2572_v18 = vmul.f32 %v2560_v50, %v8093_v35  ;;  %v2805_v62 = vrot.slane %v2804_v2, 1  ;;  %v2453_v51 = vadd.f32 %v2452_v43, %v2451_v30  ;;  %v8138_v61 = vld [vmem:[#allocation20_spill] sm:$0xff] }
 0x1de   :  { %v2461_v11 = vrot.slane %v2460_v26, 2  ;;  %v2771_v45 = vsel %vm2760_vm11, %v2749_v20, %v2733_v24  ;;  %v2643_v16 = vsel %vm1543_vm0, %v2573_v9, 0.0  ;;  %v2782_v30 = vmul.f32 %v2763_v28, %v8138_v61  ;;  %v2526_v24 = vpop.permute.xlu0 %2525 }
 0x1df   :  { %v6739_v63 = vsel %vm1851_vm2, %v2813_v52, %v2799_v29  ;;  %v2636_v55 = vsel %vm1543_vm0, %v2572_v18, 0.0  ;;  %v2781_v42 = vmul.f32 %v2771_v45, %v8137_v40  ;;  %v2806_v1 = vadd.f32 %v2805_v62, %v2804_v2 }
 0x1e0   :  { %v2454_v19 = vrot.slane %v2453_v51, 2  ;;  %v2462_v22 = vadd.f32 %v2461_v11, %v2460_v26  ;;  %v2637_v34 = vrot.slane %v2636_v55, 4  ;;  %v2644_v49 = vrot.slane %v2643_v16, 4 }
 0x1e1   :  { %v2821_v20 = vsel %vm1543_vm0, %v2781_v42, 0.0  ;;  %v2930_v52 = vsel %vm1851_vm2, %v2820_v37, %v2806_v1  ;;  %v2828_v26 = vsel %vm1543_vm0, %v2782_v30, 0.0  ;;  %v2342_v42 = vsel %vm2334_vm15, %v2317_v46, %v2333_v48 }
 0x1e2   :  { %v2455_v10 = vadd.f32 %v2454_v19, %v2453_v51  ;;  %v2463_v43 = vrot.slane %v2462_v22, 1  ;;  %v2638_v50 = vadd.f32 %v2637_v34, %v2636_v55  ;;  %v2645_v18 = vadd.f32 %v2644_v49, %v2643_v16  ;;  %v2751_v51 = vpop.permute.xlu1 %2750  ;;  %v8139_v49 = vld [vmem:[#allocation26_spill] sm:$0xff] }
 0x1e3   :  { %v2822_v2 = vrot.slane %v2821_v20, 4  ;;  %v2829_v45 = vrot.slane %v2828_v26, 4  ;;  %v2350_v37 = vsel %vm2334_vm15, %v2333_v48, %v2317_v46  ;;  %v2553_v46 = vsel %vm2547_vm1, %v2526_v24, %v2542_v32 }
 0x1e4   :  { %v2456_v9 = vrot.slane %v2455_v10, 1  ;;  %v2464_v62 = vadd.f32 %v2463_v43, %v2462_v22  ;;  %v2639_v11 = vrot.slane %v2638_v50, 2  ;;  %v2646_v31 = vrot.slane %v2645_v18, 2  ;;  %v8140_v43 = vld [vmem:[#allocation28_spill] sm:$0xff] }
 0x1e5   :  { %v2823_v28 = vadd.f32 %v2822_v2, %v2821_v20  ;;  %v2830_v19 = vadd.f32 %v2829_v45, %v2828_v26  ;;  %v2365_v30 = vmul.f32 %v2350_v37, %v8139_v49  ;;  %v2366_v20 = vmul.f32 %v2342_v42, %v8140_v43  ;;  %v2735_v2 = vpop.permute.xlu0 %2734  ;;  %v8141_v42 = vld [vmem:[#allocation25_spill] sm:$0xff] }
 0x1e6   :  { %v2457_v55 = vadd.f32 %v2456_v9, %v2455_v10  ;;  %v6756_v16 = vsel %vm1861_vm8, %v2464_v62, %v6707_v21  ;;  %v2640_v1 = vadd.f32 %v2639_v11, %v2638_v50  ;;  %v2647_v34 = vadd.f32 %v2646_v31, %v2645_v18 }
 0x1e7   :  { %v2824_v22 = vrot.slane %v2823_v28, 2  ;;  %v2831_v48 = vrot.slane %v2830_v19, 2  ;;  %v2465_v50 = vsel %vm1543_vm0, %v2365_v30, 0.0  ;;  %v2472_v31 = vsel %vm1543_vm0, %v2366_v20, 0.0 }
 0x1e8   :  { %v2502_v29 = vsel %vm1861_vm8, %v2457_v55, %v6703_v13  ;;  %v2641_v57 = vrot.slane %v2640_v1, 1  ;;  %v2648_v10 = vrot.slane %v2647_v34, 1  ;;  %v2466_v9 = vrot.slane %v2465_v50, 4  ;;  %v2944_v55 = vpop.permute.xlu1 %2943 }
 0x1e9   :  { %v2832_v26 = vadd.f32 %v2831_v48, %v2830_v19  ;;  %v2473_v62 = vrot.slane %v2472_v31, 4  ;;  %v2825_v45 = vadd.f32 %v2824_v22, %v2823_v28  ;;  %v2561_v13 = vsel %vm2547_vm1, %v2542_v32, %v2526_v24  ;;  %v8142_v28 = vld [vmem:[#allocation22_spill] sm:$0xff]  ;;  %v6781_v24 = vpop.permute.xlu0 %2941 }
 0x1ea   :  { %v2642_v18 = vadd.f32 %v2641_v57, %v2640_v1  ;;  %v2649_v11 = vadd.f32 %v2648_v10, %v2647_v34  ;;  %v2575_v37 = vmul.f32 %v2553_v46, %v8141_v42  ;;  %v2467_v30 = vadd.f32 %v2466_v9, %v2465_v50 }
 0x1eb   :  { %v2833_v17 = vrot.slane %v2832_v26, 1  ;;  %v2474_v60 = vadd.f32 %v2473_v62, %v2472_v31  ;;  %v2574_v19 = vmul.f32 %v2561_v13, %v8142_v28  ;;  %v2826_v48 = vrot.slane %v2825_v45, 1  ;;  %v8143_v13 = vld [vmem:[#allocation23_spill] sm:$0xff] }
 0x1ec   :  { %v6772_v21 = vsel %vm1857_vm6, %v2642_v18, %v6717_v25  ;;  %v6777_v1 = vsel %vm1857_vm6, %v2649_v11, %v6723_v33  ;;  %v2657_v32 = vsel %vm1543_vm0, %v2575_v37, 0.0  ;;  %v2468_v22 = vrot.slane %v2467_v30, 2  ;;  %v2960_v11 = vpop.permute.xlu1 %2959 }
 0x1ed   :  { %v2834_v34 = vadd.f32 %v2833_v17, %v2832_v26  ;;  %v2475_v20 = vrot.slane %v2474_v60, 2  ;;  %v2658_v25 = vrot.slane %v2657_v32, 4  ;;  %v2650_v46 = vsel %vm1543_vm0, %v2574_v19, 0.0 }
 0x1ee   :  { %v2764_v10 = vsel %vm2760_vm11, %v2735_v2, %v2751_v51  ;;  %v2772_v33 = vsel %vm2760_vm11, %v2751_v51, %v2735_v2  ;;  %v2469_v31 = vadd.f32 %v2468_v22, %v2467_v30  ;;  %v2651_v9 = vrot.slane %v2650_v46, 4  ;;  %v8144_v51 = vld [vmem:[#allocation32_spill] sm:$0xff]  ;;  %v2958_v30 = vpop.permute.xlu0 %2957 }
 0x1ef   :  { %v6789_v50 = vsel %vm1853_vm3, %v2834_v34, %v2930_v52  ;;  %v2476_v18 = vadd.f32 %v2475_v20, %v2474_v60  ;;  %v2659_v62 = vadd.f32 %v2658_v25, %v2657_v32  ;;  %v2783_v17 = vmul.f32 %v2772_v33, %v5627_v36 }
 0x1f0   :  { %v2784_v26 = vmul.f32 %v2764_v10, %v5630_v12  ;;  %vm2479_vm13 = vcmp.ge.s32.totalorder %v8143_v13, 4  ;;  %v2470_v37 = vrot.slane %v2469_v31, 1  ;;  %v2652_v57 = vadd.f32 %v2651_v9, %v2650_v46 }
 0x1f1   :  { %v2477_v19 = vrot.slane %v2476_v18, 1  ;;  %vm2480_vm14 = vcmp.ge.s32.totalorder %v8144_v51, 4  ;;  %v2660_v52 = vrot.slane %v2659_v62, 2  ;;  %v2835_v2 = vsel %vm1543_vm0, %v2783_v17, 0.0 }
 0x1f2   :  { %v2842_v60 = vsel %vm1543_vm0, %v2784_v26, 0.0  ;;  %v2471_v32 = vadd.f32 %v2470_v37, %v2469_v31  ;;  %v2975_v22 = vsel %vm2973_vm12, %v2944_v55, %v2960_v11  ;;  %v2983_v20 = vsel %vm2973_vm12, %v2960_v11, %v2944_v55 }
 0x1f3   :  { %v2478_v34 = vadd.f32 %v2477_v19, %v2476_v18  ;;  %v2827_v10 = vadd.f32 %v2826_v48, %v2825_v45  ;;  %v2653_v46 = vrot.slane %v2652_v57, 2  ;;  %v2836_v33 = vrot.slane %v2835_v2, 4 }
 0x1f4   :  { %v2503_v9 = vsel %vm1863_vm9, %v2471_v32, %v2502_v29  ;;  %v2661_v26 = vadd.f32 %v2660_v52, %v2659_v62  ;;  %v2843_v12 = vrot.slane %v2842_v60, 4  ;;  %v2992_v55 = vmul.f32 %v2983_v20, %v5618_v27  ;;  %v2544_v32 = vpop.permute.xlu1 %2543  ;;  %v2528_v27 = vpop.permute.xlu0 %2527 }
 0x1f5   :  { %v2510_v17 = vsel %vm1863_vm9, %v2478_v34, %v6756_v16  ;;  %v6808_v31 = vsel %vm2479_vm13, %v2503_v9, -1e+30  ;;  %v2993_v45 = vmul.f32 %v2975_v22, %v5621_v3  ;;  %v2654_v22 = vadd.f32 %v2653_v46, %v2652_v57  ;;  %v8145_v9 = vld [vmem:[#allocation19_spill] sm:$0xff] }
 0x1f6   :  { %v6812_v18 = vsel %vm2480_vm14, %v2510_v17, -1e+30  ;;  %v3300_v48 = vrot.slane %v6808_v31, 1  ;;  %v3302_v16 = vrot.slane %v6808_v31, 2  ;;  %v3304_v11 = vrot.slane %v6808_v31, 3 }
 0x1f7   :  { %v3301_v29 = vrot.slane %v6812_v18, 1  ;;  %v3303_v62 = vrot.slane %v6812_v18, 2  ;;  %v3305_v37 = vrot.slane %v6812_v18, 3  ;;  %v3306_v19 = vrot.slane %v6808_v31, 4 }
 0x1f8   :  { %v3307_v52 = vrot.slane %v6812_v18, 4  ;;  %v3308_v3 = vrot.slane %v6808_v31, 5  ;;  %v3309_v34 = vrot.slane %v6812_v18, 5  ;;  %v2662_v20 = vrot.slane %v2661_v26, 1 }
 0x1f9   :  { %v8146_v17 = vmax.f32 %v8145_v9, %v6637_v59  ;;  %v8147_v51 = vmax.f32 %v6570_v53, %v6628_v23  ;;  %v2837_v36 = vadd.f32 %v2836_v33, %v2835_v2  ;;  %v2844_v28 = vadd.f32 %v2843_v12, %v2842_v60  ;;  %v2737_v33 = vpop.permute.xlu0 %2736 }
 0x1fa   :  { %v6839_v42 = vmax.f32 %v6652_v8, %v3300_v48  ;;  %v6842_v57 = vmax.f32 %v6654_v54, %v3301_v29  ;;  %v6845_v46 = vmax.f32 %v6656_v58, %v3302_v16  ;;  %v6848_v9 = vmax.f32 %v6658_v5, %v3303_v62 }
 0x1fb   :  { %v6830_v25 = vmax.f32 %v8146_v17, %v6808_v31  ;;  %v6836_v13 = vmax.f32 %v8147_v51, %v6812_v18  ;;  %v6851_v17 = vmax.f32 %v6660_v14, %v3304_v11  ;;  %v6854_v53 = vmax.f32 %v6662_v44, %v3305_v37 }
 0x1fc   :  { %v6857_v12 = vmax.f32 %v6664_v0, %v3306_v19  ;;  %v6860_v8 = vmax.f32 %v6666_v47, %v3307_v52  ;;  %v6864_v58 = vmax.f32 %v6668_v4, %v3308_v3  ;;  %v6867_v5 = vmax.f32 %v6670_v38, %v3309_v34  ;;  %v2753_v0 = vpop.permute.xlu1 %2752 }
 0x1fd   :  { %v2663_v51 = vadd.f32 %v2662_v20, %v2661_v26  ;;  %v2655_v14 = vrot.slane %v2654_v22, 1  ;;  %v2845_v2 = vrot.slane %v2844_v28, 2  ;;  %v3020_v44 = vsel %vm1543_vm0, %v2992_v55, 0.0 }
 0x1fe   :  { %v3027_v60 = vsel %vm1543_vm0, %v2993_v45, 0.0  ;;  %v6873_v47 = vsel %vm1853_vm3, %v2827_v10, %v6739_v63  ;;  %v3021_v48 = vrot.slane %v3020_v44, 4  ;;  %v2838_v29 = vrot.slane %v2837_v36, 2 }
 0x1ff   :  { %v6877_v4 = vsel %vm1859_vm7, %v2663_v51, %v6777_v1  ;;  %v3028_v38 = vrot.slane %v3027_v60, 4  ;;  %v2846_v26 = vadd.f32 %v2845_v2, %v2844_v28  ;;  %v2974_v55 = vsel %vm2973_vm12, %v6781_v24, %v2958_v30  ;;  %v2946_v2 = vpop.permute.xlu0 %2945 }
 0x200   :  { %v2982_v45 = vsel %vm2973_vm12, %v2958_v30, %v6781_v24  ;;  %v3022_v63 = vadd.f32 %v3021_v48, %v3020_v44  ;;  %v2656_v11 = vadd.f32 %v2655_v14, %v2654_v22  ;;  %v2991_v28 = vmul.f32 %v2974_v55, %v5612_v39  ;;  %v2962_v51 = vpop.permute.xlu1 %2961 }
 0x201   :  { %v3029_v10 = vadd.f32 %v3028_v38, %v3027_v60  ;;  %v2990_v62 = vmul.f32 %v2982_v45, %v5604_v15  ;;  %v2847_v37 = vrot.slane %v2846_v26, 1  ;;  %v2554_v3 = vsel %vm2547_vm1, %v2528_v27, %v2544_v32 }
 0x202   :  { %v2562_v24 = vsel %vm2547_vm1, %v2544_v32, %v2528_v27  ;;  %v2839_v30 = vadd.f32 %v2838_v29, %v2837_v36  ;;  %v3013_v15 = vsel %vm1543_vm0, %v2991_v28, 0.0  ;;  %v3023_v22 = vrot.slane %v3022_v63, 2 }
 0x203   :  { %v3030_v19 = vrot.slane %v3029_v10, 2  ;;  %v3006_v52 = vsel %vm1543_vm0, %v2990_v62, 0.0  ;;  %v2848_v34 = vadd.f32 %v2847_v37, %v2846_v26  ;;  %v3014_v44 = vrot.slane %v3013_v15, 4 }
 0x204   :  { %v3007_v20 = vrot.slane %v3006_v52, 4  ;;  %v2576_v39 = vmul.f32 %v2562_v24, %v8100_v56  ;;  %v2577_v36 = vmul.f32 %v2554_v3, %v8101_v6  ;;  %v6906_v55 = vsel %vm1859_vm7, %v2656_v11, %v6772_v21  ;;  %v2530_v21 = vpop.permute.xlu0 %2529 }
 0x205   :  { %v3031_v14 = vadd.f32 %v3030_v19, %v3029_v10  ;;  %v6899_v48 = vsel %vm1855_vm4, %v2848_v34, %v6789_v50  ;;  %v3015_v29 = vadd.f32 %v3014_v44, %v3013_v15  ;;  %v2765_v50 = vsel %vm2760_vm11, %v2737_v33, %v2753_v0 }
 0x206   :  { %v3008_v38 = vadd.f32 %v3007_v20, %v3006_v52  ;;  %v2664_v26 = vsel %vm1543_vm0, %v2576_v39, 0.0  ;;  %v2671_v10 = vsel %vm1543_vm0, %v2577_v36, 0.0  ;;  %v2840_v62 = vrot.slane %v2839_v30, 1  ;;  %v2546_v20 = vpop.permute.xlu1 %2545 }
 0x207   :  { %v3032_v27 = vrot.slane %v3031_v14, 1  ;;  %v2665_v45 = vrot.slane %v2664_v26, 4  ;;  %v3024_v37 = vadd.f32 %v3023_v22, %v3022_v63  ;;  %v3016_v28 = vrot.slane %v3015_v29, 2 }
 0x208   :  { %v2672_v19 = vrot.slane %v2671_v10, 4  ;;  %v3009_v52 = vrot.slane %v3008_v38, 2  ;;  %v2773_v24 = vsel %vm2760_vm11, %v2753_v0, %v2737_v33  ;;  %v2786_v34 = vmul.f32 %v2765_v50, %v8094_v7  ;;  %v2739_v16 = vpop.permute.xlu0 %2738 }
 0x209   :  { %v2666_v3 = vadd.f32 %v2665_v45, %v2664_v26  ;;  %v3033_v11 = vadd.f32 %v3032_v27, %v3031_v14  ;;  %v3017_v15 = vadd.f32 %v3016_v28, %v3015_v29  ;;  %v2785_v39 = vmul.f32 %v2773_v24, %v8093_v35 }
 0x20a   :  { %v2673_v44 = vadd.f32 %v2672_v19, %v2671_v10  ;;  %v2856_v32 = vsel %vm1543_vm0, %v2786_v34, 0.0  ;;  %v2976_v63 = vsel %vm2973_vm12, %v2946_v2, %v2962_v51  ;;  %v2984_v22 = vsel %vm2973_vm12, %v2962_v51, %v2946_v2  ;;  %v2755_v2 = vpop.permute.xlu1 %2754 }
 0x20b   :  { %v2667_v36 = vrot.slane %v2666_v3, 2  ;;  %v3018_v26 = vrot.slane %v3017_v15, 1  ;;  %v2849_v33 = vsel %vm1543_vm0, %v2785_v39, 0.0  ;;  %v2857_v45 = vrot.slane %v2856_v32, 4 }
 0x20c   :  { %v2674_v0 = vrot.slane %v2673_v44, 2  ;;  %v2841_v50 = vadd.f32 %v2840_v62, %v2839_v30  ;;  %v3025_v14 = vrot.slane %v3024_v37, 1  ;;  %v2850_v27 = vrot.slane %v2849_v33, 4 }
 0x20d   :  { %v2994_v29 = vmul.f32 %v2984_v22, %v8137_v40  ;;  %v3019_v10 = vadd.f32 %v3018_v26, %v3017_v15  ;;  %v2858_v19 = vadd.f32 %v2857_v45, %v2856_v32  ;;  %v2995_v24 = vmul.f32 %v2976_v63, %v8138_v61 }
 0x20e   :  { %v2675_v28 = vadd.f32 %v2674_v0, %v2673_v44  ;;  %v3010_v34 = vadd.f32 %v3009_v52, %v3008_v38  ;;  %v2668_v60 = vadd.f32 %v2667_v36, %v2666_v3  ;;  %v2851_v1 = vadd.f32 %v2850_v27, %v2849_v33 }
 0x20f   :  { %v3034_v51 = vsel %vm1543_vm0, %v2994_v29, 0.0  ;;  %v3143_v39 = vsel %vm1851_vm2, %v3033_v11, %v3019_v10  ;;  %v2859_v30 = vrot.slane %v2858_v19, 2  ;;  %v6927_v40 = vsel %vm1855_vm4, %v2841_v50, %v6873_v47 }
 0x210   :  { %v2676_v54 = vrot.slane %v2675_v28, 1  ;;  %v3035_v62 = vrot.slane %v3034_v51, 4  ;;  %v6929_v15 = vadd.f32 %v3025_v14, %v3024_v37  ;;  %v2852_v32 = vrot.slane %v2851_v1, 2  ;;  %v2948_v14 = vpop.permute.xlu0 %2947 }
 0x211   :  { %v3041_v61 = vsel %vm1543_vm0, %v2995_v24, 0.0  ;;  %v2860_v52 = vadd.f32 %v2859_v30, %v2858_v19  ;;  %v3011_v36 = vrot.slane %v3010_v34, 1  ;;  %v2669_v63 = vrot.slane %v2668_v60, 1 }
 0x212   :  { %v2677_v38 = vadd.f32 %v2676_v54, %v2675_v28  ;;  %v3036_v3 = vadd.f32 %v3035_v62, %v3034_v51  ;;  %v3042_v44 = vrot.slane %v3041_v61, 4  ;;  %v2853_v22 = vadd.f32 %v2852_v32, %v2851_v1  ;;  %v2964_v1 = vpop.permute.xlu1 %2963  ;;  %v8148_v51 = vld [vmem:[#allocation25_spill] sm:$0xff] }
 0x213   :  { %v2555_v11 = vsel %vm2547_vm1, %v2530_v21, %v2546_v20  ;;  %v2861_v47 = vrot.slane %v2860_v52, 1  ;;  %v2563_v54 = vsel %vm2547_vm1, %v2546_v20, %v2530_v21  ;;  %v2766_v50 = vsel %vm2760_vm11, %v2739_v16, %v2755_v2 }
 0x214   :  { %v6936_v26 = vsel %vm1861_vm8, %v2677_v38, %v6877_v4  ;;  %v3037_v37 = vrot.slane %v3036_v3, 2  ;;  %v3043_v0 = vadd.f32 %v3042_v44, %v3041_v61  ;;  %v2854_v33 = vrot.slane %v2853_v22, 1 }
 0x215   :  { %v2579_v45 = vmul.f32 %v2555_v11, %v8140_v43  ;;  %v2862_v27 = vadd.f32 %v2861_v47, %v2860_v52  ;;  %v2578_v4 = vmul.f32 %v2563_v54, %v8139_v49  ;;  %v3012_v28 = vadd.f32 %v3011_v36, %v3010_v34  ;;  %v2741_v54 = vpop.permute.xlu0 %2740 }
 0x216   :  { %v3038_v29 = vadd.f32 %v3037_v37, %v3036_v3  ;;  %v3044_v10 = vrot.slane %v3043_v0, 2  ;;  %v2774_v24 = vsel %vm2760_vm11, %v2755_v2, %v2739_v16  ;;  %v2788_v20 = vmul.f32 %v2766_v50, %v8148_v51  ;;  %v8149_v3 = vld [vmem:[#allocation22_spill] sm:$0xff] }
 0x217   :  { %v2685_v19 = vsel %vm1543_vm0, %v2579_v45, 0.0  ;;  %v6950_v21 = vsel %vm1857_vm6, %v2862_v27, %v6899_v48  ;;  %v2678_v32 = vsel %vm1543_vm0, %v2578_v4, 0.0  ;;  %v2670_v61 = vadd.f32 %v2669_v63, %v2668_v60 }
 0x218   :  { %v3039_v30 = vrot.slane %v3038_v29, 1  ;;  %v3045_v62 = vadd.f32 %v3044_v10, %v3043_v0  ;;  %v2679_v38 = vrot.slane %v2678_v32, 4  ;;  %v2686_v52 = vrot.slane %v2685_v19, 4  ;;  %v2757_v0 = vpop.permute.xlu1 %2756  ;;  %v8150_v10 = vld [vmem:[#allocation17_spill] sm:$0xff] }
 0x219   :  { %v2787_v34 = vmul.f32 %v2774_v24, %v8149_v3  ;;  %v2855_v44 = vadd.f32 %v2854_v33, %v2853_v22  ;;  %v2870_v11 = vsel %vm1543_vm0, %v2788_v20, 0.0  ;;  %v2977_v16 = vsel %vm2973_vm12, %v2948_v14, %v2964_v1  ;;  %v8151_v20 = vld [vmem:[#allocation15_spill] sm:$0xff] }
 0x21a   :  { %v3046_v36 = vrot.slane %v3045_v62, 1  ;;  %v2680_v2 = vadd.f32 %v2679_v38, %v2678_v32  ;;  %v2687_v47 = vadd.f32 %v2686_v52, %v2685_v19  ;;  %v2871_v37 = vrot.slane %v2870_v11, 4 }
 0x21b   :  { %v2863_v48 = vsel %vm1543_vm0, %v2787_v34, 0.0  ;;  %v3040_v45 = vadd.f32 %v3039_v30, %v3038_v29  ;;  %v2985_v50 = vsel %vm2973_vm12, %v2964_v1, %v2948_v14  ;;  %v2997_v32 = vmul.f32 %v2977_v16, %v8151_v20 }
 0x21c   :  { %v3047_v60 = vadd.f32 %v3046_v36, %v3045_v62  ;;  %v2864_v63 = vrot.slane %v2863_v48, 4  ;;  %v2681_v22 = vrot.slane %v2680_v2, 2  ;;  %v2688_v33 = vrot.slane %v2687_v47, 2  ;;  %v2966_v20 = vpop.permute.xlu1 %2965 }
 0x21d   :  { %v2872_v27 = vadd.f32 %v2871_v37, %v2870_v11  ;;  %v2996_v4 = vmul.f32 %v2985_v50, %v8150_v10  ;;  %v2767_v38 = vsel %vm2760_vm11, %v2741_v54, %v2757_v0  ;;  %v3055_v34 = vsel %vm1543_vm0, %v2997_v32, 0.0  ;;  %v8153_v50 = vld [vmem:[#allocation32_spill] sm:$0xff] }
 0x21e   :  { %v6962_v24 = vsel %vm1853_vm3, %v3047_v60, %v3143_v39  ;;  %v2865_v19 = vadd.f32 %v2864_v63, %v2863_v48  ;;  %v2682_v29 = vadd.f32 %v2681_v22, %v2680_v2  ;;  %v2689_v30 = vadd.f32 %v2688_v33, %v2687_v47  ;;  %v8152_v60 = vld [vmem:[#allocation23_spill] sm:$0xff] }
 0x21f   :  { %v2873_v62 = vrot.slane %v2872_v27, 2  ;;  %v3048_v52 = vsel %vm1543_vm0, %v2996_v4, 0.0  ;;  %v2775_v36 = vsel %vm2760_vm11, %v2757_v0, %v2741_v54  ;;  %v3056_v37 = vrot.slane %v3055_v34, 4 }
 0x220   :  { %v2866_v1 = vrot.slane %v2865_v19, 2  ;;  %v3049_v14 = vrot.slane %v3048_v52, 4  ;;  %v2683_v39 = vrot.slane %v2682_v29, 1  ;;  %v2690_v11 = vrot.slane %v2689_v30, 1 }
 0x221   :  { %v2874_v48 = vadd.f32 %v2873_v62, %v2872_v27  ;;  %v3136_v16 = vsel %vm1851_vm2, %v6929_v15, %v3012_v28  ;;  %vm2692_vm15 = vcmp.ge.s32.totalorder %v8152_v60, 5  ;;  %v2715_v63 = vsel %vm1861_vm8, %v2670_v61, %v6906_v55 }
 0x222   :  { %v2867_v2 = vadd.f32 %v2866_v1, %v2865_v19  ;;  %v3050_v47 = vadd.f32 %v3049_v14, %v3048_v52  ;;  %vm2693_vm1 = vcmp.ge.s32.totalorder %v8153_v50, 5  ;;  %v2684_v22 = vadd.f32 %v2683_v39, %v2682_v29 }
 0x223   :  { %v2691_v33 = vadd.f32 %v2690_v11, %v2689_v30  ;;  %v6979_v0 = vsel %vm1857_vm6, %v2855_v44, %v6927_v40  ;;  %v6982_v54 = vsel %vm1853_vm3, %v3040_v45, %v3136_v16  ;;  %v2789_v15 = vmul.f32 %v2775_v36, %v8100_v56  ;;  %v2950_v45 = vpop.permute.xlu0 %2949 }
 0x224   :  { %v2790_v28 = vmul.f32 %v2767_v38, %v8101_v6  ;;  %v2716_v27 = vsel %vm1863_vm9, %v2684_v22, %v2715_v63  ;;  %v2875_v61 = vrot.slane %v2874_v48, 1  ;;  %v3057_v10 = vadd.f32 %v3056_v37, %v3055_v34 }
 0x225   :  { %v2723_v55 = vsel %vm1863_vm9, %v2691_v33, %v6936_v26  ;;  %v6989_v4 = vsel %vm2692_vm15, %v2716_v27, -1e+30  ;;  %v2868_v40 = vrot.slane %v2867_v2, 1  ;;  %v3051_v44 = vrot.slane %v3050_v47, 2 }
 0x226   :  { %v6991_v19 = vsel %vm2693_vm1, %v2723_v55, -1e+30  ;;  %v3348_v32 = vrot.slane %v6989_v4, 1  ;;  %v3350_v38 = vrot.slane %v6989_v4, 2  ;;  %v3352_v26 = vrot.slane %v6989_v4, 3 }
 0x227   :  { %v3349_v29 = vrot.slane %v6991_v19, 1  ;;  %v3351_v30 = vrot.slane %v6991_v19, 2  ;;  %v3353_v62 = vrot.slane %v6991_v19, 3  ;;  %v3354_v52 = vrot.slane %v6989_v4, 4 }
 0x228   :  { %v3355_v1 = vrot.slane %v6991_v19, 4  ;;  %v3356_v14 = vrot.slane %v6989_v4, 5  ;;  %v3357_v34 = vrot.slane %v6991_v19, 5  ;;  %v2876_v36 = vadd.f32 %v2875_v61, %v2874_v48  ;;  %v2743_v61 = vpop.permute.xlu0 %2742 }
 0x229   :  { %v2877_v39 = vsel %vm1543_vm0, %v2789_v15, 0.0  ;;  %v3378_v11 = vmax.f32 %v6830_v25, %v6989_v4  ;;  %v3379_v37 = vmax.f32 %v6836_v13, %v6991_v19  ;;  %v3058_v16 = vrot.slane %v3057_v10, 2 }
 0x22a   :  { %v2884_v63 = vsel %vm1543_vm0, %v2790_v28, 0.0  ;;  %v7010_v22 = vmax.f32 %v6839_v42, %v3348_v32  ;;  %v7013_v33 = vmax.f32 %v6842_v57, %v3349_v29  ;;  %v7016_v27 = vmax.f32 %v6845_v46, %v3350_v38  ;;  %v2759_v57 = vpop.permute.xlu1 %2758 }
 0x22b   :  { %v7019_v48 = vmax.f32 %v6848_v9, %v3351_v30  ;;  %v7022_v15 = vmax.f32 %v6851_v17, %v3352_v26  ;;  %v7025_v55 = vmax.f32 %v6854_v53, %v3353_v62  ;;  %v7028_v28 = vmax.f32 %v6857_v12, %v3354_v52 }
 0x22c   :  { %v7031_v42 = vmax.f32 %v6860_v8, %v3355_v1  ;;  %v7034_v46 = vmax.f32 %v6864_v58, %v3356_v14  ;;  %v7037_v9 = vmax.f32 %v6867_v5, %v3357_v34  ;;  %v2869_v32 = vadd.f32 %v2868_v40, %v2867_v2  ;;  %v2952_v34 = vpop.permute.xlu0 %2951 }
 0x22d   :  { %v2934_v17 = vsel %vm1859_vm7, %v2876_v36, %v6950_v21  ;;  %v3052_v53 = vadd.f32 %v3051_v44, %v3050_v47  ;;  %v3059_v29 = vadd.f32 %v3058_v16, %v3057_v10  ;;  %v2878_v38 = vrot.slane %v2877_v39, 4 }
 0x22e   :  { %v2885_v12 = vrot.slane %v2884_v63, 4  ;;  %v2978_v26 = vsel %vm2973_vm12, %v2950_v45, %v2966_v20  ;;  %v2986_v58 = vsel %vm2973_vm12, %v2966_v20, %v2950_v45  ;;  %v2768_v10 = vsel %vm2760_vm11, %v2743_v61, %v2759_v57  ;;  %v2968_v45 = vpop.permute.xlu1 %2967 }
 0x22f   :  { %v3060_v2 = vrot.slane %v3059_v29, 1  ;;  %v2879_v40 = vadd.f32 %v2878_v38, %v2877_v39  ;;  %v2998_v21 = vmul.f32 %v2986_v58, %v8093_v35  ;;  %v2999_v47 = vmul.f32 %v2978_v26, %v8094_v7 }
 0x230   :  { %v2886_v62 = vadd.f32 %v2885_v12, %v2884_v63  ;;  %v2776_v44 = vsel %vm2760_vm11, %v2759_v57, %v2743_v61  ;;  %v2792_v7 = vmul.f32 %v2768_v10, %v8140_v43  ;;  %v2979_v26 = vsel %vm2973_vm12, %v2952_v34, %v2968_v45 }
 0x231   :  { %v3061_v1 = vadd.f32 %v3060_v2, %v3059_v29  ;;  %v2880_v14 = vrot.slane %v2879_v40, 2  ;;  %v3062_v36 = vsel %vm1543_vm0, %v2998_v21, 0.0  ;;  %v3069_v39 = vsel %vm1543_vm0, %v2999_v47, 0.0 }
 0x232   :  { %v2887_v20 = vrot.slane %v2886_v62, 2  ;;  %v2791_v35 = vmul.f32 %v2776_v44, %v8139_v49  ;;  %v3063_v61 = vrot.slane %v3062_v36, 4  ;;  %v3070_v38 = vrot.slane %v3069_v39, 4 }
 0x233   :  { %v3145_v16 = vsel %vm1855_vm4, %v3061_v1, %v6962_v24  ;;  %v2881_v63 = vadd.f32 %v2880_v14, %v2879_v40  ;;  %v2898_v12 = vsel %vm1543_vm0, %v2792_v7, 0.0  ;;  %v3053_v58 = vrot.slane %v3052_v53, 1 }
 0x234   :  { %v2888_v57 = vadd.f32 %v2887_v20, %v2886_v62  ;;  %v2891_v29 = vsel %vm1543_vm0, %v2791_v35, 0.0  ;;  %v3064_v21 = vadd.f32 %v3063_v61, %v3062_v36  ;;  %v3071_v44 = vadd.f32 %v3070_v38, %v3069_v39 }
 0x235   :  { %v2892_v47 = vrot.slane %v2891_v29, 4  ;;  %v2899_v10 = vrot.slane %v2898_v12, 4  ;;  %v2987_v24 = vsel %vm2973_vm12, %v2968_v45, %v2952_v34  ;;  %v3001_v40 = vmul.f32 %v2979_v26, %v8148_v51  ;;  %v2970_v45 = vpop.permute.xlu1 %2969  ;;  %v2954_v34 = vpop.permute.xlu0 %2953 }
 0x236   :  { %v2889_v2 = vrot.slane %v2888_v57, 1  ;;  %v2882_v62 = vrot.slane %v2881_v63, 1  ;;  %v3065_v14 = vrot.slane %v3064_v21, 2  ;;  %v3072_v35 = vrot.slane %v3071_v44, 2 }
 0x237   :  { %v2893_v20 = vadd.f32 %v2892_v47, %v2891_v29  ;;  %v2900_v7 = vadd.f32 %v2899_v10, %v2898_v12  ;;  %v3000_v52 = vmul.f32 %v2987_v24, %v8149_v3  ;;  %v3083_v5 = vsel %vm1543_vm0, %v3001_v40, 0.0 }
 0x238   :  { %v2890_v1 = vadd.f32 %v2889_v2, %v2888_v57  ;;  %v2927_v36 = vsel %vm1859_vm7, %v2869_v32, %v6979_v0  ;;  %v3066_v61 = vadd.f32 %v3065_v14, %v3064_v21  ;;  %v3073_v51 = vadd.f32 %v3072_v35, %v3071_v44 }
 0x239   :  { %v2894_v38 = vrot.slane %v2893_v20, 2  ;;  %v2901_v26 = vrot.slane %v2900_v7, 2  ;;  %v3076_v57 = vsel %vm1543_vm0, %v3000_v52, 0.0  ;;  %v3084_v29 = vrot.slane %v3083_v5, 4 }
 0x23a   :  { %v2935_v39 = vsel %vm1861_vm8, %v2890_v1, %v2934_v17  ;;  %v3054_v2 = vadd.f32 %v3053_v58, %v3052_v53  ;;  %v2883_v12 = vadd.f32 %v2882_v62, %v2881_v63  ;;  %v3067_v47 = vrot.slane %v3066_v61, 1 }
 0x23b   :  { %v2895_v3 = vadd.f32 %v2894_v38, %v2893_v20  ;;  %v3074_v10 = vrot.slane %v3073_v51, 1  ;;  %v2902_v24 = vadd.f32 %v2901_v26, %v2900_v7  ;;  %v3085_v40 = vadd.f32 %v3084_v29, %v3083_v5 }
 0x23c   :  { %v2988_v0 = vsel %vm2973_vm12, %v2970_v45, %v2954_v34  ;;  %v3068_v32 = vadd.f32 %v3067_v47, %v3066_v61  ;;  %v3077_v21 = vrot.slane %v3076_v57, 4  ;;  %v2980_v53 = vsel %vm2973_vm12, %v2954_v34, %v2970_v45 }
 0x23d   :  { %v2896_v17 = vrot.slane %v2895_v3, 1  ;;  %v3002_v1 = vmul.f32 %v2988_v0, %v8100_v56  ;;  %v3075_v44 = vadd.f32 %v3074_v10, %v3073_v51  ;;  %v2903_v14 = vrot.slane %v2902_v24, 1 }
 0x23e   :  { %v3086_v35 = vrot.slane %v3085_v40, 2  ;;  %vm2905_vm5 = vcmp.ge.s32.totalorder %v8152_v60, 6  ;;  %vm2906_vm10 = vcmp.ge.s32.totalorder %v8153_v50, 6  ;;  %v3138_v63 = vsel %vm1855_vm4, %v3054_v2, %v6982_v54 }
 0x23f   :  { %v2897_v52 = vadd.f32 %v2896_v17, %v2895_v3  ;;  %v3090_v5 = vsel %vm1543_vm0, %v3002_v1, 0.0  ;;  %v2928_v58 = vsel %vm1861_vm8, %v2883_v12, %v2927_v36  ;;  %v3146_v56 = vsel %vm1857_vm6, %v3075_v44, %v3145_v16 }
 0x240   :  { %v2904_v62 = vadd.f32 %v2903_v14, %v2902_v24  ;;  %v7087_v20 = vsel %vm1857_vm6, %v3068_v32, %v3138_v63  ;;  %v3078_v61 = vadd.f32 %v3077_v21, %v3076_v57  ;;  %v3003_v38 = vmul.f32 %v2980_v53, %v8101_v6  ;;  %v8155_v63 = vld [vmem:[#allocation10_spill] sm:$0xff] }
 0x241   :  { %v2929_v7 = vsel %vm1863_vm9, %v2897_v52, %v2928_v58  ;;  %v3087_v51 = vadd.f32 %v3086_v35, %v3085_v40  ;;  %v3091_v26 = vrot.slane %v3090_v5, 4  ;;  %v8170_v30 = vrot.slane %v6628_v23, 6 }
 0x242   :  { %v2936_v45 = vsel %vm1863_vm9, %v2904_v62, %v2935_v39  ;;  %v7092_v34 = vsel %vm2905_vm5, %v2929_v7, -1e+30  ;;  %v3079_v10 = vrot.slane %v3078_v61, 2  ;;  %v3097_v32 = vsel %vm1543_vm0, %v3003_v38, 0.0 }
 0x243   :  { %v7094_v54 = vsel %vm2906_vm10, %v2936_v45, -1e+30  ;;  %v3396_v36 = vrot.slane %v7092_v34, 1  ;;  %v3398_v16 = vrot.slane %v7092_v34, 2  ;;  %v3400_v29 = vrot.slane %v7092_v34, 3 }
 0x244   :  { %8154 = vst [vmem:[#allocation4_spill] sm:$0xff] %v7094_v54  ;;  %v3397_v2 = vrot.slane %v7094_v54, 1  ;;  %v3399_v57 = vrot.slane %v7094_v54, 2  ;;  %v3401_v6 = vrot.slane %v7094_v54, 3  ;;  %v3402_v39 = vrot.slane %v7092_v34, 4 }
 0x245   :  { %v3403_v12 = vrot.slane %v7094_v54, 4  ;;  %v3404_v47 = vrot.slane %v7092_v34, 5  ;;  %v3405_v3 = vrot.slane %v7094_v54, 5  ;;  %v7110_v24 = vmax.f32 %v3378_v11, %v7092_v34 }
 0x246   :  { %v3088_v40 = vrot.slane %v3087_v51, 1  ;;  %v3092_v0 = vadd.f32 %v3091_v26, %v3090_v5  ;;  %v7117_v17 = vmax.f32 %v3379_v37, %v7094_v54  ;;  %v7120_v21 = vmax.f32 %v7010_v22, %v3396_v36  ;;  %v2972_v37 = vpop.permute.xlu1 %2971  ;;  %v2956_v22 = vpop.permute.xlu0 %2955 }
 0x247   :  { %v7123_v1 = vmax.f32 %v7013_v33, %v3397_v2  ;;  %v7126_v25 = vmax.f32 %v7016_v27, %v3398_v16  ;;  %v7129_v11 = vmax.f32 %v7019_v48, %v3399_v57  ;;  %v7132_v44 = vmax.f32 %v7022_v15, %v3400_v29  ;;  %v8158_v29 = vld [vmem:[#allocation6_spill] sm:$0xff] }
 0x248   :  { %v7135_v14 = vmax.f32 %v7025_v55, %v3401_v6  ;;  %v7138_v13 = vmax.f32 %v7028_v28, %v3402_v39  ;;  %v7141_v33 = vmax.f32 %v7031_v42, %v3403_v12  ;;  %v7144_v27 = vmax.f32 %v7034_v46, %v3404_v47  ;;  %v8161_v12 = vld [vmem:[#allocation36_spill] sm:$0xff] }
 0x249   :  { %v7147_v48 = vmax.f32 %v7037_v9, %v3405_v3  ;;  %v3080_v35 = vadd.f32 %v3079_v10, %v3078_v61  ;;  %v3406_v15 = vrot.slane %v7092_v34, 6  ;;  %v3089_v53 = vadd.f32 %v3088_v40, %v3087_v51  ;;  %v8156_v51 = vld [vmem:[#allocation8_spill] sm:$0xff]  ;;  %v8162_v3 = vld [vmem:[#allocation37_spill] sm:$0xff] }
 0x24a   :  { %v3093_v55 = vrot.slane %v3092_v0, 2  ;;  %v3098_v52 = vrot.slane %v3097_v32, 4  ;;  %v3407_v28 = vrot.slane %v7094_v54, 6  ;;  %v2981_v5 = vsel %vm2973_vm12, %v2956_v22, %v2972_v37 }
 0x24b   :  { %v2989_v42 = vsel %vm2973_vm12, %v2972_v37, %v2956_v22  ;;  %v3168_v46 = vrot.slane %v8155_v63, 7  ;;  %v3408_v58 = vrot.slane %v7092_v34, 7  ;;  %v3147_v9 = vsel %vm1859_vm7, %v3089_v53, %v3146_v56  ;;  %v8160_v56 = vld [vmem:[#allocation11_spill] sm:$0xff] }
 0x24c   :  { %v3099_v62 = vadd.f32 %v3098_v52, %v3097_v32  ;;  %v3004_v7 = vmul.f32 %v2989_v42, %v8139_v49  ;;  %v3409_v61 = vrot.slane %v7094_v54, 7  ;;  %v3094_v38 = vadd.f32 %v3093_v55, %v3092_v0  ;;  %v8163_v32 = vld [vmem:[#allocation14_spill] sm:$0xff]  ;;  %v8165_v55 = vld [vmem:[#allocation16_spill] sm:$0xff] }
 0x24d   :  { %v3005_v45 = vmul.f32 %v2981_v5, %v8140_v43  ;;  %v3169_v26 = vrot.slane %v8156_v51, 7  ;;  %v8157_v16 = vrot.slane %v8155_v63, 6  ;;  %v8159_v57 = vrot.slane %v8156_v51, 6 }
 0x24e   :  { %v3100_v36 = vrot.slane %v3099_v62, 2  ;;  %v3104_v41 = vsel %vm1543_vm0, %v3004_v7, 0.0  ;;  %v3200_v47 = vmax.f32 %v8161_v12, %v3168_v46  ;;  %v3081_v10 = vrot.slane %v3080_v35, 1 }
 0x24f   :  { %v3198_v2 = vmax.f32 %v8158_v29, %v8157_v16  ;;  %v3199_v6 = vmax.f32 %v8160_v56, %v8159_v57  ;;  %v3105_v39 = vrot.slane %v3104_v41, 4  ;;  %v3111_v49 = vsel %vm1543_vm0, %v3005_v45, 0.0 }
 0x250   :  { %v3201_v43 = vmax.f32 %v8162_v3, %v3169_v26  ;;  %v3101_v40 = vadd.f32 %v3100_v36, %v3099_v62  ;;  %v3112_v0 = vrot.slane %v3111_v49, 4  ;;  %v8164_v37 = vrot.slane %v8163_v32, 6 }
 0x251   :  { %v3106_v53 = vadd.f32 %v3105_v39, %v3104_v41  ;;  %v8166_v52 = vrot.slane %v8165_v55, 6  ;;  %v8167_v42 = vrot.slane %v8163_v32, 7  ;;  %v8168_v16 = vrot.slane %v8165_v55, 7 }
 0x252   :  { %v3246_v22 = vmax.f32 %v3198_v2, %v8164_v37  ;;  %v3095_v57 = vrot.slane %v3094_v38, 1  ;;  %v3102_v46 = vrot.slane %v3101_v40, 1  ;;  %v3113_v8 = vadd.f32 %v3112_v0, %v3111_v49 }
 0x253   :  { %v3247_v5 = vmax.f32 %v3199_v6, %v8166_v52  ;;  %v3248_v7 = vmax.f32 %v3200_v47, %v8167_v42  ;;  %v3249_v45 = vmax.f32 %v3201_v43, %v8168_v16  ;;  %v8169_v26 = vrot.slane %v6637_v59, 6 }
 0x254   :  { %v3107_v36 = vrot.slane %v3106_v53, 2  ;;  %v8171_v41 = vrot.slane %v6637_v59, 7  ;;  %v8172_v6 = vrot.slane %v6628_v23, 7  ;;  %v3082_v47 = vadd.f32 %v3081_v10, %v3080_v35 }
 0x255   :  { %v3294_v62 = vmax.f32 %v3246_v22, %v8169_v26  ;;  %v3295_v2 = vmax.f32 %v3247_v5, %v8170_v30  ;;  %v3103_v52 = vadd.f32 %v3102_v46, %v3101_v40  ;;  %v3114_v42 = vrot.slane %v3113_v8, 2 }
 0x256   :  { %v3296_v39 = vmax.f32 %v3248_v7, %v8171_v41  ;;  %v3297_v37 = vmax.f32 %v3249_v45, %v8172_v6  ;;  %v8173_v43 = vrot.slane %v6808_v31, 6  ;;  %v3108_v49 = vadd.f32 %v3107_v36, %v3106_v53 }
 0x257   :  { %v8174_v0 = vrot.slane %v6812_v18, 6  ;;  %v8175_v26 = vrot.slane %v6808_v31, 7  ;;  %v8176_v30 = vrot.slane %v6812_v18, 7  ;;  %v3096_v7 = vadd.f32 %v3095_v57, %v3094_v38 }
 0x258   :  { %v3342_v16 = vmax.f32 %v3294_v62, %v8173_v43  ;;  %v3148_v41 = vsel %vm1861_vm8, %v3103_v52, %v3147_v9  ;;  %v3115_v45 = vadd.f32 %v3114_v42, %v3113_v8  ;;  %v8177_v35 = vrot.slane %v6989_v4, 6 }
 0x259   :  { %v3343_v22 = vmax.f32 %v3295_v2, %v8174_v0  ;;  %v3344_v54 = vmax.f32 %v3296_v39, %v8175_v26  ;;  %v3345_v5 = vmax.f32 %v3297_v37, %v8176_v30  ;;  %v3109_v40 = vrot.slane %v3108_v49, 1 }
 0x25a   :  { %v3390_v10 = vmax.f32 %v3342_v16, %v8177_v35  ;;  %v8178_v46 = vrot.slane %v6991_v19, 6  ;;  %v8179_v62 = vrot.slane %v6989_v4, 7  ;;  %v8180_v2 = vrot.slane %v6991_v19, 7 }
 0x25b   :  { %v3140_v6 = vsel %vm1859_vm7, %v3082_v47, %v7087_v20  ;;  %vm3118_vm0 = vcmp.ge.s32.totalorder %v8152_v60, 7  ;;  %v3116_v9 = vrot.slane %v3115_v45, 1  ;;  %v3110_v38 = vadd.f32 %v3109_v40, %v3108_v49 }
 0x25c   :  { %v3391_v53 = vmax.f32 %v3343_v22, %v8178_v46  ;;  %v3392_v36 = vmax.f32 %v3344_v54, %v8179_v62  ;;  %v3393_v39 = vmax.f32 %v3345_v5, %v8180_v2  ;;  %v3438_v8 = vmax.f32 %v3390_v10, %v3406_v15 }
 0x25d   :  { %v3141_v42 = vsel %vm1861_vm8, %v3096_v7, %v3140_v6  ;;  %vm3119_vm11 = vcmp.ge.s32.totalorder %v8153_v50, 7  ;;  %v3117_v54 = vadd.f32 %v3116_v9, %v3115_v45  ;;  %v8181_v6 = vld [vmem:[#allocation3_spill] sm:$0xff]  ;;  %v8182_v9 = vld [vmem:[#allocation30_spill] sm:$0xff] }
 0x25e   :  { %v7208_v57 = vmax.f32 %v3391_v53, %v3407_v28  ;;  %v7210_v37 = vmax.f32 %v3392_v36, %v3408_v58  ;;  %v7212_v52 = vmax.f32 %v3393_v39, %v3409_v61  ;;  %v3142_v43 = vsel %vm1863_vm9, %v3110_v38, %v3141_v42  ;;  %v8183_v38 = vld [vmem:[#allocation31_spill] sm:$0xff] }
 0x25f   :  { %v3149_v20 = vsel %vm1863_vm9, %v3117_v54, %v3148_v41  ;;  %v7218_v47 = vsel %vm3118_vm0, %v3142_v43, -1e+30  ;;  %v8184_v42 = vld [vmem:[#allocation27_spill] sm:$0xff]  ;;  %v8185_v54 = vld [vmem:[#allocation29_spill] sm:$0xff] }
 0x260   :  { %v7220_v60 = vsel %vm3119_vm11, %v3149_v20, -1e+30  ;;  %v3444_v15 = vrot.slane %v7218_v47, 1  ;;  %v3446_v28 = vrot.slane %v7218_v47, 2  ;;  %v3448_v58 = vrot.slane %v7218_v47, 3  ;;  %v8186_v43 = vld [vmem:[#allocation33_spill] sm:$0xff] }
 0x261   :  { %v3445_v61 = vrot.slane %v7220_v60, 1  ;;  %v3447_v16 = vrot.slane %v7220_v60, 2  ;;  %v3449_v50 = vrot.slane %v7220_v60, 3  ;;  %v3450_v49 = vrot.slane %v7218_v47, 4  ;;  %v8187_v20 = vld [vmem:[#allocation21_spill] sm:$0xff] }
 0x262   :  { %v3451_v0 = vrot.slane %v7220_v60, 4  ;;  %v3452_v22 = vrot.slane %v7218_v47, 5  ;;  %v3453_v26 = vrot.slane %v7220_v60, 5  ;;  %v3454_v30 = vrot.slane %v7218_v47, 6 }
 0x263   :  { %v3455_v5 = vrot.slane %v7220_v60, 6  ;;  %v3456_v7 = vrot.slane %v7218_v47, 7  ;;  %v3457_v41 = vrot.slane %v7220_v60, 7  ;;  %v3474_v45 = vmax.f32 %v7110_v24, %v7218_v47 }
 0x264   :  { %v3475_v35 = vmax.f32 %v7117_v17, %v7220_v60  ;;  %v3476_v10 = vmax.f32 %v7120_v21, %v3444_v15  ;;  %v3477_v40 = vmax.f32 %v7123_v1, %v3445_v61  ;;  %v3478_v46 = vmax.f32 %v7126_v25, %v3446_v28  ;;  %v8188_v15 = vld [vmem:[#allocation34_spill] sm:$0xff] }
 0x265   :  { %v3479_v53 = vmax.f32 %v7129_v11, %v3447_v16  ;;  %v3480_v62 = vmax.f32 %v7132_v44, %v3448_v58  ;;  %v3481_v36 = vmax.f32 %v7135_v14, %v3449_v50  ;;  %v3482_v2 = vmax.f32 %v7138_v13, %v3450_v49 }
 0x266   :  { %v3483_v39 = vmax.f32 %v7141_v33, %v3451_v0  ;;  %v3484_v24 = vmax.f32 %v7144_v27, %v3452_v22  ;;  %v3485_v17 = vmax.f32 %v7147_v48, %v3453_v26  ;;  %v3490_v21 = vsub.f32 %v8181_v6, %v3474_v45 }
 0x267   :  { %v3491_v1 = vsub.f32 %v8182_v9, %v3475_v35  ;;  %v3492_v25 = vsub.f32 %v8183_v38, %v3476_v10  ;;  %v3493_v11 = vsub.f32 %v8184_v42, %v3477_v40  ;;  %v3494_v44 = vsub.f32 %v8185_v54, %v3478_v46 }
 0x268   :  { %v3495_v14 = vsub.f32 %v8186_v43, %v3479_v53  ;;  %v3496_v13 = vsub.f32 %v8187_v20, %v3480_v62  ;;  %v3497_v33 = vsub.f32 %v8188_v15, %v3481_v36  ;;  %v3506_v28 = vmul.f32 1.442695, %v3490_v21  ;;  %v8189_v43 = vld [vmem:[#allocation13_spill] sm:$0xff] }
 0x269   :  { %v3508_v27 = vmul.f32 1.442695, %v3491_v1  ;;  %v3510_v58 = vmul.f32 1.442695, %v3492_v25  ;;  %v3512_v48 = vmul.f32 1.442695, %v3493_v11  ;;  %v7258_v61 = vmax.f32 %v3438_v8, %v3454_v30 }
 0x26a   :  { %4519 = vpow2.f32 %v3506_v28  ;;  %v3514_v16 = vmul.f32 1.442695, %v3494_v44  ;;  %v3516_v50 = vmul.f32 1.442695, %v3495_v14  ;;  %v3518_v49 = vmul.f32 1.442695, %v3496_v13 }
 0x26b   :  { %4521 = vpow2.f32 %v3508_v27  ;;  %v3520_v0 = vmul.f32 1.442695, %v3497_v33  ;;  %v3602_v22 = vrot.slane %v3476_v10, 7  ;;  %v3604_v26 = vrot.slane %v3478_v46, 6  ;;  %v8191_v15 = vld [vmem:[#allocation5_spill] sm:$0xff] }
 0x26c   :  { %4523 = vpow2.f32 %v3510_v58  ;;  %v3606_v6 = vrot.slane %v3480_v62, 5  ;;  %v3608_v9 = vrot.slane %v3482_v2, 4  ;;  %v3610_v38 = vrot.slane %v3484_v24, 3  ;;  %v8192_v28 = vld [vmem:[#allocation9_spill] sm:$0xff] }
 0x26d   :  { %4525 = vpow2.f32 %v3512_v48  ;;  %v3603_v21 = vsel %vm1851_vm2, %v3602_v22, %v3474_v45  ;;  %v3616_v1 = vrot.slane %v3477_v40, 7  ;;  %v3618_v25 = vrot.slane %v3479_v53, 6 }
 0x26e   :  { %4527 = vpow2.f32 %v3514_v16  ;;  %v3605_v8 = vsel %vm1853_vm3, %v3604_v26, %v3603_v21  ;;  %v3620_v30 = vrot.slane %v3481_v36, 5  ;;  %v3622_v42 = vrot.slane %v3483_v39, 4 }
 0x26f   :  { %4529 = vpow2.f32 %v3516_v50  ;;  %v3607_v11 = vsel %vm1855_vm4, %v3606_v6, %v3605_v8  ;;  %v3617_v10 = vsel %vm1851_vm2, %v3616_v1, %v3475_v35  ;;  %v3624_v46 = vrot.slane %v3485_v17, 3  ;;  %v8190_v35 = vld [vmem:[#allocation12_spill] sm:$0xff] }
 0x270   :  { %v3609_v62 = vsel %vm1857_vm6, %v3608_v9, %v3607_v11  ;;  %v3619_v54 = vsel %vm1853_vm3, %v3618_v25, %v3617_v10  ;;  %v3487_v44 = vmax.f32 %v7208_v57, %v3455_v5  ;;  %v3488_v45 = vmax.f32 %v7210_v37, %v3456_v7 }
 0x271   :  { %v3611_v40 = vsel %vm1859_vm7, %v3610_v38, %v3609_v62  ;;  %v3621_v53 = vsel %vm1855_vm4, %v3620_v30, %v3619_v54  ;;  %v3489_v36 = vmax.f32 %v7212_v52, %v3457_v41  ;;  %v3498_v14 = vsub.f32 %v8189_v43, %v3482_v2 }
 0x272   :  { %v3623_v20 = vsel %vm1857_vm6, %v3622_v42, %v3621_v53  ;;  %v3499_v13 = vsub.f32 %v8190_v35, %v3483_v39  ;;  %v3500_v33 = vsub.f32 %v8191_v15, %v3484_v24  ;;  %v3501_v27 = vsub.f32 %v8192_v28, %v3485_v17  ;;  %v8193_v15 = vld [vmem:[#allocation4_spill] sm:$0xff] }
 0x273   :  { %v3625_v57 = vsel %vm1859_vm7, %v3624_v46, %v3623_v20  ;;  %v3502_v37 = vsub.f32 %v8158_v29, %v7258_v61  ;;  %v3503_v5 = vsub.f32 %v8160_v56, %v3487_v44  ;;  %v3504_v7 = vsub.f32 %v8161_v12, %v3488_v45 }
 0x274   :  { %v7281_v52 = vpop.eup %4519  ;;  %v3505_v41 = vsub.f32 %v8162_v3, %v3489_v36  ;;  %4531 = vpow2.f32 %v3518_v49  ;;  %v3522_v2 = vmul.f32 1.442695, %v3498_v14  ;;  %v3524_v39 = vmul.f32 1.442695, %v3499_v13 }
 0x275   :  { %v7284_v58 = vpop.eup %4521  ;;  %4533 = vpow2.f32 %v3520_v0  ;;  %v3526_v24 = vmul.f32 1.442695, %v3500_v33  ;;  %v3528_v17 = vmul.f32 1.442695, %v3501_v27  ;;  %v3530_v29 = vmul.f32 1.442695, %v3502_v37 }
 0x276   :  { %v7286_v48 = vpop.eup %4523  ;;  %4535 = vpow2.f32 %v3522_v2  ;;  %v3532_v56 = vmul.f32 1.442695, %v3503_v5  ;;  %v3534_v3 = vmul.f32 1.442695, %v3504_v7  ;;  %v3612_v50 = vrot.slane %v7258_v61, 2 }
 0x277   :  { %v7288_v16 = vpop.eup %4525  ;;  %4537 = vpow2.f32 %v3524_v39  ;;  %v3536_v0 = vmul.f32 1.442695, %v3505_v41  ;;  %v3614_v22 = vrot.slane %v3488_v45, 1  ;;  %v3626_v26 = vrot.slane %v3487_v44, 2 }
 0x278   :  { %v7290_v12 = vpop.eup %4527  ;;  %4539 = vpow2.f32 %v3526_v24  ;;  %v3613_v6 = vsel %vm1861_vm8, %v3612_v50, %v3611_v40  ;;  %v3628_v9 = vrot.slane %v3489_v36, 1  ;;  %v7351_v27 = vmul.f32 0.0, %v7288_v16 }
 0x279   :  { %v7293_v49 = vpop.eup %4529  ;;  %4541 = vpow2.f32 %v3528_v17  ;;  %v7297_v38 = vsel %vm1863_vm9, %v3614_v22, %v3613_v6  ;;  %v3627_v21 = vsel %vm1861_vm8, %v3626_v26, %v3625_v57 }
 0x27a   :  { %4543 = vpow2.f32 %v3530_v29  ;;  %v7301_v1 = vsel %vm1863_vm9, %v3628_v9, %v3627_v21  ;;  %v3632_v61 = vsub.f32 %v8155_v63, %v7297_v38  ;;  %v3702_v25 = vsub.f32 %v8163_v32, %v7297_v38 }
 0x27b   :  { %4545 = vpow2.f32 %v3532_v56  ;;  %v3633_v8 = vsub.f32 %v8156_v51, %v7301_v1  ;;  %v3703_v30 = vsub.f32 %v8165_v55, %v7301_v1  ;;  %v3806_v42 = vsub.f32 %v6637_v59, %v7297_v38 }
 0x27c   :  { %4547 = vpow2.f32 %v3534_v3  ;;  %v3634_v10 = vmul.f32 1.442695, %v3632_v61  ;;  %v3704_v46 = vmul.f32 1.442695, %v3702_v25  ;;  %v3807_v63 = vsub.f32 %v6628_v23, %v7301_v1 }
 0x27d   :  { %4549 = vpow2.f32 %v3536_v0  ;;  %v3910_v32 = vsub.f32 %v6808_v31, %v7297_v38  ;;  %v3636_v54 = vmul.f32 1.442695, %v3633_v8  ;;  %v3706_v51 = vmul.f32 1.442695, %v3703_v30 }
 0x27e   :  { %v7313_v11 = vpop.eup %4531  ;;  %v3911_v55 = vsub.f32 %v6812_v18, %v7301_v1  ;;  %v7326_v59 = vmul.f32 0.0, %v7281_v52  ;;  %4551 = vpow2.f32 %v3634_v10  ;;  %v3808_v45 = vmul.f32 1.442695, %v3806_v42 }
 0x27f   :  { %v7319_v62 = vpop.eup %4533  ;;  %v7331_v23 = vmul.f32 0.0, %v7284_v58  ;;  %v7334_v31 = vmul.f32 0.0, %v7286_v48  ;;  %4553 = vpow2.f32 %v3636_v54  ;;  %v3810_v53 = vmul.f32 1.442695, %v3807_v63 }
 0x280   :  { %v7323_v44 = vpop.eup %4535  ;;  %4555 = vpow2.f32 %v3704_v46  ;;  %v3912_v18 = vmul.f32 1.442695, %v3910_v32  ;;  %v4014_v43 = vsub.f32 %v6989_v4, %v7297_v38  ;;  %v4015_v14 = vsub.f32 %v6991_v19, %v7301_v1 }
 0x281   :  { %v7328_v40 = vpop.eup %4537  ;;  %4557 = vpow2.f32 %v3706_v51  ;;  %v3914_v35 = vmul.f32 1.442695, %v3911_v55  ;;  %v4118_v13 = vsub.f32 %v7092_v34, %v7297_v38  ;;  %v4119_v33 = vsub.f32 %v8193_v15, %v7301_v1 }
 0x282   :  { %v7336_v36 = vpop.eup %4539  ;;  %v7354_v4 = vmul.f32 0.0, %v7290_v12  ;;  %4559 = vpow2.f32 %v3808_v45  ;;  %v4016_v19 = vmul.f32 1.442695, %v4014_v43  ;;  %v7357_v37 = vmul.f32 0.0, %v7293_v49 }
 0x283   :  { %v7342_v20 = vpop.eup %4541  ;;  %v7360_v5 = vmul.f32 0.0, %v7313_v11  ;;  %4561 = vpow2.f32 %v3810_v53  ;;  %v4018_v34 = vmul.f32 1.442695, %v4015_v14  ;;  %v4120_v41 = vmul.f32 1.442695, %v4118_v13 }
 0x284   :  { %v7348_v28 = vpop.eup %4543  ;;  %4563 = vpow2.f32 %v3912_v18  ;;  %v4222_v2 = vsub.f32 %v7218_v47, %v7297_v38  ;;  %v4223_v39 = vsub.f32 %v7220_v60, %v7301_v1  ;;  %v7367_v17 = vmul.f32 0.0, %v7319_v62 }
 0x285   :  { %v4546_v57 = vpop.eup %4545  ;;  %v7370_v29 = vmul.f32 0.0, %v7323_v44  ;;  %v7373_v56 = vmul.f32 0.0, %v7328_v40  ;;  %4565 = vpow2.f32 %v3914_v35  ;;  %v7376_v3 = vmul.f32 0.0, %v7336_v36 }
 0x286   :  { %v4548_v7 = vpop.eup %4547  ;;  %v7379_v50 = vmul.f32 0.0, %v7342_v20  ;;  %v7382_v47 = vmul.f32 0.0, %v7348_v28  ;;  %4567 = vpow2.f32 %v4016_v19  ;;  %v3567_v60 = vmul.f32 0.0, %v4546_v57 }
 0x287   :  { %v4550_v24 = vpop.eup %4549  ;;  %v3568_v0 = vmul.f32 0.0, %v4548_v7  ;;  %4569 = vpow2.f32 %v4018_v34  ;;  %v7384_v22 = vmul.f32 1.442695, %v4119_v33  ;;  %v7386_v9 = vmul.f32 1.442695, %v4222_v2 }
 0x288   :  { %v4552_v26 = vpop.eup %4551  ;;  %v3569_v6 = vmul.f32 0.0, %v4550_v24  ;;  %4571 = vpow2.f32 %v4120_v41  ;;  %v7388_v38 = vmul.f32 1.442695, %v4223_v39 }
 0x289   :  { %8194 = vst [vmem:[#allocation35_spill] sm:$0xff] %v7384_v22  ;;  %8195 = vst [vmem:[#allocation7_spill] sm:$0xff] %v7386_v9  ;;  %v4554_v21 = vpop.eup %4553  ;;  %v3640_v1 = vrot.slane %v4552_v26, 1  ;;  %v3642_v61 = vrot.slane %v4552_v26, 2  ;;  %v3644_v25 = vrot.slane %v4552_v26, 3  ;;  %v3646_v8 = vrot.slane %v4552_v26, 4 }
 0x28a   :  { %8196 = vst [vmem:[#allocation24_spill] sm:$0xff] %v7388_v38  ;;  %v7390_v30 = vpop.eup %4555  ;;  %v3641_v42 = vrot.slane %v4554_v21, 1  ;;  %v3643_v10 = vrot.slane %v4554_v21, 2  ;;  %v3645_v46 = vrot.slane %v4554_v21, 3  ;;  %v3647_v63 = vrot.slane %v4554_v21, 4 }
 0x28b   :  { %v7392_v32 = vpop.eup %4557  ;;  %v3648_v54 = vrot.slane %v4552_v26, 5  ;;  %v3649_v51 = vrot.slane %v4554_v21, 5  ;;  %v3650_v55 = vrot.slane %v4552_v26, 6  ;;  %v3651_v45 = vrot.slane %v4554_v21, 6 }
 0x28c   :  { %v7394_v53 = vpop.eup %4559  ;;  %v3652_v18 = vrot.slane %v4552_v26, 7  ;;  %v3653_v43 = vrot.slane %v4554_v21, 7  ;;  %v3670_v14 = vadd.f32 %v4552_v26, %v7281_v52  ;;  %v3671_v35 = vadd.f32 %v4554_v21, %v7284_v58 }
 0x28d   :  { %v7398_v13 = vpop.eup %4561  ;;  %v3672_v15 = vadd.f32 %v7286_v48, %v3640_v1  ;;  %v3673_v33 = vadd.f32 %v7288_v16, %v3641_v42  ;;  %v3674_v19 = vadd.f32 %v7290_v12, %v3642_v61  ;;  %v3675_v34 = vadd.f32 %v7293_v49, %v3643_v10 }
 0x28e   :  { %v7404_v41 = vpop.eup %4563  ;;  %v3676_v2 = vadd.f32 %v7313_v11, %v3644_v25  ;;  %v3677_v39 = vadd.f32 %v7319_v62, %v3645_v46  ;;  %v3678_v52 = vadd.f32 %v7323_v44, %v3646_v8  ;;  %v3679_v58 = vadd.f32 %v7328_v40, %v3647_v63 }
 0x28f   :  { %8197 = vst [vmem:[#allocation2_spill] sm:$0xff] %v7404_v41  ;;  %v7410_v38 = vpop.eup %4565  ;;  %v3680_v48 = vadd.f32 %v7336_v36, %v3648_v54  ;;  %v3681_v16 = vadd.f32 %v7342_v20, %v3649_v51  ;;  %v3682_v12 = vadd.f32 %v7348_v28, %v3650_v55  ;;  %v3683_v9 = vadd.f32 %v4546_v57, %v3651_v45 }
 0x290   :  { %8198 = vst [vmem:[#allocation18_spill] sm:$0xff] %v7410_v38  ;;  %v7415_v49 = vpop.eup %4567  ;;  %v3684_v22 = vadd.f32 %v4548_v7, %v3652_v18  ;;  %v3685_v41 = vadd.f32 %v4550_v24, %v3653_v43  ;;  %v7418_v11 = vadd.f32 %v4552_v26, %v7326_v59  ;;  %v7421_v62 = vadd.f32 %v4554_v21, %v7331_v23 }
 0x291   :  { %8199 = vst [vmem:[#allocation20_spill] sm:$0xff] %v7415_v49  ;;  %v7423_v44 = vpop.eup %4569  ;;  %v7426_v40 = vadd.f32 %v3640_v1, %v7334_v31  ;;  %v7429_v36 = vadd.f32 %v3641_v42, %v7351_v27  ;;  %v7432_v20 = vadd.f32 %v3642_v61, %v7354_v4  ;;  %v7435_v28 = vadd.f32 %v3643_v10, %v7357_v37 }
 0x292   :  { %8200 = vst [vmem:[#allocation26_spill] sm:$0xff] %v7423_v44  ;;  %v7437_v57 = vpop.eup %4571  ;;  %v7440_v59 = vadd.f32 %v3644_v25, %v7360_v5  ;;  %v7443_v23 = vadd.f32 %v3645_v46, %v7367_v17  ;;  %v7446_v31 = vadd.f32 %v3646_v8, %v7370_v29  ;;  %v7449_v27 = vadd.f32 %v3647_v63, %v7373_v56 }
 0x293   :  { %8201 = vst [vmem:[#allocation28_spill] sm:$0xff] %v7437_v57  ;;  %v7452_v4 = vadd.f32 %v3648_v54, %v7376_v3  ;;  %v7455_v37 = vadd.f32 %v3649_v51, %v7379_v50  ;;  %v7458_v7 = vadd.f32 %v3650_v55, %v7382_v47  ;;  %v7460_v5 = vadd.f32 %v3651_v45, %v3567_v60 }
 0x294   :  { %v7462_v24 = vadd.f32 %v3652_v18, %v3568_v0  ;;  %v7464_v17 = vadd.f32 %v3653_v43, %v3569_v6  ;;  %v3710_v29 = vrot.slane %v7390_v30, 1  ;;  %v3711_v56 = vrot.slane %v7392_v32, 1 }
 0x295   :  { %8202 = vst [vmem:[#allocation19_spill] sm:$0xff] %v7460_v5  ;;  %v3712_v26 = vrot.slane %v7390_v30, 2  ;;  %v3713_v3 = vrot.slane %v7392_v32, 2  ;;  %v3714_v50 = vrot.slane %v7390_v30, 3  ;;  %v3715_v21 = vrot.slane %v7392_v32, 3 }
 0x296   :  { %8203 = vst [vmem:[#allocation25_spill] sm:$0xff] %v7462_v24  ;;  %8204 = vst [vmem:[#allocation22_spill] sm:$0xff] %v7464_v17  ;;  %v3716_v47 = vrot.slane %v7390_v30, 4  ;;  %v3717_v60 = vrot.slane %v7392_v32, 4  ;;  %v3718_v0 = vrot.slane %v7390_v30, 5  ;;  %v3719_v6 = vrot.slane %v7392_v32, 5 }
 0x297   :  { %v3720_v1 = vrot.slane %v7390_v30, 6  ;;  %v3721_v61 = vrot.slane %v7392_v32, 6  ;;  %v3722_v25 = vrot.slane %v7390_v30, 7  ;;  %v3723_v8 = vrot.slane %v7392_v32, 7 }
 0x298   :  { %v3740_v42 = vadd.f32 %v7390_v30, %v3670_v14  ;;  %v3741_v10 = vadd.f32 %v7392_v32, %v3671_v35  ;;  %v3742_v46 = vadd.f32 %v3710_v29, %v3672_v15  ;;  %v3743_v63 = vadd.f32 %v3711_v56, %v3673_v33 }
 0x299   :  { %v3744_v54 = vadd.f32 %v3712_v26, %v3674_v19  ;;  %v3745_v51 = vadd.f32 %v3713_v3, %v3675_v34  ;;  %v3746_v55 = vadd.f32 %v3714_v50, %v3676_v2  ;;  %v3747_v45 = vadd.f32 %v3715_v21, %v3677_v39 }
 0x29a   :  { %v3748_v18 = vadd.f32 %v3716_v47, %v3678_v52  ;;  %v3749_v43 = vadd.f32 %v3717_v60, %v3679_v58  ;;  %v3750_v57 = vadd.f32 %v3718_v0, %v3680_v48  ;;  %v3751_v44 = vadd.f32 %v3719_v6, %v3681_v16 }
 0x29b   :  { %v3752_v49 = vadd.f32 %v3720_v1, %v3682_v12  ;;  %v3753_v38 = vadd.f32 %v3721_v61, %v3683_v9  ;;  %v3754_v17 = vadd.f32 %v3722_v25, %v3684_v22  ;;  %v3755_v24 = vadd.f32 %v3723_v8, %v3685_v41 }
 0x29c   :  { %v3756_v5 = vmul.f32 2.0, %v7390_v30  ;;  %v3757_v14 = vmul.f32 2.0, %v7392_v32  ;;  %v3814_v35 = vrot.slane %v7394_v53, 1  ;;  %v3815_v15 = vrot.slane %v7398_v13, 1 }
 0x29d   :  { %v3816_v33 = vrot.slane %v7394_v53, 2  ;;  %v3817_v19 = vrot.slane %v7398_v13, 2  ;;  %v3818_v34 = vrot.slane %v7394_v53, 3  ;;  %v3819_v2 = vrot.slane %v7398_v13, 3  ;;  %v8206_v8 = vld [vmem:[#allocation25_spill] sm:$0xff] }
 0x29e   :  { %v3760_v39 = vrot.slane %v3756_v5, 1  ;;  %v3761_v9 = vrot.slane %v3757_v14, 1  ;;  %v3762_v22 = vrot.slane %v3756_v5, 2  ;;  %v3763_v41 = vrot.slane %v3757_v14, 2 }
 0x29f   :  { %v3764_v52 = vrot.slane %v3756_v5, 3  ;;  %v3765_v30 = vrot.slane %v3757_v14, 3  ;;  %v3766_v58 = vrot.slane %v3756_v5, 4  ;;  %v3767_v32 = vrot.slane %v3757_v14, 4 }
 0x2a0   :  { %v3768_v48 = vrot.slane %v3756_v5, 5  ;;  %v3769_v16 = vrot.slane %v3757_v14, 5  ;;  %v3770_v12 = vrot.slane %v3756_v5, 6  ;;  %v3771_v29 = vrot.slane %v3757_v14, 6 }
 0x2a1   :  { %v3772_v56 = vrot.slane %v3756_v5, 7  ;;  %v3773_v26 = vrot.slane %v3757_v14, 7  ;;  %v3790_v3 = vadd.f32 %v3756_v5, %v7418_v11  ;;  %v3791_v50 = vadd.f32 %v3757_v14, %v7421_v62  ;;  %v8205_v5 = vld [vmem:[#allocation19_spill] sm:$0xff]  ;;  %v8207_v14 = vld [vmem:[#allocation22_spill] sm:$0xff] }
 0x2a2   :  { %v3792_v21 = vadd.f32 %v3760_v39, %v7426_v40  ;;  %v3793_v47 = vadd.f32 %v3761_v9, %v7429_v36  ;;  %v3794_v60 = vadd.f32 %v3762_v22, %v7432_v20  ;;  %v3795_v0 = vadd.f32 %v3763_v41, %v7435_v28 }
 0x2a3   :  { %v3796_v6 = vadd.f32 %v3764_v52, %v7440_v59  ;;  %v3797_v1 = vadd.f32 %v3765_v30, %v7443_v23  ;;  %v3798_v61 = vadd.f32 %v3766_v58, %v7446_v31  ;;  %v3799_v25 = vadd.f32 %v3767_v32, %v7449_v27 }
 0x2a4   :  { %v3800_v11 = vadd.f32 %v3768_v48, %v7452_v4  ;;  %v3801_v62 = vadd.f32 %v3769_v16, %v7455_v37  ;;  %v3802_v40 = vadd.f32 %v3770_v12, %v7458_v7  ;;  %v3803_v36 = vadd.f32 %v3771_v29, %v8205_v5 }
 0x2a5   :  { %v3804_v20 = vadd.f32 %v3772_v56, %v8206_v8  ;;  %v3805_v28 = vadd.f32 %v3773_v26, %v8207_v14  ;;  %v3820_v59 = vrot.slane %v7394_v53, 4  ;;  %v3821_v23 = vrot.slane %v7398_v13, 4 }
 0x2a6   :  { %v3822_v31 = vrot.slane %v7394_v53, 5  ;;  %v3823_v27 = vrot.slane %v7398_v13, 5  ;;  %v3824_v4 = vrot.slane %v7394_v53, 6  ;;  %v3825_v37 = vrot.slane %v7398_v13, 6 }
 0x2a7   :  { %v3826_v7 = vrot.slane %v7394_v53, 7  ;;  %v3827_v39 = vrot.slane %v7398_v13, 7  ;;  %v3844_v9 = vadd.f32 %v7394_v53, %v3740_v42  ;;  %v3845_v22 = vadd.f32 %v7398_v13, %v3741_v10 }
 0x2a8   :  { %v3846_v41 = vadd.f32 %v3814_v35, %v3742_v46  ;;  %v3847_v52 = vadd.f32 %v3815_v15, %v3743_v63  ;;  %v3848_v30 = vadd.f32 %v3816_v33, %v3744_v54  ;;  %v3849_v58 = vadd.f32 %v3817_v19, %v3745_v51  ;;  %v8208_v35 = vld [vmem:[#allocation2_spill] sm:$0xff] }
 0x2a9   :  { %v3850_v32 = vadd.f32 %v3818_v34, %v3746_v55  ;;  %v3851_v48 = vadd.f32 %v3819_v2, %v3747_v45  ;;  %v3852_v16 = vadd.f32 %v3820_v59, %v3748_v18  ;;  %v3853_v12 = vadd.f32 %v3821_v23, %v3749_v43  ;;  %v8209_v15 = vld [vmem:[#allocation18_spill] sm:$0xff] }
 0x2aa   :  { %v3854_v29 = vadd.f32 %v3822_v31, %v3750_v57  ;;  %v3855_v56 = vadd.f32 %v3823_v27, %v3751_v44  ;;  %v3856_v26 = vadd.f32 %v3824_v4, %v3752_v49  ;;  %v3857_v5 = vadd.f32 %v3825_v37, %v3753_v38 }
 0x2ab   :  { %v3858_v8 = vadd.f32 %v3826_v7, %v3754_v17  ;;  %v3859_v14 = vadd.f32 %v3827_v39, %v3755_v24  ;;  %v3860_v42 = vmul.f32 3.0, %v7394_v53  ;;  %v3861_v10 = vmul.f32 3.0, %v7398_v13 }
 0x2ac   :  { %v3918_v46 = vrot.slane %v8208_v35, 1  ;;  %v3919_v63 = vrot.slane %v8209_v15, 1  ;;  %v3920_v54 = vrot.slane %v8208_v35, 2  ;;  %v3921_v51 = vrot.slane %v8209_v15, 2 }
 0x2ad   :  { %v3864_v55 = vrot.slane %v3860_v42, 1  ;;  %v3865_v45 = vrot.slane %v3861_v10, 1  ;;  %v3866_v57 = vrot.slane %v3860_v42, 2  ;;  %v3867_v44 = vrot.slane %v3861_v10, 2 }
 0x2ae   :  { %v3868_v49 = vrot.slane %v3860_v42, 3  ;;  %v3869_v38 = vrot.slane %v3861_v10, 3  ;;  %v3870_v17 = vrot.slane %v3860_v42, 4  ;;  %v3871_v24 = vrot.slane %v3861_v10, 4 }
 0x2af   :  { %v3872_v18 = vrot.slane %v3860_v42, 5  ;;  %v3873_v53 = vrot.slane %v3861_v10, 5  ;;  %v3874_v43 = vrot.slane %v3860_v42, 6  ;;  %v3875_v13 = vrot.slane %v3861_v10, 6 }
 0x2b0   :  { %v3876_v33 = vrot.slane %v3860_v42, 7  ;;  %v3877_v19 = vrot.slane %v3861_v10, 7  ;;  %v7522_v34 = vadd.f32 %v3860_v42, %v3790_v3  ;;  %v7524_v2 = vadd.f32 %v3861_v10, %v3791_v50 }
 0x2b1   :  { %v7526_v59 = vadd.f32 %v3864_v55, %v3792_v21  ;;  %v7528_v23 = vadd.f32 %v3865_v45, %v3793_v47  ;;  %v7530_v31 = vadd.f32 %v3866_v57, %v3794_v60  ;;  %v7532_v27 = vadd.f32 %v3867_v44, %v3795_v0 }
 0x2b2   :  { %v7534_v4 = vadd.f32 %v3868_v49, %v3796_v6  ;;  %v7536_v37 = vadd.f32 %v3869_v38, %v3797_v1  ;;  %v7538_v7 = vadd.f32 %v3870_v17, %v3798_v61  ;;  %v7540_v39 = vadd.f32 %v3871_v24, %v3799_v25 }
 0x2b3   :  { %v7542_v3 = vadd.f32 %v3872_v18, %v3800_v11  ;;  %v7544_v50 = vadd.f32 %v3873_v53, %v3801_v62  ;;  %v7546_v21 = vadd.f32 %v3874_v43, %v3802_v40  ;;  %v7548_v47 = vadd.f32 %v3875_v13, %v3803_v36 }
 0x2b4   :  { %v7550_v60 = vadd.f32 %v3876_v33, %v3804_v20  ;;  %v7552_v0 = vadd.f32 %v3877_v19, %v3805_v28  ;;  %v3922_v6 = vrot.slane %v8208_v35, 3  ;;  %v3923_v1 = vrot.slane %v8209_v15, 3 }
 0x2b5   :  { %v3924_v61 = vrot.slane %v8208_v35, 4  ;;  %v3925_v25 = vrot.slane %v8209_v15, 4  ;;  %v3926_v11 = vrot.slane %v8208_v35, 5  ;;  %v3927_v62 = vrot.slane %v8209_v15, 5 }
 0x2b6   :  { %8210 = vst [vmem:[#allocation17_spill] sm:$0xff] %v7550_v60  ;;  %8211 = vst [vmem:[#allocation15_spill] sm:$0xff] %v7552_v0  ;;  %v3928_v40 = vrot.slane %v8208_v35, 6  ;;  %v3929_v36 = vrot.slane %v8209_v15, 6  ;;  %v3930_v20 = vrot.slane %v8208_v35, 7  ;;  %v3931_v28 = vrot.slane %v8209_v15, 7 }
 0x2b7   :  { %v3948_v42 = vadd.f32 %v8208_v35, %v3844_v9  ;;  %v3949_v10 = vadd.f32 %v8209_v15, %v3845_v22  ;;  %v3950_v55 = vadd.f32 %v3918_v46, %v3846_v41  ;;  %v3951_v45 = vadd.f32 %v3919_v63, %v3847_v52  ;;  %v8212_v60 = vld [vmem:[#allocation20_spill] sm:$0xff]  ;;  %v8213_v41 = vld [vmem:[#allocation26_spill] sm:$0xff] }
 0x2b8   :  { %v3952_v57 = vadd.f32 %v3920_v54, %v3848_v30  ;;  %v3953_v44 = vadd.f32 %v3921_v51, %v3849_v58  ;;  %v3954_v49 = vadd.f32 %v3922_v6, %v3850_v32  ;;  %v3955_v38 = vadd.f32 %v3923_v1, %v3851_v48 }
 0x2b9   :  { %v3956_v17 = vadd.f32 %v3924_v61, %v3852_v16  ;;  %v3957_v24 = vadd.f32 %v3925_v25, %v3853_v12  ;;  %v3958_v18 = vadd.f32 %v3926_v11, %v3854_v29  ;;  %v3959_v53 = vadd.f32 %v3927_v62, %v3855_v56 }
 0x2ba   :  { %v3960_v43 = vadd.f32 %v3928_v40, %v3856_v26  ;;  %v3961_v13 = vadd.f32 %v3929_v36, %v3857_v5  ;;  %v3962_v33 = vadd.f32 %v3930_v20, %v3858_v8  ;;  %v3963_v19 = vadd.f32 %v3931_v28, %v3859_v14 }
 0x2bb   :  { %v3964_v0 = vmul.f32 4.0, %v8208_v35  ;;  %v3965_v9 = vmul.f32 4.0, %v8209_v15  ;;  %v4022_v22 = vrot.slane %v8212_v60, 1  ;;  %v4023_v52 = vrot.slane %v8213_v41, 1 }
 0x2bc   :  { %v4024_v30 = vrot.slane %v8212_v60, 2  ;;  %v4025_v58 = vrot.slane %v8213_v41, 2  ;;  %v4026_v32 = vrot.slane %v8212_v60, 3  ;;  %v4027_v48 = vrot.slane %v8213_v41, 3 }
 0x2bd   :  { %v3968_v16 = vrot.slane %v3964_v0, 1  ;;  %v3969_v12 = vrot.slane %v3965_v9, 1  ;;  %v3970_v29 = vrot.slane %v3964_v0, 2  ;;  %v3971_v56 = vrot.slane %v3965_v9, 2 }
 0x2be   :  { %v3972_v26 = vrot.slane %v3964_v0, 3  ;;  %v3973_v5 = vrot.slane %v3965_v9, 3  ;;  %v3974_v8 = vrot.slane %v3964_v0, 4  ;;  %v3975_v14 = vrot.slane %v3965_v9, 4 }
 0x2bf   :  { %v3976_v35 = vrot.slane %v3964_v0, 5  ;;  %v3977_v46 = vrot.slane %v3965_v9, 5  ;;  %v3978_v15 = vrot.slane %v3964_v0, 6  ;;  %v3979_v63 = vrot.slane %v3965_v9, 6 }
 0x2c0   :  { %v3980_v54 = vrot.slane %v3964_v0, 7  ;;  %v3981_v51 = vrot.slane %v3965_v9, 7  ;;  %v3998_v6 = vadd.f32 %v3964_v0, %v7522_v34  ;;  %v3999_v1 = vadd.f32 %v3965_v9, %v7524_v2  ;;  %v8214_v0 = vld [vmem:[#allocation17_spill] sm:$0xff]  ;;  %v8215_v9 = vld [vmem:[#allocation15_spill] sm:$0xff] }
 0x2c1   :  { %v4000_v61 = vadd.f32 %v3968_v16, %v7526_v59  ;;  %v4001_v25 = vadd.f32 %v3969_v12, %v7528_v23  ;;  %v4002_v11 = vadd.f32 %v3970_v29, %v7530_v31  ;;  %v4003_v62 = vadd.f32 %v3971_v56, %v7532_v27 }
 0x2c2   :  { %v4004_v40 = vadd.f32 %v3972_v26, %v7534_v4  ;;  %v4005_v36 = vadd.f32 %v3973_v5, %v7536_v37  ;;  %v4006_v20 = vadd.f32 %v3974_v8, %v7538_v7  ;;  %v4007_v28 = vadd.f32 %v3975_v14, %v7540_v39 }
 0x2c3   :  { %v4008_v34 = vadd.f32 %v3976_v35, %v7542_v3  ;;  %v4009_v2 = vadd.f32 %v3977_v46, %v7544_v50  ;;  %v4010_v59 = vadd.f32 %v3978_v15, %v7546_v21  ;;  %v4011_v23 = vadd.f32 %v3979_v63, %v7548_v47 }
 0x2c4   :  { %v4012_v31 = vadd.f32 %v3980_v54, %v8214_v0  ;;  %v4013_v27 = vadd.f32 %v3981_v51, %v8215_v9  ;;  %v4028_v4 = vrot.slane %v8212_v60, 4  ;;  %v4029_v37 = vrot.slane %v8213_v41, 4 }
 0x2c5   :  { %v4030_v7 = vrot.slane %v8212_v60, 5  ;;  %v4031_v39 = vrot.slane %v8213_v41, 5  ;;  %v4032_v3 = vrot.slane %v8212_v60, 6  ;;  %v4033_v50 = vrot.slane %v8213_v41, 6 }
 0x2c6   :  { %v4034_v21 = vrot.slane %v8212_v60, 7  ;;  %v4035_v47 = vrot.slane %v8213_v41, 7  ;;  %v4052_v16 = vadd.f32 %v8212_v60, %v3948_v42  ;;  %v7600_v12 = vadd.f32 %v8213_v41, %v3949_v10 }
 0x2c7   :  { %v4054_v29 = vadd.f32 %v4022_v22, %v3950_v55  ;;  %v7602_v56 = vadd.f32 %v4023_v52, %v3951_v45  ;;  %v4056_v26 = vadd.f32 %v4024_v30, %v3952_v57  ;;  %v7604_v5 = vadd.f32 %v4025_v58, %v3953_v44  ;;  %v8222_v44 = vld [vmem:[#allocation35_spill] sm:$0xff] }
 0x2c8   :  { %v4058_v8 = vadd.f32 %v4026_v32, %v3954_v49  ;;  %v7606_v14 = vadd.f32 %v4027_v48, %v3955_v38  ;;  %v4060_v35 = vadd.f32 %v4028_v4, %v3956_v17  ;;  %v7608_v46 = vadd.f32 %v4029_v37, %v3957_v24  ;;  %v8223_v49 = vld [vmem:[#allocation28_spill] sm:$0xff] }
 0x2c9   :  { %v4062_v15 = vadd.f32 %v4030_v7, %v3958_v18  ;;  %v7610_v63 = vadd.f32 %v4031_v39, %v3959_v53  ;;  %v7612_v54 = vadd.f32 %v4032_v3, %v3960_v43  ;;  %v7614_v42 = vadd.f32 %v4033_v50, %v3961_v13 }
 0x2ca   :  { %8216 = vst [vmem:[#allocation23_spill] sm:$0xff] %v7608_v46  ;;  %v7616_v10 = vadd.f32 %v4034_v21, %v3962_v33  ;;  %v7618_v55 = vadd.f32 %v4035_v47, %v3963_v19  ;;  %v4068_v45 = vmul.f32 5.0, %v8212_v60  ;;  %v4069_v57 = vmul.f32 5.0, %v8213_v41 }
 0x2cb   :  { %8217 = vst [vmem:[#allocation32_spill] sm:$0xff] %v7610_v63  ;;  %8218 = vst [vmem:[#allocation10_spill] sm:$0xff] %v7612_v54  ;;  %4573 = vpow2.f32 %v8222_v44  ;;  %v4126_v38 = vrot.slane %v8223_v49, 1  ;;  %v4128_v17 = vrot.slane %v8223_v49, 2  ;;  %v4130_v24 = vrot.slane %v8223_v49, 3 }
 0x2cc   :  { %8219 = vst [vmem:[#allocation8_spill] sm:$0xff] %v7614_v42  ;;  %8220 = vst [vmem:[#allocation6_spill] sm:$0xff] %v7616_v10  ;;  %v4072_v18 = vrot.slane %v4068_v45, 1  ;;  %v4073_v53 = vrot.slane %v4069_v57, 1  ;;  %v4074_v43 = vrot.slane %v4068_v45, 2  ;;  %v4075_v13 = vrot.slane %v4069_v57, 2 }
 0x2cd   :  { %8221 = vst [vmem:[#allocation11_spill] sm:$0xff] %v7618_v55  ;;  %v4076_v33 = vrot.slane %v4068_v45, 3  ;;  %v4077_v22 = vrot.slane %v4069_v57, 3  ;;  %v4078_v19 = vrot.slane %v4068_v45, 4  ;;  %v4079_v52 = vrot.slane %v4069_v57, 4 }
 0x2ce   :  { %v4080_v30 = vrot.slane %v4068_v45, 5  ;;  %v4081_v60 = vrot.slane %v4069_v57, 5  ;;  %v4082_v58 = vrot.slane %v4068_v45, 6  ;;  %v4083_v41 = vrot.slane %v4069_v57, 6 }
 0x2cf   :  { %v4084_v32 = vrot.slane %v4068_v45, 7  ;;  %v4085_v48 = vrot.slane %v4069_v57, 7  ;;  %v4102_v51 = vadd.f32 %v4068_v45, %v3998_v6  ;;  %v4103_v0 = vadd.f32 %v4069_v57, %v3999_v1 }
 0x2d0   :  { %v4104_v9 = vadd.f32 %v4072_v18, %v4000_v61  ;;  %v4105_v4 = vadd.f32 %v4073_v53, %v4001_v25  ;;  %v4106_v37 = vadd.f32 %v4074_v43, %v4002_v11  ;;  %v4107_v7 = vadd.f32 %v4075_v13, %v4003_v62  ;;  %v8230_v53 = vld [vmem:[#allocation7_spill] sm:$0xff]  ;;  %v8231_v43 = vld [vmem:[#allocation24_spill] sm:$0xff] }
 0x2d1   :  { %v4108_v39 = vadd.f32 %v4076_v33, %v4004_v40  ;;  %v4109_v3 = vadd.f32 %v4077_v22, %v4005_v36  ;;  %v4110_v50 = vadd.f32 %v4078_v19, %v4006_v20  ;;  %v4111_v21 = vadd.f32 %v4079_v52, %v4007_v28 }
 0x2d2   :  { %v4112_v47 = vadd.f32 %v4080_v30, %v4008_v34  ;;  %v4113_v44 = vadd.f32 %v4081_v60, %v4009_v2  ;;  %v4114_v55 = vadd.f32 %v4082_v58, %v4010_v59  ;;  %v4115_v10 = vadd.f32 %v4083_v41, %v4011_v23  ;;  %v8226_v45 = vld [vmem:[#allocation10_spill] sm:$0xff] }
 0x2d3   :  { %v4116_v42 = vadd.f32 %v4084_v32, %v4012_v31  ;;  %v4117_v54 = vadd.f32 %v4085_v48, %v4013_v27  ;;  %v4132_v63 = vrot.slane %v8223_v49, 4  ;;  %v4134_v46 = vrot.slane %v8223_v49, 5 }
 0x2d4   :  { %v4136_v6 = vrot.slane %v8223_v49, 6  ;;  %v4138_v1 = vrot.slane %v8223_v49, 7  ;;  %v7631_v61 = vadd.f32 %v8223_v49, %v4052_v16  ;;  %v7633_v25 = vadd.f32 %v4126_v38, %v4054_v29  ;;  %v8227_v38 = vld [vmem:[#allocation8_spill] sm:$0xff] }
 0x2d5   :  { %v4574_v11 = vpop.eup %4573  ;;  %v7635_v62 = vadd.f32 %v4128_v17, %v4056_v26  ;;  %v7637_v40 = vadd.f32 %v4130_v24, %v4058_v8  ;;  %v7639_v36 = vadd.f32 %v4132_v63, %v4060_v35  ;;  %v7641_v20 = vadd.f32 %v4134_v46, %v4062_v15  ;;  %v8224_v35 = vld [vmem:[#allocation23_spill] sm:$0xff]  ;;  %v8225_v15 = vld [vmem:[#allocation32_spill] sm:$0xff] }
 0x2d6   :  { %v4127_v28 = vrot.slane %v4574_v11, 1  ;;  %v4129_v34 = vrot.slane %v4574_v11, 2  ;;  %v4131_v2 = vrot.slane %v4574_v11, 3  ;;  %v4133_v59 = vrot.slane %v4574_v11, 4 }
 0x2d7   :  { %v4135_v23 = vrot.slane %v4574_v11, 5  ;;  %v4137_v31 = vrot.slane %v4574_v11, 6  ;;  %v4139_v27 = vrot.slane %v4574_v11, 7  ;;  %v4157_v16 = vadd.f32 %v4574_v11, %v7600_v12  ;;  %v8228_v12 = vld [vmem:[#allocation6_spill] sm:$0xff] }
 0x2d8   :  { %v4159_v29 = vadd.f32 %v4127_v28, %v7602_v56  ;;  %v7646_v26 = vadd.f32 %v4129_v34, %v7604_v5  ;;  %v7649_v8 = vadd.f32 %v4131_v2, %v7606_v14  ;;  %v7652_v46 = vadd.f32 %v4133_v59, %v8224_v35  ;;  %v8229_v5 = vld [vmem:[#allocation11_spill] sm:$0xff] }
 0x2d9   :  { %v7655_v63 = vadd.f32 %v4135_v23, %v8225_v15  ;;  %v7658_v57 = vadd.f32 %v4136_v6, %v8226_v45  ;;  %v7661_v17 = vadd.f32 %v4137_v31, %v8227_v38  ;;  %v7664_v56 = vadd.f32 %v4138_v1, %v8228_v12 }
 0x2da   :  { %v7667_v24 = vadd.f32 %v4139_v27, %v8229_v5  ;;  %v4172_v14 = vmul.f32 6.0, %v8223_v49  ;;  %v4173_v18 = vmul.f32 6.0, %v4574_v11  ;;  %4575 = vpow2.f32 %v8230_v53 }
 0x2db   :  { %4577 = vpow2.f32 %v8231_v43 }
 0x2dc   :  { %v4176_v13 = vrot.slane %v4172_v14, 1  ;;  %v4177_v33 = vrot.slane %v4173_v18, 1  ;;  %v4178_v22 = vrot.slane %v4172_v14, 2  ;;  %v4179_v19 = vrot.slane %v4173_v18, 2 }
 0x2dd   :  { %v4180_v52 = vrot.slane %v4172_v14, 3  ;;  %v4181_v30 = vrot.slane %v4173_v18, 3  ;;  %v4182_v60 = vrot.slane %v4172_v14, 4  ;;  %v4183_v58 = vrot.slane %v4173_v18, 4 }
 0x2de   :  { %v4184_v41 = vrot.slane %v4172_v14, 5  ;;  %v4185_v32 = vrot.slane %v4173_v18, 5  ;;  %v4186_v48 = vrot.slane %v4172_v14, 6  ;;  %v4187_v6 = vrot.slane %v4173_v18, 6 }
 0x2df   :  { %v4188_v1 = vrot.slane %v4172_v14, 7  ;;  %v4189_v28 = vrot.slane %v4173_v18, 7  ;;  %v7672_v49 = vadd.f32 %v4172_v14, %v4102_v51  ;;  %v7674_v11 = vadd.f32 %v4173_v18, %v4103_v0 }
 0x2e0   :  { %v7676_v34 = vadd.f32 %v4176_v13, %v4104_v9  ;;  %v7678_v2 = vadd.f32 %v4177_v33, %v4105_v4  ;;  %v7680_v59 = vadd.f32 %v4178_v22, %v4106_v37  ;;  %v7682_v23 = vadd.f32 %v4179_v19, %v4107_v7 }
 0x2e1   :  { %v7684_v31 = vadd.f32 %v4180_v52, %v4108_v39  ;;  %v7686_v27 = vadd.f32 %v4181_v30, %v4109_v3  ;;  %v7688_v35 = vadd.f32 %v4182_v60, %v4110_v50  ;;  %v7690_v15 = vadd.f32 %v4183_v58, %v4111_v21 }
 0x2e2   :  { %v7692_v51 = vadd.f32 %v4184_v41, %v4112_v47  ;;  %v7694_v0 = vadd.f32 %v4185_v32, %v4113_v44  ;;  %v7696_v9 = vadd.f32 %v4186_v48, %v4114_v55  ;;  %v7698_v4 = vadd.f32 %v4187_v6, %v4115_v10 }
 0x2e3   :  { %v7700_v37 = vadd.f32 %v4188_v1, %v4116_v42  ;;  %v7702_v7 = vadd.f32 %v4189_v28, %v4117_v54 }
 0x2e4   :  { %v4576_v39 = vpop.eup %4575 }
 0x2e5   :  { %v4578_v45 = vpop.eup %4577  ;;  %v4230_v3 = vrot.slane %v4576_v39, 1  ;;  %v4232_v38 = vrot.slane %v4576_v39, 2  ;;  %v4234_v50 = vrot.slane %v4576_v39, 3  ;;  %v4236_v12 = vrot.slane %v4576_v39, 4 }
 0x2e6   :  { %v4231_v21 = vrot.slane %v4578_v45, 1  ;;  %v4233_v5 = vrot.slane %v4578_v45, 2  ;;  %v4235_v47 = vrot.slane %v4578_v45, 3  ;;  %v4237_v14 = vrot.slane %v4578_v45, 4 }
 0x2e7   :  { %v4238_v44 = vrot.slane %v4576_v39, 5  ;;  %v4239_v18 = vrot.slane %v4578_v45, 5  ;;  %v4240_v55 = vrot.slane %v4576_v39, 6  ;;  %v4241_v53 = vrot.slane %v4578_v45, 6 }
 0x2e8   :  { %v4242_v10 = vrot.slane %v4576_v39, 7  ;;  %v4243_v43 = vrot.slane %v4578_v45, 7  ;;  %v7705_v42 = vadd.f32 %v4576_v39, %v7631_v61  ;;  %v7707_v54 = vadd.f32 %v4578_v45, %v4157_v16 }
 0x2e9   :  { %v7710_v13 = vadd.f32 %v4230_v3, %v7633_v25  ;;  %v7712_v33 = vadd.f32 %v4231_v21, %v4159_v29  ;;  %v7715_v22 = vadd.f32 %v4232_v38, %v7635_v62  ;;  %v7718_v19 = vadd.f32 %v4233_v5, %v7646_v26 }
 0x2ea   :  { %v7721_v52 = vadd.f32 %v4234_v50, %v7637_v40  ;;  %v7724_v30 = vadd.f32 %v4235_v47, %v7649_v8  ;;  %v7727_v61 = vadd.f32 %v4236_v12, %v7639_v36  ;;  %v7730_v25 = vadd.f32 %v4237_v14, %v7652_v46 }
 0x2eb   :  { %v7733_v16 = vadd.f32 %v4238_v44, %v7641_v20  ;;  %v7736_v62 = vadd.f32 %v4239_v18, %v7655_v63  ;;  %v7739_v29 = vadd.f32 %v4240_v55, %v7658_v57  ;;  %v7742_v40 = vadd.f32 %v4241_v53, %v7661_v17 }
 0x2ec   :  { %v7745_v26 = vadd.f32 %v4242_v10, %v7664_v56  ;;  %v7748_v36 = vadd.f32 %v4243_v43, %v7667_v24  ;;  %v4276_v8 = vmul.f32 7.0, %v4576_v39  ;;  %v4277_v46 = vmul.f32 7.0, %v4578_v45 }
 0x2ed   :  { %v4348_v20 = vrot.slane %v7710_v13, 7  ;;  %v4350_v60 = vrot.slane %v7715_v22, 6  ;;  %v4352_v63 = vrot.slane %v7721_v52, 5  ;;  %v4368_v43 = vrot.slane %v7730_v25, 4 }
 0x2ee   :  { %v4280_v58 = vrot.slane %v4276_v8, 1  ;;  %v4281_v57 = vrot.slane %v4277_v46, 1  ;;  %v4282_v41 = vrot.slane %v4276_v8, 2  ;;  %v4283_v32 = vrot.slane %v4277_v46, 2 }
 0x2ef   :  { %v4284_v17 = vrot.slane %v4276_v8, 3  ;;  %v4285_v48 = vrot.slane %v4277_v46, 3  ;;  %v4286_v6 = vrot.slane %v4276_v8, 4  ;;  %v4287_v56 = vrot.slane %v4277_v46, 4 }
 0x2f0   :  { %v4288_v1 = vrot.slane %v4276_v8, 5  ;;  %v4289_v28 = vrot.slane %v4277_v46, 5  ;;  %v4290_v24 = vrot.slane %v4276_v8, 6  ;;  %v4291_v3 = vrot.slane %v4277_v46, 6 }
 0x2f1   :  { %v4292_v39 = vrot.slane %v4276_v8, 7  ;;  %v4293_v45 = vrot.slane %v4277_v46, 7  ;;  %v4310_v38 = vadd.f32 %v4276_v8, %v7672_v49  ;;  %v4311_v50 = vadd.f32 %v4277_v46, %v7674_v11 }
 0x2f2   :  { %v4312_v12 = vadd.f32 %v4280_v58, %v7676_v34  ;;  %v4313_v21 = vadd.f32 %v4281_v57, %v7678_v2  ;;  %v4314_v5 = vadd.f32 %v4282_v41, %v7680_v59  ;;  %v4315_v47 = vadd.f32 %v4283_v32, %v7682_v23 }
 0x2f3   :  { %v4316_v14 = vadd.f32 %v4284_v17, %v7684_v31  ;;  %v4317_v44 = vadd.f32 %v4285_v48, %v7686_v27  ;;  %v4318_v18 = vadd.f32 %v4286_v6, %v7688_v35  ;;  %v4319_v55 = vadd.f32 %v4287_v56, %v7690_v15 }
 0x2f4   :  { %v4320_v49 = vadd.f32 %v4288_v1, %v7692_v51  ;;  %v4321_v11 = vadd.f32 %v4289_v28, %v7694_v0  ;;  %v4322_v34 = vadd.f32 %v4290_v24, %v7696_v9  ;;  %v4323_v2 = vadd.f32 %v4291_v3, %v7698_v4 }
 0x2f5   :  { %v4324_v59 = vadd.f32 %v4292_v39, %v7700_v37  ;;  %v4325_v23 = vadd.f32 %v4293_v45, %v7702_v7  ;;  %v4349_v31 = vsel %vm1851_vm2, %v4348_v20, %v7705_v42  ;;  %v4354_v27 = vrot.slane %v7727_v61, 4 }
 0x2f6   :  { %v4351_v35 = vsel %vm1853_vm3, %v4350_v60, %v4349_v31  ;;  %v4356_v15 = vrot.slane %v7733_v16, 3  ;;  %v4358_v51 = vrot.slane %v7739_v29, 2  ;;  %v4362_v0 = vrot.slane %v7712_v33, 7 }
 0x2f7   :  { %v4353_v9 = vsel %vm1855_vm4, %v4352_v63, %v4351_v35  ;;  %v4360_v4 = vrot.slane %v7745_v26, 1  ;;  %v4364_v37 = vrot.slane %v7718_v19, 6  ;;  %v4366_v7 = vrot.slane %v7724_v30, 5 }
 0x2f8   :  { %v4355_v53 = vsel %vm1857_vm6, %v4354_v27, %v4353_v9  ;;  %v4363_v10 = vsel %vm1851_vm2, %v4362_v0, %v7707_v54  ;;  %v4370_v8 = vrot.slane %v7736_v62, 3  ;;  %v4372_v60 = vrot.slane %v7742_v40, 2 }
 0x2f9   :  { %v4357_v46 = vsel %vm1859_vm7, %v4356_v15, %v4355_v53  ;;  %v4365_v20 = vsel %vm1853_vm3, %v4364_v37, %v4363_v10  ;;  %v4374_v63 = vrot.slane %v7748_v36, 1  ;;  %v4380_v41 = vmul.f32 1e-06, %v7705_v42 }
 0x2fa   :  { %v4359_v58 = vsel %vm1861_vm8, %v4358_v51, %v4357_v46  ;;  %v4367_v57 = vsel %vm1855_vm4, %v4366_v7, %v4365_v20  ;;  %v4381_v32 = vmul.f32 1e-06, %v7707_v54  ;;  %v4382_v6 = vmul.f32 1e-06, %v7710_v13 }
 0x2fb   :  { %v7794_v17 = vsel %vm1863_vm9, %v4360_v4, %v4359_v58  ;;  %v4369_v48 = vsel %vm1857_vm6, %v4368_v43, %v4367_v57  ;;  %v4383_v56 = vmul.f32 1e-06, %v7712_v33  ;;  %v4384_v28 = vmul.f32 1e-06, %v7715_v22 }
 0x2fc   :  { %v4371_v1 = vsel %vm1859_vm7, %v4370_v8, %v4369_v48  ;;  %v4385_v24 = vmul.f32 1e-06, %v7718_v19  ;;  %v4386_v3 = vmul.f32 1e-06, %v7721_v52  ;;  %v4387_v54 = vmul.f32 1e-06, %v7724_v30 }
 0x2fd   :  { %v4373_v42 = vsel %vm1861_vm8, %v4372_v60, %v4371_v1  ;;  %v4388_v39 = vmul.f32 1e-06, %v7727_v61  ;;  %v4389_v45 = vmul.f32 1e-06, %v7730_v25  ;;  %v4390_v33 = vmul.f32 1e-06, %v7733_v16 }
 0x2fe   :  { %v4375_v13 = vsel %vm1863_vm9, %v4374_v63, %v4373_v42  ;;  %v4391_v31 = vmul.f32 1e-06, %v7736_v62  ;;  %v4392_v22 = vmul.f32 1e-06, %v7739_v29  ;;  %v4393_v19 = vmul.f32 1e-06, %v7742_v40 }
 0x2ff   :  { %v4394_v52 = vmul.f32 1e-06, %v7745_v26  ;;  %v4395_v27 = vmul.f32 1e-06, %v7748_v36  ;;  %v4396_v35 = vadd.f32 %v4380_v41, %v4310_v38  ;;  %v4397_v30 = vadd.f32 %v4381_v32, %v4311_v50  ;;  %v4330_v32 = vpop.permute.xlu0 %4329 }
 0x300   :  { %v4398_v15 = vadd.f32 %v4382_v6, %v4312_v12  ;;  %v4399_v61 = vadd.f32 %v4383_v56, %v4313_v21  ;;  %v4400_v51 = vadd.f32 %v4384_v28, %v4314_v5  ;;  %v4401_v25 = vadd.f32 %v4385_v24, %v4315_v47 }
 0x301   :  { %v4402_v0 = vadd.f32 %v4386_v3, %v4316_v14  ;;  %v4403_v9 = vadd.f32 %v4387_v54, %v4317_v44  ;;  %v4404_v4 = vadd.f32 %v4388_v39, %v4318_v18  ;;  %v4405_v16 = vadd.f32 %v4389_v45, %v4319_v55 }
 0x302   :  { %v4406_v37 = vadd.f32 %v4390_v33, %v4320_v49  ;;  %v4407_v62 = vadd.f32 %v4391_v31, %v4321_v11  ;;  %v4408_v7 = vadd.f32 %v4392_v22, %v4322_v34  ;;  %v4409_v29 = vadd.f32 %v4393_v19, %v4323_v2 }
 0x303   :  { %v4410_v53 = vadd.f32 %v4394_v52, %v4324_v59  ;;  %v4411_v40 = vadd.f32 %v4395_v27, %v4325_v23  ;;  %v4428_v10 = vrot.slane %v4398_v15, 7  ;;  %v4430_v26 = vrot.slane %v4400_v51, 6 }
 0x304   :  { %v4442_v43 = vrot.slane %v4399_v61, 7  ;;  %v4432_v38 = vrot.slane %v4402_v0, 5  ;;  %v4444_v50 = vrot.slane %v4401_v25, 6  ;;  %v4434_v21 = vrot.slane %v4404_v4, 4 }
 0x305   :  { %v4429_v36 = vsel %vm1851_vm2, %v4428_v10, %v4396_v35  ;;  %v4446_v47 = vrot.slane %v4403_v9, 5  ;;  %v4436_v44 = vrot.slane %v4406_v37, 3  ;;  %v4448_v55 = vrot.slane %v4405_v16, 4 }
 0x306   :  { %v4431_v12 = vsel %vm1853_vm3, %v4430_v26, %v4429_v36  ;;  %v4443_v5 = vsel %vm1851_vm2, %v4442_v43, %v4397_v30  ;;  %v4438_v11 = vrot.slane %v4408_v7, 2  ;;  %v4450_v2 = vrot.slane %v4407_v62, 3 }
 0x307   :  { %v4433_v14 = vsel %vm1855_vm4, %v4432_v38, %v4431_v12  ;;  %v4445_v18 = vsel %vm1853_vm3, %v4444_v50, %v4443_v5  ;;  %v4440_v23 = vrot.slane %v4410_v53, 1  ;;  %v4452_v46 = vrot.slane %v4409_v29, 2 }
 0x308   :  { %v4435_v49 = vsel %vm1857_vm6, %v4434_v21, %v4433_v14  ;;  %v4447_v34 = vsel %vm1855_vm4, %v4446_v47, %v4445_v18  ;;  %v4454_v63 = vrot.slane %v4411_v40, 1  ;;  %v4378_v48 = vmul.f32 %v7794_v17, %v4330_v32 }
 0x309   :  { %v4437_v59 = vsel %vm1859_vm7, %v4436_v44, %v4435_v49  ;;  %v4449_v8 = vsel %vm1857_vm6, %v4448_v55, %v4447_v34  ;;  %v4379_v56 = vmul.f32 %v4375_v13, %v4330_v32 }
 0x30a   :  { %v4439_v20 = vsel %vm1861_vm8, %v4438_v11, %v4437_v59  ;;  %v4451_v60 = vsel %vm1859_vm7, %v4450_v2, %v4449_v8 }
 0x30b   :  { %v4441_v58 = vsel %vm1863_vm9, %v4440_v23, %v4439_v20  ;;  %v4453_v57 = vsel %vm1861_vm8, %v4452_v46, %v4451_v60 }
 0x30c   :  { %v4455_v41 = vsel %vm1863_vm9, %v4454_v63, %v4453_v57  ;;  %4579 = vrcp.f32 %v4441_v58 }
 0x30d   :  { %4581 = vrcp.f32 %v4455_v41 }
 0x316   :  { %v4580_v6 = vpop.eup %4579 }
 0x317   :  { %v4582_v1 = vpop.eup %4581  ;;  %v4459_v28 = vmul.f32 %v4580_v6, %v4378_v48 }
 0x318   :  { %v4461_v24 = vmul.f32 %v4582_v1, %v4379_v56 }
 0x319   :  { %4462 = vst [vmem:[%s7839_s4] sm:$0xff] %v4459_v28 }
 0x31a   :  { %4463 = vst [vmem:[%s7839_s4 + $0x8] sm:$0xff] %v4461_v24 }

</bundles_post_ra>
